<compile_context>
chip_gen: v7x
topology: tpu7x:2x2x1
jax: 0.10.0
libtpu: 0.0.40
codegen_flags: <defaults>
</compile_context>

<pallas_src>
import jax
import jax.numpy as jnp
from jax.experimental import pallas as pl
from jax.experimental.pallas import tpu as pltpu

EPS = 1e-5
NEG_SLOPE = 0.2


def _vmem_limit_bytes():
    """~0.7x of the generation's VMEM capacity, with a safe fallback."""
    try:
        cap = pltpu.get_tpu_info().vmem_capacity_bytes
    except Exception:
        cap = 64 * 1024 * 1024
    return int(cap * 0.7)


# -----------------------------------------------------------------------------
# Kernels
# -----------------------------------------------------------------------------
def _conv_tail(v, w_ref, y_ref, stats_ref, pad_ref, pc_ref, acc_ref, H, W, C):
    """3x3 'same' conv of one (H, W, C) f32 image with a zero halo.

    v        : (H, W, C) f32 values (already pre-activated if needed)
    w_ref    : (3, 3C, C) bf16 tap-merged weights (dx taps concatenated on K)
    y_ref    : (1, H*W, C) bf16 output block (pixels-major intermediate)
    stats_ref: (1, 2, C) f32 output block -> [sum, sum-of-squares] over H*W
    pad_ref  : (H+2, W+2, C) f32 VMEM scratch (zero halo)
    pc_ref   : (H+2, W, 3C) bf16 VMEM scratch (dx-merged matmul operand)
    acc_ref  : (H*W, C) f32 VMEM scratch (MXU accumulator)
    """
    HW = H * W
    C3 = 3 * C

    # Zero only the 1-pixel halo strips; the interior is fully overwritten
    # every step.  Done each step (cheap) -- a program_id==0 guard would be
    # wrong under megacore partitioning of the "parallel" grid axis.
    zrow = jnp.zeros((1, W + 2, C), jnp.float32)
    pad_ref[0:1, :, :] = zrow
    pad_ref[H + 1:H + 2, :, :] = zrow
    zcol = jnp.zeros((H + 2, 1, C), jnp.float32)
    pad_ref[:, 0:1, :] = zcol
    pad_ref[:, W + 1:W + 2, :] = zcol

    pad_ref[1:H + 1, 1:W + 1, :] = v

    # Build the dx-merged bf16 operand once (explicit VMEM scratch, cast once
    # per dx tap); it is reused across the three dy taps below, so each
    # element of the image is cast/copied ~3x total, not 9x.
    for dx in range(3):
        pc_ref[:, :, dx * C:(dx + 1) * C] = \
            pad_ref[:, dx:dx + W, :].astype(jnp.bfloat16)

    # Three MXU matmuls with K = 3C, accumulated into the f32 VMEM scratch
    # (no full-size f32 value adds).  Operands bf16, accumulation f32.
    acc_ref[...] = jnp.dot(pc_ref[0:H, :, :].reshape(HW, C3), w_ref[0],
                           preferred_element_type=jnp.float32)
    acc_ref[...] += jnp.dot(pc_ref[1:H + 1, :, :].reshape(HW, C3), w_ref[1],
                            preferred_element_type=jnp.float32)
    acc_ref[...] += jnp.dot(pc_ref[2:H + 2, :, :].reshape(HW, C3), w_ref[2],
                            preferred_element_type=jnp.float32)

    acc = acc_ref[...]

    # One-pass BN partial statistics (finalized on the host side).
    stats_ref[0] = jnp.concatenate(
        [jnp.sum(acc, axis=0, keepdims=True),
         jnp.sum(acc * acc, axis=0, keepdims=True)], axis=0)

    # bf16 intermediate in HBM (pixels-major, no transpose needed here).
    y_ref[0] = acc.astype(jnp.bfloat16)


def _make_conv1_kernel(H, W, C):
    def kernel(x_ref, w_ref, y_ref, stats_ref, pad_ref, pc_ref, acc_ref):
        # x block is the lane-dense NCHW view (1, C, H*W); move channels to
        # the minor axis with one in-kernel 2-D XLU transpose (hidden under
        # the block DMA), then split pixels back into (H, W).
        xt = jnp.transpose(x_ref[0], (1, 0))            # (H*W, C)
        _conv_tail(xt.reshape(H, W, C), w_ref, y_ref, stats_ref,
                   pad_ref, pc_ref, acc_ref, H, W, C)
    return kernel


def _make_conv2_kernel(H, W, C):
    def kernel(y1_ref, s_ref, t_ref, w_ref, y_ref, stats_ref,
               pad_ref, pc_ref, acc_ref):
        # Folded BN1 (scale/shift) + LeakyReLU(0.2) on the bf16 intermediate,
        # then conv2.  y1 block is (1, H*W, C) bf16, pixels-major.
        h = y1_ref[0].astype(jnp.float32) * s_ref[...] + t_ref[...]
        h = jnp.where(h > 0, h, NEG_SLOPE * h)
        _conv_tail(h.reshape(H, W, C), w_ref, y_ref, stats_ref,
                   pad_ref, pc_ref, acc_ref, H, W, C)
    return kernel


def _bn2_residual_kernel(y2_ref, x_ref, s_ref, t_ref, o_ref):
    """Lane-dense NCHW epilogue: out = y2^T * s2 + t2 + x.

    y2_ref: (1, H*W, C) bf16;  x_ref/o_ref: (1, C, H*W) f32;  s/t: (C, 1) f32.
    The single 2-D transpose of y2 is hidden under the (much larger) block DMA.
    """
    y = jnp.transpose(y2_ref[0].astype(jnp.float32), (1, 0))   # (C, H*W)
    o_ref[0] = y * s_ref[...] + t_ref[...] + x_ref[0]


# -----------------------------------------------------------------------------
# Wrapper
# -----------------------------------------------------------------------------
def _conv_pass(kernel, inputs, in_specs, N, H, W, C, in_bytes_per_elem):
    HW, C3 = H * W, 3 * C
    flops = 2 * 9 * N * HW * C * C
    bytes_accessed = N * HW * C * (in_bytes_per_elem + 2) + 2 * 9 * C * C
    return pl.pallas_call(
        kernel,
        out_shape=(jax.ShapeDtypeStruct((N, HW, C), jnp.bfloat16),
                   jax.ShapeDtypeStruct((N, 2, C), jnp.float32)),
        grid_spec=pltpu.PrefetchScalarGridSpec(
            num_scalar_prefetch=0,
            grid=(N,),
            in_specs=in_specs,
            out_specs=[pl.BlockSpec((1, HW, C), lambda n: (n, 0, 0)),
                       pl.BlockSpec((1, 2, C), lambda n: (n, 0, 0))],
            scratch_shapes=[pltpu.VMEM((H + 2, W + 2, C), jnp.float32),
                            pltpu.VMEM((H + 2, W, C3), jnp.bfloat16),
                            pltpu.VMEM((HW, C), jnp.float32)]),
        compiler_params=pltpu.CompilerParams(
            dimension_semantics=("parallel",),
            vmem_limit_bytes=_vmem_limit_bytes()),
        cost_estimate=pl.CostEstimate(flops=flops, transcendentals=0,
                                      bytes_accessed=bytes_accessed),
    )(*inputs)


def _finalize_bn(stats, gamma, beta, count):
    """Fold training-mode BN into per-channel scale/shift (f32, one pass)."""
    tot = jnp.sum(stats, axis=0)                              # (2, C)
    mean = tot[0] / count
    var = jnp.maximum(tot[1] / count - mean * mean, 0.0)      # biased variance
    scale = gamma.reshape(-1) * jax.lax.rsqrt(var + EPS)
    shift = beta.reshape(-1) - mean * scale
    return scale, shift


@jax.jit
def generator_residual_block(x_nchw, params):
    """x_nchw: (N, C, H, W) float32. Returns (N, C, H, W) float32."""
    N, C, H, W = x_nchw.shape
    HW = H * W
    C3 = 3 * C
    count = N * HW

    # Free (no-copy) NCHW view with a lane-dense H*W minor dim; no XLA-side
    # layout transposes anywhere in the pipeline.
    x = x_nchw.reshape(N, C, HW).astype(jnp.float32)

    # Tap-merge weights along K: (9, Cin, Cout) -> (3, 3*Cin, Cout), row index
    # dx*C + cin per dy.  Conv biases are dropped (cancelled by training-mode
    # BN mean subtraction).
    w1m = params["w1"].reshape(3, C3, C).astype(jnp.bfloat16)
    w2m = params["w2"].reshape(3, C3, C).astype(jnp.bfloat16)

    x_spec = pl.BlockSpec((1, C, HW), lambda n: (n, 0, 0))     # lane-dense NCHW
    y_spec = pl.BlockSpec((1, HW, C), lambda n: (n, 0, 0))     # bf16 intermediates
    w_spec = pl.BlockSpec((3, C3, C), lambda n: (0, 0, 0))
    vec_spec = pl.BlockSpec((1, C), lambda n: (0, 0))
    col_spec = pl.BlockSpec((C, 1), lambda n: (0, 0))

    # ---- pass 1: conv1 + per-image BN1 partial stats -------------------------
    y1, st1 = _conv_pass(_make_conv1_kernel(H, W, C), (x, w1m),
                         [x_spec, w_spec], N, H, W, C, 4)
    s1, t1 = _finalize_bn(st1, params["g1"], params["be1"], count)

    # ---- pass 2: BN1-apply + LeakyReLU + conv2 + BN2 partial stats -----------
    y2, st2 = _conv_pass(_make_conv2_kernel(H, W, C),
                         (y1, s1.reshape(1, C), t1.reshape(1, C), w2m),
                         [y_spec, vec_spec, vec_spec, w_spec], N, H, W, C, 2)
    s2, t2 = _finalize_bn(st2, params["g2"], params["be2"], count)

    # ---- pass 3: BN2-apply + residual add, lane-dense NCHW blocks ------------
    out3 = pl.pallas_call(
        _bn2_residual_kernel,
        out_shape=jax.ShapeDtypeStruct((N, C, HW), jnp.float32),
        grid_spec=pltpu.PrefetchScalarGridSpec(
            num_scalar_prefetch=0,
            grid=(N,),
            in_specs=[y_spec, x_spec, col_spec, col_spec],
            out_specs=x_spec),
        compiler_params=pltpu.CompilerParams(
            dimension_semantics=("parallel",),
            vmem_limit_bytes=_vmem_limit_bytes()),
        cost_estimate=pl.CostEstimate(
            flops=3 * N * C * HW, transcendentals=0,
            bytes_accessed=N * C * HW * (2 + 4 + 4)),
    )(y2, x, s2.reshape(C, 1), t2.reshape(C, 1))

    return out3.reshape(N, C, H, W)                           # NCHW, free view


# -----------------------------------------------------------------------------
# Params / reference / test
# -----------------------------------------------------------------------------
def _init_params(key, C):
    k1, k2, k3, k4, k5, k6, k7, k8 = jax.random.split(key, 8)
    scale = 0.1
    return {
        "w1": scale * jax.random.normal(k1, (9, C, C), jnp.float32),
        "b1": scale * jax.random.normal(k2, (1, C), jnp.float32),   # cancelled by BN
        "g1": 1.0 + 0.1 * jax.random.normal(k5, (1, C), jnp.float32),
        "be1": 0.1 * jax.random.normal(k6, (1, C), jnp.float32),
        "w2": scale * jax.random.normal(k3, (9, C, C), jnp.float32),
        "b2": scale * jax.random.normal(k4, (1, C), jnp.float32),   # cancelled by BN
        "g2": 1.0 + 0.1 * jax.random.normal(k7, (1, C), jnp.float32),
        "be2": 0.1 * jax.random.normal(k8, (1, C), jnp.float32),
    }


def _reference(x_nchw, params):
    """Pure-JAX f32 reference (matches the PyTorch forward in training mode)."""
    N, C, H, W = x_nchw.shape
    x = jnp.transpose(x_nchw, (0, 2, 3, 1)).astype(jnp.float32)

    def conv(h, w9, b):
        w = w9.reshape(3, 3, C, C)
        y = jax.lax.conv_general_dilated(
            h, w, window_strides=(1, 1), padding=((1, 1), (1, 1)),
            dimension_numbers=("NHWC", "HWIO", "NHWC"))
        return y + b.reshape(1, 1, 1, C)

    def bn(h, g, be):
        mean = jnp.mean(h, axis=(0, 1, 2), keepdims=True)
        var = jnp.mean((h - mean) ** 2, axis=(0, 1, 2), keepdims=True)
        return (h - mean) * jax.lax.rsqrt(var + EPS) * g.reshape(1, 1, 1, C) \
            + be.reshape(1, 1, 1, C)

    h = conv(x, params["w1"], params["b1"])
    h = bn(h, params["g1"], params["be1"])
    h = jnp.where(h > 0, h, NEG_SLOPE * h)
    h = conv(h, params["w2"], params["b2"])
    h = bn(h, params["g2"], params["be2"])
    return jnp.transpose(h + x, (0, 3, 1, 2))


if __name__ == "__main__":
    key = jax.random.PRNGKey(0)
    kx, kp = jax.random.split(key)

    N, C, H, W = 2, 8, 16, 16           # small stand-in for (N, 64, H, W)
    x = jax.random.normal(kx, (N, C, H, W), jnp.float32)
    params = _init_params(kp, C)

    out = jax.block_until_ready(generator_residual_block(x, params))
    ref = jax.block_until_ready(_reference(x, params))

    assert out.shape == (N, C, H, W)
    # Kernel uses bf16 MXU operands and bf16-stored intermediates (y1/y2) with
    # f32 accumulation/statistics -> compare against the full-f32 reference
    # with a correspondingly looser tolerance.
    err = jnp.max(jnp.abs(out - ref))
    assert jnp.allclose(out, ref, rtol=3e-2, atol=3e-2), f"max abs err = {err}"

    print("KERNEL_OK")
</pallas_src>

<mosaic_0001>
module attributes {stable_mosaic.version = 11 : i64} {
  func.func @kernel(%arg0: i32, %arg1: memref<1x8x256xf32, #tpu.memory_space<vmem>>, %arg2: memref<3x24x8xbf16, #tpu.memory_space<vmem>>, %arg3: memref<1x256x8xbf16, #tpu.memory_space<vmem>>, %arg4: memref<1x2x8xf32, #tpu.memory_space<vmem>>, %arg5: memref<18x18x8xf32, #tpu.memory_space<vmem>>, %arg6: memref<18x16x24xbf16, #tpu.memory_space<vmem>>, %arg7: memref<256x8xf32, #tpu.memory_space<vmem>>) attributes {dimension_semantics = [#tpu.dimension_semantics<parallel>], iteration_bounds = array<i64: 2>, scalar_prefetch = 0 : i64, scratch_operands = 3 : i64, tpu.core_type = #tpu.core_type<tc>, window_params = [{transform_indices = @transform_0, window_bounds = array<i64: 1, 8, 256>}, {pipeline_mode = #tpu.pipeline_mode<synchronous>, transform_indices = @transform_1, window_bounds = array<i64: 3, 24, 8>}, {transform_indices = @transform_2, window_bounds = array<i64: 1, 256, 8>}, {transform_indices = @transform_3, window_bounds = array<i64: 1, 2, 8>}]} {
    %c0 = arith.constant 0 : index
    %c0_0 = arith.constant 0 : index
    %c0_1 = arith.constant 0 : index
    %0 = vector.load %arg1[%c0, %c0_0, %c0_1] : memref<1x8x256xf32, #tpu.memory_space<vmem>>, vector<1x8x256xf32>
    %1 = vector.shape_cast %0 : vector<1x8x256xf32> to vector<8x256xf32>
    %2 = tpu.transpose %1, [1, 0] : vector<8x256xf32> -> vector<256x8xf32>
    %3 = vector.shape_cast %2 : vector<256x8xf32> to vector<16x16x8xf32>
    %cst = arith.constant 0.000000e+00 : f32
    %4 = vector.broadcast %cst : f32 to vector<1x18x8xf32>
    %c0_2 = arith.constant 0 : index
    %c0_3 = arith.constant 0 : index
    %c0_4 = arith.constant 0 : index
    %5 = vector.load %arg5[%c0_2, %c0_3, %c0_4] : memref<18x18x8xf32, #tpu.memory_space<vmem>>, vector<1x18x8xf32>
    tpu.vector_store %arg5[%c0_2, %c0_3, %c0_4], %4 {strides = array<i32>} : memref<18x18x8xf32, #tpu.memory_space<vmem>>, vector<1x18x8xf32>,
    %c17 = arith.constant 17 : index
    %c0_5 = arith.constant 0 : index
    %c0_6 = arith.constant 0 : index
    %6 = vector.load %arg5[%c17, %c0_5, %c0_6] : memref<18x18x8xf32, #tpu.memory_space<vmem>>, vector<1x18x8xf32>
    tpu.vector_store %arg5[%c17, %c0_5, %c0_6], %4 {strides = array<i32>} : memref<18x18x8xf32, #tpu.memory_space<vmem>>, vector<1x18x8xf32>,
    %cst_7 = arith.constant 0.000000e+00 : f32
    %7 = vector.broadcast %cst_7 : f32 to vector<18x1x8xf32>
    %c0_8 = arith.constant 0 : index
    %c0_9 = arith.constant 0 : index
    %c0_10 = arith.constant 0 : index
    %8 = vector.load %arg5[%c0_8, %c0_9, %c0_10] : memref<18x18x8xf32, #tpu.memory_space<vmem>>, vector<18x1x8xf32>
    tpu.vector_store %arg5[%c0_8, %c0_9, %c0_10], %7 {strides = array<i32>} : memref<18x18x8xf32, #tpu.memory_space<vmem>>, vector<18x1x8xf32>,
    %c0_11 = arith.constant 0 : index
    %c17_12 = arith.constant 17 : index
    %c0_13 = arith.constant 0 : index
    %9 = vector.load %arg5[%c0_11, %c17_12, %c0_13] : memref<18x18x8xf32, #tpu.memory_space<vmem>>, vector<18x1x8xf32>
    tpu.vector_store %arg5[%c0_11, %c17_12, %c0_13], %7 {strides = array<i32>} : memref<18x18x8xf32, #tpu.memory_space<vmem>>, vector<18x1x8xf32>,
    %c1 = arith.constant 1 : index
    %c1_14 = arith.constant 1 : index
    %c0_15 = arith.constant 0 : index
    %10 = vector.load %arg5[%c1, %c1_14, %c0_15] : memref<18x18x8xf32, #tpu.memory_space<vmem>>, vector<16x16x8xf32>
    tpu.vector_store %arg5[%c1, %c1_14, %c0_15], %3 {strides = array<i32>} : memref<18x18x8xf32, #tpu.memory_space<vmem>>, vector<16x16x8xf32>,
    %c0_16 = arith.constant 0 : index
    %c0_17 = arith.constant 0 : index
    %c0_18 = arith.constant 0 : index
    %11 = vector.load %arg5[%c0_16, %c0_17, %c0_18] : memref<18x18x8xf32, #tpu.memory_space<vmem>>, vector<18x16x8xf32>
    %12 = arith.truncf %11 : vector<18x16x8xf32> to vector<18x16x8xbf16>
    %c0_19 = arith.constant 0 : index
    %c0_20 = arith.constant 0 : index
    %c0_21 = arith.constant 0 : index
    %13 = vector.load %arg6[%c0_19, %c0_20, %c0_21] : memref<18x16x24xbf16, #tpu.memory_space<vmem>>, vector<18x16x8xbf16>
    tpu.vector_store %arg6[%c0_19, %c0_20, %c0_21], %12 {strides = array<i32>} : memref<18x16x24xbf16, #tpu.memory_space<vmem>>, vector<18x16x8xbf16>,
    %c0_22 = arith.constant 0 : index
    %c1_23 = arith.constant 1 : index
    %c0_24 = arith.constant 0 : index
    %14 = vector.load %arg5[%c0_22, %c1_23, %c0_24] : memref<18x18x8xf32, #tpu.memory_space<vmem>>, vector<18x16x8xf32>
    %15 = arith.truncf %14 : vector<18x16x8xf32> to vector<18x16x8xbf16>
    %c0_25 = arith.constant 0 : index
    %c0_26 = arith.constant 0 : index
    %c8 = arith.constant 8 : index
    %16 = vector.load %arg6[%c0_25, %c0_26, %c8] : memref<18x16x24xbf16, #tpu.memory_space<vmem>>, vector<18x16x8xbf16>
    tpu.vector_store %arg6[%c0_25, %c0_26, %c8], %15 {strides = array<i32>} : memref<18x16x24xbf16, #tpu.memory_space<vmem>>, vector<18x16x8xbf16>,
    %c0_27 = arith.constant 0 : index
    %c2 = arith.constant 2 : index
    %c0_28 = arith.constant 0 : index
    %17 = vector.load %arg5[%c0_27, %c2, %c0_28] : memref<18x18x8xf32, #tpu.memory_space<vmem>>, vector<18x16x8xf32>
    %18 = arith.truncf %17 : vector<18x16x8xf32> to vector<18x16x8xbf16>
    %c0_29 = arith.constant 0 : index
    %c0_30 = arith.constant 0 : index
    %c16 = arith.constant 16 : index
    %19 = vector.load %arg6[%c0_29, %c0_30, %c16] : memref<18x16x24xbf16, #tpu.memory_space<vmem>>, vector<18x16x8xbf16>
    tpu.vector_store %arg6[%c0_29, %c0_30, %c16], %18 {strides = array<i32>} : memref<18x16x24xbf16, #tpu.memory_space<vmem>>, vector<18x16x8xbf16>,
    %c0_31 = arith.constant 0 : index
    %c0_32 = arith.constant 0 : index
    %c0_33 = arith.constant 0 : index
    %20 = vector.load %arg6[%c0_31, %c0_32, %c0_33] : memref<18x16x24xbf16, #tpu.memory_space<vmem>>, vector<16x16x24xbf16>
    %21 = vector.shape_cast %20 : vector<16x16x24xbf16> to vector<256x24xbf16>
    %c0_34 = arith.constant 0 : index
    %c0_35 = arith.constant 0 : index
    %c0_36 = arith.constant 0 : index
    %22 = vector.load %arg2[%c0_34, %c0_35, %c0_36] : memref<3x24x8xbf16, #tpu.memory_space<vmem>>, vector<1x24x8xbf16>
    %23 = vector.shape_cast %22 : vector<1x24x8xbf16> to vector<24x8xbf16>
    %cst_37 = arith.constant dense<0.000000e+00> : vector<256x8xf32>
    %24 = tpu.matmul %21, %23, %cst_37 {dimension_numbers = #tpu.dot_dimension_numbers<[1], [0], [0], [1], [0, 0, 1, 1], [], []>} : vector<256x24xbf16>, vector<24x8xbf16>, vector<256x8xf32> -> vector<256x8xf32>
    %c0_38 = arith.constant 0 : index
    %c0_39 = arith.constant 0 : index
    %25 = vector.load %arg7[%c0_38, %c0_39] : memref<256x8xf32, #tpu.memory_space<vmem>>, vector<256x8xf32>
    tpu.vector_store %arg7[%c0_38, %c0_39], %24 {strides = array<i32>} : memref<256x8xf32, #tpu.memory_space<vmem>>, vector<256x8xf32>,
    %c0_40 = arith.constant 0 : index
    %c0_41 = arith.constant 0 : index
    %26 = vector.load %arg7[%c0_40, %c0_41] : memref<256x8xf32, #tpu.memory_space<vmem>>, vector<256x8xf32>
    %c1_42 = arith.constant 1 : index
    %c0_43 = arith.constant 0 : index
    %c0_44 = arith.constant 0 : index
    %27 = vector.load %arg6[%c1_42, %c0_43, %c0_44] : memref<18x16x24xbf16, #tpu.memory_space<vmem>>, vector<16x16x24xbf16>
    %28 = vector.shape_cast %27 : vector<16x16x24xbf16> to vector<256x24xbf16>
    %c1_45 = arith.constant 1 : index
    %c0_46 = arith.constant 0 : index
    %c0_47 = arith.constant 0 : index
    %29 = vector.load %arg2[%c1_45, %c0_46, %c0_47] : memref<3x24x8xbf16, #tpu.memory_space<vmem>>, vector<1x24x8xbf16>
    %30 = vector.shape_cast %29 : vector<1x24x8xbf16> to vector<24x8xbf16>
    %cst_48 = arith.constant dense<0.000000e+00> : vector<256x8xf32>
    %31 = tpu.matmul %28, %30, %cst_48 {dimension_numbers = #tpu.dot_dimension_numbers<[1], [0], [0], [1], [0, 0, 1, 1], [], []>} : vector<256x24xbf16>, vector<24x8xbf16>, vector<256x8xf32> -> vector<256x8xf32>
    %32 = arith.addf %26, %31 : vector<256x8xf32>
    %c0_49 = arith.constant 0 : index
    %c0_50 = arith.constant 0 : index
    %33 = vector.load %arg7[%c0_49, %c0_50] : memref<256x8xf32, #tpu.memory_space<vmem>>, vector<256x8xf32>
    tpu.vector_store %arg7[%c0_49, %c0_50], %32 {strides = array<i32>} : memref<256x8xf32, #tpu.memory_space<vmem>>, vector<256x8xf32>,
    %c0_51 = arith.constant 0 : index
    %c0_52 = arith.constant 0 : index
    %34 = vector.load %arg7[%c0_51, %c0_52] : memref<256x8xf32, #tpu.memory_space<vmem>>, vector<256x8xf32>
    %c2_53 = arith.constant 2 : index
    %c0_54 = arith.constant 0 : index
    %c0_55 = arith.constant 0 : index
    %35 = vector.load %arg6[%c2_53, %c0_54, %c0_55] : memref<18x16x24xbf16, #tpu.memory_space<vmem>>, vector<16x16x24xbf16>
    %36 = vector.shape_cast %35 : vector<16x16x24xbf16> to vector<256x24xbf16>
    %c2_56 = arith.constant 2 : index
    %c0_57 = arith.constant 0 : index
    %c0_58 = arith.constant 0 : index
    %37 = vector.load %arg2[%c2_56, %c0_57, %c0_58] : memref<3x24x8xbf16, #tpu.memory_space<vmem>>, vector<1x24x8xbf16>
    %38 = vector.shape_cast %37 : vector<1x24x8xbf16> to vector<24x8xbf16>
    %cst_59 = arith.constant dense<0.000000e+00> : vector<256x8xf32>
    %39 = tpu.matmul %36, %38, %cst_59 {dimension_numbers = #tpu.dot_dimension_numbers<[1], [0], [0], [1], [0, 0, 1, 1], [], []>} : vector<256x24xbf16>, vector<24x8xbf16>, vector<256x8xf32> -> vector<256x8xf32>
    %40 = arith.addf %34, %39 : vector<256x8xf32>
    %c0_60 = arith.constant 0 : index
    %c0_61 = arith.constant 0 : index
    %41 = vector.load %arg7[%c0_60, %c0_61] : memref<256x8xf32, #tpu.memory_space<vmem>>, vector<256x8xf32>
    tpu.vector_store %arg7[%c0_60, %c0_61], %40 {strides = array<i32>} : memref<256x8xf32, #tpu.memory_space<vmem>>, vector<256x8xf32>,
    %c0_62 = arith.constant 0 : index
    %c0_63 = arith.constant 0 : index
    %42 = vector.load %arg7[%c0_62, %c0_63] : memref<256x8xf32, #tpu.memory_space<vmem>>, vector<256x8xf32>
    %cst_64 = arith.constant dense<0.000000e+00> : vector<8xf32>
    %43 = vector.multi_reduction <add>, %42, %cst_64 [0] : vector<256x8xf32> to vector<8xf32>
    %44 = vector.shape_cast %43 : vector<8xf32> to vector<1x8xf32>
    %45 = arith.mulf %42, %42 : vector<256x8xf32>
    %cst_65 = arith.constant dense<0.000000e+00> : vector<8xf32>
    %46 = vector.multi_reduction <add>, %45, %cst_65 [0] : vector<256x8xf32> to vector<8xf32>
    %47 = vector.shape_cast %46 : vector<8xf32> to vector<1x8xf32>
    %48 = tpu.concatenate %44, %47 in 0 : vector<1x8xf32>, vector<1x8xf32> -> vector<2x8xf32>
    %c0_66 = arith.constant 0 : index
    %c0_67 = arith.constant 0 : index
    %c0_68 = arith.constant 0 : index
    %49 = vector.load %arg4[%c0_66, %c0_67, %c0_68] : memref<1x2x8xf32, #tpu.memory_space<vmem>>, vector<1x2x8xf32>
    %50 = vector.shape_cast %49 : vector<1x2x8xf32> to vector<2x8xf32>
    %51 = vector.shape_cast %48 : vector<2x8xf32> to vector<1x2x8xf32>
    tpu.vector_store %arg4[%c0_66, %c0_67, %c0_68], %51 {strides = array<i32>} : memref<1x2x8xf32, #tpu.memory_space<vmem>>, vector<1x2x8xf32>,
    %52 = arith.truncf %42 : vector<256x8xf32> to vector<256x8xbf16>
    %c0_69 = arith.constant 0 : index
    %c0_70 = arith.constant 0 : index
    %c0_71 = arith.constant 0 : index
    %53 = vector.load %arg3[%c0_69, %c0_70, %c0_71] : memref<1x256x8xbf16, #tpu.memory_space<vmem>>, vector<1x256x8xbf16>
    %54 = vector.shape_cast %53 : vector<1x256x8xbf16> to vector<256x8xbf16>
    %55 = vector.shape_cast %52 : vector<256x8xbf16> to vector<1x256x8xbf16>
    tpu.vector_store %arg3[%c0_69, %c0_70, %c0_71], %55 {strides = array<i32>} : memref<1x256x8xbf16, #tpu.memory_space<vmem>>, vector<1x256x8xbf16>,
    return
  }
  func.func @transform_0(%arg0: i32) -> (i32, i32, i32) {
    %c0_i32 = arith.constant 0 : i32
    %c0_i32_0 = arith.constant 0 : i32
    %c0_i32_1 = arith.constant 0 : i32
    return %arg0, %c0_i32, %c0_i32_0 : i32, i32, i32
  }
  func.func @transform_1(%arg0: i32) -> (i32, i32, i32) {
    %c0_i32 = arith.constant 0 : i32
    %c0_i32_0 = arith.constant 0 : i32
    %c0_i32_1 = arith.constant 0 : i32
    %c0_i32_2 = arith.constant 0 : i32
    return %c0_i32, %c0_i32_0, %c0_i32_1 : i32, i32, i32
  }
  func.func @transform_2(%arg0: i32) -> (i32, i32, i32) {
    %c0_i32 = arith.constant 0 : i32
    %c0_i32_0 = arith.constant 0 : i32
    %c0_i32_1 = arith.constant 0 : i32
    return %arg0, %c0_i32, %c0_i32_0 : i32, i32, i32
  }
  func.func @transform_3(%arg0: i32) -> (i32, i32, i32) {
    %c0_i32 = arith.constant 0 : i32
    %c0_i32_0 = arith.constant 0 : i32
    %c0_i32_1 = arith.constant 0 : i32
    return %arg0, %c0_i32, %c0_i32_0 : i32, i32, i32
  }
}

module attributes {stable_mosaic.version = 11 : i64} {
  func.func @kernel(%arg0: i32, %arg1: memref<1x256x8xbf16, #tpu.memory_space<vmem>>, %arg2: memref<1x8xf32, #tpu.memory_space<vmem>>, %arg3: memref<1x8xf32, #tpu.memory_space<vmem>>, %arg4: memref<3x24x8xbf16, #tpu.memory_space<vmem>>, %arg5: memref<1x256x8xbf16, #tpu.memory_space<vmem>>, %arg6: memref<1x2x8xf32, #tpu.memory_space<vmem>>, %arg7: memref<18x18x8xf32, #tpu.memory_space<vmem>>, %arg8: memref<18x16x24xbf16, #tpu.memory_space<vmem>>, %arg9: memref<256x8xf32, #tpu.memory_space<vmem>>) attributes {dimension_semantics = [#tpu.dimension_semantics<parallel>], iteration_bounds = array<i64: 2>, scalar_prefetch = 0 : i64, scratch_operands = 3 : i64, tpu.core_type = #tpu.core_type<tc>, window_params = [{transform_indices = @transform_0, window_bounds = array<i64: 1, 256, 8>}, {pipeline_mode = #tpu.pipeline_mode<synchronous>, transform_indices = @transform_1, window_bounds = array<i64: 1, 8>}, {pipeline_mode = #tpu.pipeline_mode<synchronous>, transform_indices = @transform_2, window_bounds = array<i64: 1, 8>}, {pipeline_mode = #tpu.pipeline_mode<synchronous>, transform_indices = @transform_3, window_bounds = array<i64: 3, 24, 8>}, {transform_indices = @transform_4, window_bounds = array<i64: 1, 256, 8>}, {transform_indices = @transform_5, window_bounds = array<i64: 1, 2, 8>}]} {
    %c0 = arith.constant 0 : index
    %c0_0 = arith.constant 0 : index
    %c0_1 = arith.constant 0 : index
    %0 = vector.load %arg1[%c0, %c0_0, %c0_1] : memref<1x256x8xbf16, #tpu.memory_space<vmem>>, vector<1x256x8xbf16>
    %1 = vector.shape_cast %0 : vector<1x256x8xbf16> to vector<256x8xbf16>
    %2 = arith.extf %1 : vector<256x8xbf16> to vector<256x8xf32>
    %c0_2 = arith.constant 0 : index
    %c0_3 = arith.constant 0 : index
    %3 = vector.load %arg2[%c0_2, %c0_3] : memref<1x8xf32, #tpu.memory_space<vmem>>, vector<1x8xf32>
    %4 = vector.broadcast %3 : vector<1x8xf32> to vector<256x8xf32>
    %5 = arith.mulf %2, %4 : vector<256x8xf32>
    %c0_4 = arith.constant 0 : index
    %c0_5 = arith.constant 0 : index
    %6 = vector.load %arg3[%c0_4, %c0_5] : memref<1x8xf32, #tpu.memory_space<vmem>>, vector<1x8xf32>
    %7 = vector.broadcast %6 : vector<1x8xf32> to vector<256x8xf32>
    %8 = arith.addf %5, %7 : vector<256x8xf32>
    %cst = arith.constant 0.000000e+00 : f32
    %9 = vector.broadcast %cst : f32 to vector<256x8xf32>
    %10 = arith.cmpf ogt, %8, %9 : vector<256x8xf32>
    %cst_6 = arith.constant 2.000000e-01 : f32
    %11 = vector.broadcast %cst_6 : f32 to vector<256x8xf32>
    %12 = arith.mulf %11, %8 : vector<256x8xf32>
    %13 = arith.select %10, %8, %12 : vector<256x8xi1>, vector<256x8xf32>
    %14 = vector.shape_cast %13 : vector<256x8xf32> to vector<16x16x8xf32>
    %cst_7 = arith.constant 0.000000e+00 : f32
    %15 = vector.broadcast %cst_7 : f32 to vector<1x18x8xf32>
    %c0_8 = arith.constant 0 : index
    %c0_9 = arith.constant 0 : index
    %c0_10 = arith.constant 0 : index
    %16 = vector.load %arg7[%c0_8, %c0_9, %c0_10] : memref<18x18x8xf32, #tpu.memory_space<vmem>>, vector<1x18x8xf32>
    tpu.vector_store %arg7[%c0_8, %c0_9, %c0_10], %15 {strides = array<i32>} : memref<18x18x8xf32, #tpu.memory_space<vmem>>, vector<1x18x8xf32>,
    %c17 = arith.constant 17 : index
    %c0_11 = arith.constant 0 : index
    %c0_12 = arith.constant 0 : index
    %17 = vector.load %arg7[%c17, %c0_11, %c0_12] : memref<18x18x8xf32, #tpu.memory_space<vmem>>, vector<1x18x8xf32>
    tpu.vector_store %arg7[%c17, %c0_11, %c0_12], %15 {strides = array<i32>} : memref<18x18x8xf32, #tpu.memory_space<vmem>>, vector<1x18x8xf32>,
    %cst_13 = arith.constant 0.000000e+00 : f32
    %18 = vector.broadcast %cst_13 : f32 to vector<18x1x8xf32>
    %c0_14 = arith.constant 0 : index
    %c0_15 = arith.constant 0 : index
    %c0_16 = arith.constant 0 : index
    %19 = vector.load %arg7[%c0_14, %c0_15, %c0_16] : memref<18x18x8xf32, #tpu.memory_space<vmem>>, vector<18x1x8xf32>
    tpu.vector_store %arg7[%c0_14, %c0_15, %c0_16], %18 {strides = array<i32>} : memref<18x18x8xf32, #tpu.memory_space<vmem>>, vector<18x1x8xf32>,
    %c0_17 = arith.constant 0 : index
    %c17_18 = arith.constant 17 : index
    %c0_19 = arith.constant 0 : index
    %20 = vector.load %arg7[%c0_17, %c17_18, %c0_19] : memref<18x18x8xf32, #tpu.memory_space<vmem>>, vector<18x1x8xf32>
    tpu.vector_store %arg7[%c0_17, %c17_18, %c0_19], %18 {strides = array<i32>} : memref<18x18x8xf32, #tpu.memory_space<vmem>>, vector<18x1x8xf32>,
    %c1 = arith.constant 1 : index
    %c1_20 = arith.constant 1 : index
    %c0_21 = arith.constant 0 : index
    %21 = vector.load %arg7[%c1, %c1_20, %c0_21] : memref<18x18x8xf32, #tpu.memory_space<vmem>>, vector<16x16x8xf32>
    tpu.vector_store %arg7[%c1, %c1_20, %c0_21], %14 {strides = array<i32>} : memref<18x18x8xf32, #tpu.memory_space<vmem>>, vector<16x16x8xf32>,
    %c0_22 = arith.constant 0 : index
    %c0_23 = arith.constant 0 : index
    %c0_24 = arith.constant 0 : index
    %22 = vector.load %arg7[%c0_22, %c0_23, %c0_24] : memref<18x18x8xf32, #tpu.memory_space<vmem>>, vector<18x16x8xf32>
    %23 = arith.truncf %22 : vector<18x16x8xf32> to vector<18x16x8xbf16>
    %c0_25 = arith.constant 0 : index
    %c0_26 = arith.constant 0 : index
    %c0_27 = arith.constant 0 : index
    %24 = vector.load %arg8[%c0_25, %c0_26, %c0_27] : memref<18x16x24xbf16, #tpu.memory_space<vmem>>, vector<18x16x8xbf16>
    tpu.vector_store %arg8[%c0_25, %c0_26, %c0_27], %23 {strides = array<i32>} : memref<18x16x24xbf16, #tpu.memory_space<vmem>>, vector<18x16x8xbf16>,
    %c0_28 = arith.constant 0 : index
    %c1_29 = arith.constant 1 : index
    %c0_30 = arith.constant 0 : index
    %25 = vector.load %arg7[%c0_28, %c1_29, %c0_30] : memref<18x18x8xf32, #tpu.memory_space<vmem>>, vector<18x16x8xf32>
    %26 = arith.truncf %25 : vector<18x16x8xf32> to vector<18x16x8xbf16>
    %c0_31 = arith.constant 0 : index
    %c0_32 = arith.constant 0 : index
    %c8 = arith.constant 8 : index
    %27 = vector.load %arg8[%c0_31, %c0_32, %c8] : memref<18x16x24xbf16, #tpu.memory_space<vmem>>, vector<18x16x8xbf16>
    tpu.vector_store %arg8[%c0_31, %c0_32, %c8], %26 {strides = array<i32>} : memref<18x16x24xbf16, #tpu.memory_space<vmem>>, vector<18x16x8xbf16>,
    %c0_33 = arith.constant 0 : index
    %c2 = arith.constant 2 : index
    %c0_34 = arith.constant 0 : index
    %28 = vector.load %arg7[%c0_33, %c2, %c0_34] : memref<18x18x8xf32, #tpu.memory_space<vmem>>, vector<18x16x8xf32>
    %29 = arith.truncf %28 : vector<18x16x8xf32> to vector<18x16x8xbf16>
    %c0_35 = arith.constant 0 : index
    %c0_36 = arith.constant 0 : index
    %c16 = arith.constant 16 : index
    %30 = vector.load %arg8[%c0_35, %c0_36, %c16] : memref<18x16x24xbf16, #tpu.memory_space<vmem>>, vector<18x16x8xbf16>
    tpu.vector_store %arg8[%c0_35, %c0_36, %c16], %29 {strides = array<i32>} : memref<18x16x24xbf16, #tpu.memory_space<vmem>>, vector<18x16x8xbf16>,
    %c0_37 = arith.constant 0 : index
    %c0_38 = arith.constant 0 : index
    %c0_39 = arith.constant 0 : index
    %31 = vector.load %arg8[%c0_37, %c0_38, %c0_39] : memref<18x16x24xbf16, #tpu.memory_space<vmem>>, vector<16x16x24xbf16>
    %32 = vector.shape_cast %31 : vector<16x16x24xbf16> to vector<256x24xbf16>
    %c0_40 = arith.constant 0 : index
    %c0_41 = arith.constant 0 : index
    %c0_42 = arith.constant 0 : index
    %33 = vector.load %arg4[%c0_40, %c0_41, %c0_42] : memref<3x24x8xbf16, #tpu.memory_space<vmem>>, vector<1x24x8xbf16>
    %34 = vector.shape_cast %33 : vector<1x24x8xbf16> to vector<24x8xbf16>
    %cst_43 = arith.constant dense<0.000000e+00> : vector<256x8xf32>
    %35 = tpu.matmul %32, %34, %cst_43 {dimension_numbers = #tpu.dot_dimension_numbers<[1], [0], [0], [1], [0, 0, 1, 1], [], []>} : vector<256x24xbf16>, vector<24x8xbf16>, vector<256x8xf32> -> vector<256x8xf32>
    %c0_44 = arith.constant 0 : index
    %c0_45 = arith.constant 0 : index
    %36 = vector.load %arg9[%c0_44, %c0_45] : memref<256x8xf32, #tpu.memory_space<vmem>>, vector<256x8xf32>
    tpu.vector_store %arg9[%c0_44, %c0_45], %35 {strides = array<i32>} : memref<256x8xf32, #tpu.memory_space<vmem>>, vector<256x8xf32>,
    %c0_46 = arith.constant 0 : index
    %c0_47 = arith.constant 0 : index
    %37 = vector.load %arg9[%c0_46, %c0_47] : memref<256x8xf32, #tpu.memory_space<vmem>>, vector<256x8xf32>
    %c1_48 = arith.constant 1 : index
    %c0_49 = arith.constant 0 : index
    %c0_50 = arith.constant 0 : index
    %38 = vector.load %arg8[%c1_48, %c0_49, %c0_50] : memref<18x16x24xbf16, #tpu.memory_space<vmem>>, vector<16x16x24xbf16>
    %39 = vector.shape_cast %38 : vector<16x16x24xbf16> to vector<256x24xbf16>
    %c1_51 = arith.constant 1 : index
    %c0_52 = arith.constant 0 : index
    %c0_53 = arith.constant 0 : index
    %40 = vector.load %arg4[%c1_51, %c0_52, %c0_53] : memref<3x24x8xbf16, #tpu.memory_space<vmem>>, vector<1x24x8xbf16>
    %41 = vector.shape_cast %40 : vector<1x24x8xbf16> to vector<24x8xbf16>
    %cst_54 = arith.constant dense<0.000000e+00> : vector<256x8xf32>
    %42 = tpu.matmul %39, %41, %cst_54 {dimension_numbers = #tpu.dot_dimension_numbers<[1], [0], [0], [1], [0, 0, 1, 1], [], []>} : vector<256x24xbf16>, vector<24x8xbf16>, vector<256x8xf32> -> vector<256x8xf32>
    %43 = arith.addf %37, %42 : vector<256x8xf32>
    %c0_55 = arith.constant 0 : index
    %c0_56 = arith.constant 0 : index
    %44 = vector.load %arg9[%c0_55, %c0_56] : memref<256x8xf32, #tpu.memory_space<vmem>>, vector<256x8xf32>
    tpu.vector_store %arg9[%c0_55, %c0_56], %43 {strides = array<i32>} : memref<256x8xf32, #tpu.memory_space<vmem>>, vector<256x8xf32>,
    %c0_57 = arith.constant 0 : index
    %c0_58 = arith.constant 0 : index
    %45 = vector.load %arg9[%c0_57, %c0_58] : memref<256x8xf32, #tpu.memory_space<vmem>>, vector<256x8xf32>
    %c2_59 = arith.constant 2 : index
    %c0_60 = arith.constant 0 : index
    %c0_61 = arith.constant 0 : index
    %46 = vector.load %arg8[%c2_59, %c0_60, %c0_61] : memref<18x16x24xbf16, #tpu.memory_space<vmem>>, vector<16x16x24xbf16>
    %47 = vector.shape_cast %46 : vector<16x16x24xbf16> to vector<256x24xbf16>
    %c2_62 = arith.constant 2 : index
    %c0_63 = arith.constant 0 : index
    %c0_64 = arith.constant 0 : index
    %48 = vector.load %arg4[%c2_62, %c0_63, %c0_64] : memref<3x24x8xbf16, #tpu.memory_space<vmem>>, vector<1x24x8xbf16>
    %49 = vector.shape_cast %48 : vector<1x24x8xbf16> to vector<24x8xbf16>
    %cst_65 = arith.constant dense<0.000000e+00> : vector<256x8xf32>
    %50 = tpu.matmul %47, %49, %cst_65 {dimension_numbers = #tpu.dot_dimension_numbers<[1], [0], [0], [1], [0, 0, 1, 1], [], []>} : vector<256x24xbf16>, vector<24x8xbf16>, vector<256x8xf32> -> vector<256x8xf32>
    %51 = arith.addf %45, %50 : vector<256x8xf32>
    %c0_66 = arith.constant 0 : index
    %c0_67 = arith.constant 0 : index
    %52 = vector.load %arg9[%c0_66, %c0_67] : memref<256x8xf32, #tpu.memory_space<vmem>>, vector<256x8xf32>
    tpu.vector_store %arg9[%c0_66, %c0_67], %51 {strides = array<i32>} : memref<256x8xf32, #tpu.memory_space<vmem>>, vector<256x8xf32>,
    %c0_68 = arith.constant 0 : index
    %c0_69 = arith.constant 0 : index
    %53 = vector.load %arg9[%c0_68, %c0_69] : memref<256x8xf32, #tpu.memory_space<vmem>>, vector<256x8xf32>
    %cst_70 = arith.constant dense<0.000000e+00> : vector<8xf32>
    %54 = vector.multi_reduction <add>, %53, %cst_70 [0] : vector<256x8xf32> to vector<8xf32>
    %55 = vector.shape_cast %54 : vector<8xf32> to vector<1x8xf32>
    %56 = arith.mulf %53, %53 : vector<256x8xf32>
    %cst_71 = arith.constant dense<0.000000e+00> : vector<8xf32>
    %57 = vector.multi_reduction <add>, %56, %cst_71 [0] : vector<256x8xf32> to vector<8xf32>
    %58 = vector.shape_cast %57 : vector<8xf32> to vector<1x8xf32>
    %59 = tpu.concatenate %55, %58 in 0 : vector<1x8xf32>, vector<1x8xf32> -> vector<2x8xf32>
    %c0_72 = arith.constant 0 : index
    %c0_73 = arith.constant 0 : index
    %c0_74 = arith.constant 0 : index
    %60 = vector.load %arg6[%c0_72, %c0_73, %c0_74] : memref<1x2x8xf32, #tpu.memory_space<vmem>>, vector<1x2x8xf32>
    %61 = vector.shape_cast %60 : vector<1x2x8xf32> to vector<2x8xf32>
    %62 = vector.shape_cast %59 : vector<2x8xf32> to vector<1x2x8xf32>
    tpu.vector_store %arg6[%c0_72, %c0_73, %c0_74], %62 {strides = array<i32>} : memref<1x2x8xf32, #tpu.memory_space<vmem>>, vector<1x2x8xf32>,
    %63 = arith.truncf %53 : vector<256x8xf32> to vector<256x8xbf16>
    %c0_75 = arith.constant 0 : index
    %c0_76 = arith.constant 0 : index
    %c0_77 = arith.constant 0 : index
    %64 = vector.load %arg5[%c0_75, %c0_76, %c0_77] : memref<1x256x8xbf16, #tpu.memory_space<vmem>>, vector<1x256x8xbf16>
    %65 = vector.shape_cast %64 : vector<1x256x8xbf16> to vector<256x8xbf16>
    %66 = vector.shape_cast %63 : vector<256x8xbf16> to vector<1x256x8xbf16>
    tpu.vector_store %arg5[%c0_75, %c0_76, %c0_77], %66 {strides = array<i32>} : memref<1x256x8xbf16, #tpu.memory_space<vmem>>, vector<1x256x8xbf16>,
    return
  }
  func.func @transform_0(%arg0: i32) -> (i32, i32, i32) {
    %c0_i32 = arith.constant 0 : i32
    %c0_i32_0 = arith.constant 0 : i32
    %c0_i32_1 = arith.constant 0 : i32
    return %arg0, %c0_i32, %c0_i32_0 : i32, i32, i32
  }
  func.func @transform_1(%arg0: i32) -> (i32, i32) {
    %c0_i32 = arith.constant 0 : i32
    %c0_i32_0 = arith.constant 0 : i32
    %c0_i32_1 = arith.constant 0 : i32
    return %c0_i32, %c0_i32_0 : i32, i32
  }
  func.func @transform_2(%arg0: i32) -> (i32, i32) {
    %c0_i32 = arith.constant 0 : i32
    %c0_i32_0 = arith.constant 0 : i32
    %c0_i32_1 = arith.constant 0 : i32
    return %c0_i32, %c0_i32_0 : i32, i32
  }
  func.func @transform_3(%arg0: i32) -> (i32, i32, i32) {
    %c0_i32 = arith.constant 0 : i32
    %c0_i32_0 = arith.constant 0 : i32
    %c0_i32_1 = arith.constant 0 : i32
    %c0_i32_2 = arith.constant 0 : i32
    return %c0_i32, %c0_i32_0, %c0_i32_1 : i32, i32, i32
  }
  func.func @transform_4(%arg0: i32) -> (i32, i32, i32) {
    %c0_i32 = arith.constant 0 : i32
    %c0_i32_0 = arith.constant 0 : i32
    %c0_i32_1 = arith.constant 0 : i32
    return %arg0, %c0_i32, %c0_i32_0 : i32, i32, i32
  }
  func.func @transform_5(%arg0: i32) -> (i32, i32, i32) {
    %c0_i32 = arith.constant 0 : i32
    %c0_i32_0 = arith.constant 0 : i32
    %c0_i32_1 = arith.constant 0 : i32
    return %arg0, %c0_i32, %c0_i32_0 : i32, i32, i32
  }
}

module attributes {stable_mosaic.version = 11 : i64} {
  func.func @_bn2_residual_kernel(%arg0: i32, %arg1: memref<1x256x8xbf16, #tpu.memory_space<vmem>>, %arg2: memref<1x8x256xf32, #tpu.memory_space<vmem>>, %arg3: memref<8x1xf32, #tpu.memory_space<vmem>>, %arg4: memref<8x1xf32, #tpu.memory_space<vmem>>, %arg5: memref<1x8x256xf32, #tpu.memory_space<vmem>>) attributes {dimension_semantics = [#tpu.dimension_semantics<parallel>], iteration_bounds = array<i64: 2>, scalar_prefetch = 0 : i64, scratch_operands = 0 : i64, tpu.core_type = #tpu.core_type<tc>, window_params = [{transform_indices = @transform_0, window_bounds = array<i64: 1, 256, 8>}, {transform_indices = @transform_1, window_bounds = array<i64: 1, 8, 256>}, {pipeline_mode = #tpu.pipeline_mode<synchronous>, transform_indices = @transform_2, window_bounds = array<i64: 8, 1>}, {pipeline_mode = #tpu.pipeline_mode<synchronous>, transform_indices = @transform_3, window_bounds = array<i64: 8, 1>}, {transform_indices = @transform_4, window_bounds = array<i64: 1, 8, 256>}]} {
    %c0 = arith.constant 0 : index
    %c0_0 = arith.constant 0 : index
    %c0_1 = arith.constant 0 : index
    %0 = vector.load %arg1[%c0, %c0_0, %c0_1] : memref<1x256x8xbf16, #tpu.memory_space<vmem>>, vector<1x256x8xbf16>
    %1 = vector.shape_cast %0 : vector<1x256x8xbf16> to vector<256x8xbf16>
    %2 = arith.extf %1 : vector<256x8xbf16> to vector<256x8xf32>
    %3 = tpu.transpose %2, [1, 0] : vector<256x8xf32> -> vector<8x256xf32>
    %c0_2 = arith.constant 0 : index
    %c0_3 = arith.constant 0 : index
    %4 = vector.load %arg3[%c0_2, %c0_3] : memref<8x1xf32, #tpu.memory_space<vmem>>, vector<8x1xf32>
    %5 = vector.broadcast %4 : vector<8x1xf32> to vector<8x256xf32>
    %6 = arith.mulf %3, %5 : vector<8x256xf32>
    %c0_4 = arith.constant 0 : index
    %c0_5 = arith.constant 0 : index
    %7 = vector.load %arg4[%c0_4, %c0_5] : memref<8x1xf32, #tpu.memory_space<vmem>>, vector<8x1xf32>
    %8 = vector.broadcast %7 : vector<8x1xf32> to vector<8x256xf32>
    %9 = arith.addf %6, %8 : vector<8x256xf32>
    %c0_6 = arith.constant 0 : index
    %c0_7 = arith.constant 0 : index
    %c0_8 = arith.constant 0 : index
    %10 = vector.load %arg2[%c0_6, %c0_7, %c0_8] : memref<1x8x256xf32, #tpu.memory_space<vmem>>, vector<1x8x256xf32>
    %11 = vector.shape_cast %10 : vector<1x8x256xf32> to vector<8x256xf32>
    %12 = arith.addf %9, %11 : vector<8x256xf32>
    %c0_9 = arith.constant 0 : index
    %c0_10 = arith.constant 0 : index
    %c0_11 = arith.constant 0 : index
    %13 = vector.load %arg5[%c0_9, %c0_10, %c0_11] : memref<1x8x256xf32, #tpu.memory_space<vmem>>, vector<1x8x256xf32>
    %14 = vector.shape_cast %13 : vector<1x8x256xf32> to vector<8x256xf32>
    %15 = vector.shape_cast %12 : vector<8x256xf32> to vector<1x8x256xf32>
    tpu.vector_store %arg5[%c0_9, %c0_10, %c0_11], %15 {strides = array<i32>} : memref<1x8x256xf32, #tpu.memory_space<vmem>>, vector<1x8x256xf32>,
    return
  }
  func.func @transform_0(%arg0: i32) -> (i32, i32, i32) {
    %c0_i32 = arith.constant 0 : i32
    %c0_i32_0 = arith.constant 0 : i32
    %c0_i32_1 = arith.constant 0 : i32
    return %arg0, %c0_i32, %c0_i32_0 : i32, i32, i32
  }
  func.func @transform_1(%arg0: i32) -> (i32, i32, i32) {
    %c0_i32 = arith.constant 0 : i32
    %c0_i32_0 = arith.constant 0 : i32
    %c0_i32_1 = arith.constant 0 : i32
    return %arg0, %c0_i32, %c0_i32_0 : i32, i32, i32
  }
  func.func @transform_2(%arg0: i32) -> (i32, i32) {
    %c0_i32 = arith.constant 0 : i32
    %c0_i32_0 = arith.constant 0 : i32
    %c0_i32_1 = arith.constant 0 : i32
    return %c0_i32, %c0_i32_0 : i32, i32
  }
  func.func @transform_3(%arg0: i32) -> (i32, i32) {
    %c0_i32 = arith.constant 0 : i32
    %c0_i32_0 = arith.constant 0 : i32
    %c0_i32_1 = arith.constant 0 : i32
    return %c0_i32, %c0_i32_0 : i32, i32
  }
  func.func @transform_4(%arg0: i32) -> (i32, i32, i32) {
    %c0_i32 = arith.constant 0 : i32
    %c0_i32_0 = arith.constant 0 : i32
    %c0_i32_1 = arith.constant 0 : i32
    return %arg0, %c0_i32, %c0_i32_0 : i32, i32, i32
  }
}

</mosaic_0001>

<bundles_post_ra>
// kernel: generator_residual_block.5
= control target key start
LH: loop header
LB: loop body
LE: loop exit
PB: predicated region body
PF: predicated region fallthrough
CT: control target
= control target key end

     0   :  { %s612_s15 = smov 0   ;;  %s662_s0 = inlined_call_operand.vmem [shape: bf16[2,256,8], index: 0, kind: input, shape index: {}]   ;;  %s663_s1 = inlined_call_operand.vmem [shape: f32[2,8,256], index: 1, kind: input, shape index: {}]   ;;  %s664_s2 = inlined_call_operand.vmem [shape: f32[8,1], index: 2, kind: input, shape index: {}]   ;;  %s665_s3 = inlined_call_operand.vmem [shape: f32[8,1], index: 3, kind: input, shape index: {}]   ;;  %s666_s4 = inlined_call_operand.vmem [shape: f32[2,8,256], index: 4, kind: output, shape index: {}]  }
   0x1 LB: > { %s435_s16 = sadd.s32 4294967295, %s584_s15   ;;  %p439_p0 = scmp.ge.s32.totalorder %s584_s15, 1  ;;  %s584_s15 = sphi %s612_s15, %s14_s15  }
   0x2   : > { %p172_p1 = scmp.lt.s32.totalorder %s584_s15, 3 }
   0x4   : > { %p173_p2 = pnand %p439_p0, %p172_p1 }
   0x5   : > { %v346_v0 = vld [vmem:[%s664_s2] sm:$0xff] (!%p173_p2)  ;;  %p203_p3 = scmp.lt.s32.totalorder (!%p173_p2), %s435_s16, 1  ;;  %v586_v1 = vmov (!%p173_p2), 0  }
   0x6   : > { %176 = sbr.rel (%p173_p2) target bundleno = 160 (0xa0), region = 36  ;;  %539 = vset.pattern.permute.xlu1 (!%p173_p2), %v586_v1  ;;  %v354_v2 = vld [vmem:[%s665_s3] sm:$0xff] (!%p173_p2) }
   0x7   : > { %349 = vperm.xlu1 (!%p173_p2), %539, %v346_v0  }
   0xb   : > { %357 = vperm.xlu1 (!%p173_p2), %539, %v354_v2  }
   0xd   : > { %s668_s16 = smov (!%p203_p3, %s435_s16), 1 }
   0xe   : > { %s448_s21 = sshll.u32 %s668_s16, 7  ;;  %s449_s25 = sshll.u32 %s668_s16, 4 }
   0xf   : > { %s633_s24 = scalar_lea.vmem %s662_s0, %s448_s21  ;;  %s212_s28 = scalar_lea.vmem %s663_s1, %s449_s25 }
  0x10   : > { %v452_v3 = vld [vmem:[%s633_s24] sm:$0xff]   ;;  %v515_v9 = vld [vmem:[%s633_s24 + $0x8] sm:$0xff]   ;;  %v516_v18 = vld [vmem:[%s633_s24 + $0x10] sm:$0xff]   ;;  %s217_s5 = scalar_lea.vmem %s666_s4, %s449_s25 }
  0x11   : > { %v522_v4 = vld [vmem:[%s633_s24 + $0x40] sm:$0xff]   ;;  %v453_v5 = vunpack.c.l.bf16 %v452_v3  ;;  %v454_v7 = vunpack.c.h.bf16 %v452_v3  ;;  %v523_v10 = vld [vmem:[%s633_s24 + $0x48] sm:$0xff]   ;;  %v457_v13 = vunpack.c.l.bf16 %v515_v9  ;;  %v458_v16 = vunpack.c.h.bf16 %v515_v9  ;;  %v524_v19 = vld [vmem:[%s633_s24 + $0x50] sm:$0xff]  }
  0x12   : > { %v485_v6 = vunpack.c.l.bf16 %v522_v4  ;;  %v486_v8 = vunpack.c.h.bf16 %v522_v4  ;;  %v489_v14 = vunpack.c.l.bf16 %v523_v10  ;;  %v490_v17 = vunpack.c.h.bf16 %v523_v10  ;;  %v517_v26 = vld [vmem:[%s633_s24 + $0x18] sm:$0xff]   ;;  %v518_v34 = vld [vmem:[%s633_s24 + $0x20] sm:$0xff]   ;;  %v519_v42 = vld [vmem:[%s633_s24 + $0x28] sm:$0xff]  }
  0x13   : > { %v461_v21 = vunpack.c.l.bf16 %v516_v18  ;;  %v493_v22 = vunpack.c.l.bf16 %v524_v19  ;;  %v462_v24 = vunpack.c.h.bf16 %v516_v18  ;;  %v494_v25 = vunpack.c.h.bf16 %v524_v19  ;;  %v525_v27 = vld [vmem:[%s633_s24 + $0x58] sm:$0xff]   ;;  %v526_v35 = vld [vmem:[%s633_s24 + $0x60] sm:$0xff]   ;;  %v527_v43 = vld [vmem:[%s633_s24 + $0x68] sm:$0xff]  }
  0x14   : > { %v540_v11 = vpack.i.bf16 %v485_v6, %v453_v5  ;;  %v542_v12 = vpack.i.bf16 %v486_v8, %v454_v7  ;;  %v544_v15 = vpack.i.bf16 %v489_v14, %v457_v13  ;;  %v546_v20 = vpack.i.bf16 %v490_v17, %v458_v16  ;;  %v520_v50 = vld [vmem:[%s633_s24 + $0x30] sm:$0xff]   ;;  %v521_v58 = vld [vmem:[%s633_s24 + $0x38] sm:$0xff]  }
  0x15   : > { %v548_v23 = vpack.i.bf16 %v493_v22, %v461_v21  ;;  %v550_v28 = vpack.i.bf16 %v494_v25, %v462_v24  ;;  %v465_v29 = vunpack.c.l.bf16 %v517_v26  ;;  %v497_v30 = vunpack.c.l.bf16 %v525_v27  ;;  %v528_v51 = vld [vmem:[%s633_s24 + $0x70] sm:$0xff]   ;;  %v529_v59 = vld [vmem:[%s633_s24 + $0x78] sm:$0xff]  }
  0x16   : > { %541 = vxpose.xlu0.b32.start [1/16] (narrow) %v540_v11, 8  ;;  %v466_v32 = vunpack.c.h.bf16 %v517_v26  ;;  %v498_v33 = vunpack.c.h.bf16 %v525_v27  ;;  %v469_v37 = vunpack.c.l.bf16 %v518_v34  ;;  %v501_v38 = vunpack.c.l.bf16 %v526_v35  ;;  %v362_v11 = vld [vmem:[%s212_s28] sm:$0xff] }
  0x17   : > { %v552_v31 = vpack.i.bf16 %v497_v30, %v465_v29  ;;  %v470_v40 = vunpack.c.h.bf16 %v518_v34  ;;  %v502_v41 = vunpack.c.h.bf16 %v526_v35  ;;  %v473_v45 = vunpack.c.l.bf16 %v519_v42 }
  0x18   : > { %v554_v36 = vpack.i.bf16 %v498_v33, %v466_v32  ;;  %v556_v39 = vpack.i.bf16 %v501_v38, %v469_v37  ;;  %v505_v46 = vunpack.c.l.bf16 %v527_v43  ;;  %v474_v48 = vunpack.c.h.bf16 %v519_v42 }
  0x19   : > { %v558_v44 = vpack.i.bf16 %v502_v41, %v470_v40  ;;  %v506_v49 = vunpack.c.h.bf16 %v527_v43  ;;  %v477_v53 = vunpack.c.l.bf16 %v520_v50  ;;  %v509_v54 = vunpack.c.l.bf16 %v528_v51 }
  0x1a   : > { %543 = vxpose.xlu0.b32.cont [2/16] (narrow) %v542_v12, 8  ;;  %v560_v47 = vpack.i.bf16 %v505_v46, %v473_v45  ;;  %v478_v56 = vunpack.c.h.bf16 %v520_v50  ;;  %v510_v57 = vunpack.c.h.bf16 %v528_v51  ;;  %v481_v61 = vunpack.c.l.bf16 %v521_v58  ;;  %v363_v12 = vld [vmem:[%s212_s28 + $0x8] sm:$0xff] }
  0x1b   : > { %v562_v52 = vpack.i.bf16 %v506_v49, %v474_v48  ;;  %v564_v55 = vpack.i.bf16 %v509_v54, %v477_v53  ;;  %v513_v62 = vunpack.c.l.bf16 %v529_v59  ;;  %v482_v0 = vunpack.c.h.bf16 %v521_v58 }
  0x1c   : > { %v566_v60 = vpack.i.bf16 %v510_v57, %v478_v56  ;;  %v514_v2 = vunpack.c.h.bf16 %v529_v59 }
  0x1d   : > { %v568_v63 = vpack.i.bf16 %v513_v62, %v481_v61 }
  0x1e   : > { %545 = vxpose.xlu0.b32.cont [3/16] (narrow) %v544_v15, 8  ;;  %v570_v3 = vpack.i.bf16 %v514_v2, %v482_v0 }
  0x22   : > { %547 = vxpose.xlu0.b32.cont [4/16] (narrow) %v546_v20, 8 }
  0x26   : > { %549 = vxpose.xlu0.b32.cont [5/16] (narrow) %v548_v23, 8 }
  0x2a   : > { %551 = vxpose.xlu0.b32.cont [6/16] (narrow) %v550_v28, 8 }
  0x2e   : > { %553 = vxpose.xlu0.b32.cont [7/16] (narrow) %v552_v31, 8 }
  0x32   : > { %555 = vxpose.xlu0.b32.cont [8/16] (narrow) %v554_v36, 8 }
  0x36   : > { %557 = vxpose.xlu0.b32.cont [9/16] (narrow) %v556_v39, 8 }
  0x3a   : > { %559 = vxpose.xlu0.b32.cont [10/16] (narrow) %v558_v44, 8 }
  0x3e   : > { %561 = vxpose.xlu0.b32.cont [11/16] (narrow) %v560_v47, 8 }
  0x42   : > { %563 = vxpose.xlu0.b32.cont [12/16] (narrow) %v562_v52, 8 }
  0x46   : > { %565 = vxpose.xlu0.b32.cont [13/16] (narrow) %v564_v55, 8 }
  0x4a   : > { %567 = vxpose.xlu0.b32.cont [14/16] (narrow) %v566_v60, 8 }
  0x4e   : > { %569 = vxpose.xlu0.b32.cont [15/16] (narrow) %v568_v63, 8 }
  0x52   : > { %571 = vxpose.xlu0.b32.end [16/16] (narrow) %v570_v3, 8 }
  0x7b   : > { %577 = vset.pattern.permute.xlu0 %v586_v1 }
  0x86   : > { %v350_v4 = vpop.permute.xlu1 %349 }
  0x8a   : > { %v358_v10 = vpop.permute.xlu1 %357 }
  0x96   : > { %v572_v5 = vpop.trf.xlu0 }
  0x97   : > { %v576_v6 = vunpack.i.h.bf16 %v572_v5  ;;  %v573_v7 = vunpack.i.l.bf16 %v572_v5 }
  0x99   : > { %v353_v8 = vmul.f32 %v576_v6, %v350_v4  ;;  %v352_v9 = vmul.f32 %v573_v7, %v350_v4 }
  0x9b   : > { %v361_v13 = vadd.f32 %v358_v10, %v353_v8  ;;  %v360_v14 = vadd.f32 %v358_v10, %v352_v9 }
  0x9d   : > { %v365_v1 = vadd.f32 %v363_v12, %v361_v13  ;;  %v364_v15 = vadd.f32 %v362_v11, %v360_v14 }
  0x9f   : > { %367 = vst [vmem:[%s217_s5 + $0x8] sm:$0xff] %v365_v1  ;;  %366 = vst [vmem:[%s217_s5] sm:$0xff] %v364_v15 }
  0xa0 PF: > { %s14_s15 = sadd.s32 1, %s584_s15  }
  0xa1   : > { %p11_p4 = scmp.ge.s32.totalorder %s14_s15, 4  }
  0xa3   :  { %13 = sbr.rel (!%p11_p4) target bundleno = 1 (0x1), region = 69 }

// kernel: generator_residual_block.3
= control target key start
LH: loop header
LB: loop body
LE: loop exit
PB: predicated region body
PF: predicated region fallthrough
CT: control target
= control target key end

     0   :  { %s2448_s12 = smov 0   ;;  %s3012_s0 = inlined_call_operand.vmem [shape: f32[2,8,256], index: 0, kind: input, shape index: {}]   ;;  %s3013_s1 = inlined_call_operand.vmem [shape: bf16[3,24,8], index: 1, kind: input, shape index: {}]   ;;  %s3014_s2 = inlined_call_operand.vmem [shape: bf16[2,256,8], index: 2, kind: output, shape index: {0}]   ;;  %s3015_s3 = inlined_call_operand.vmem [shape: f32[2,2,8], index: 3, kind: output, shape index: {1}]  }
   0x1 LB: > { %s2092_s13 = sadd.s32 4294967295, %s2423_s12   ;;  %p2096_p0 = scmp.ge.s32.totalorder %s2423_s12, 1  ;;  %s2423_s12 = sphi %s2448_s12, %s14_s12  }
   0x2   : > { %p140_p1 = scmp.lt.s32.totalorder %s2423_s12, 3 }
   0x4   : > { %p141_p2 = pnand %p2096_p0, %p140_p1 }
   0x5   : > { %p168_p3 = scmp.lt.s32.totalorder (!%p141_p2), %s2092_s13, 1  ;;  %vm249_vm0 = vcmask (!%p141_p2), 64512   ;;  %vm258_vm1 = vcmask (!%p141_p2), 57344   ;;  %v2425_v1 = vmov (!%p141_p2), 0.0   ;;  %vm252_vm2 = vcmask (!%p141_p2), 58368   ;;  %s2426_s18 = smov (!%p141_p2), 8  }
   0x6   : > { %144 = sbr.rel (%p141_p2) target bundleno = 779 (0x30b), region = 28  ;;  %250 = vst.msk [vmem:[#allocation2] sm:$0xff] (!%p141_p2), %vm249_vm0, %v2425_v1  ;;  %251 = vst.msk [vmem:[#allocation2 + $0x8] sm:$0xff] (!%p141_p2), %vm249_vm0, %v2425_v1  ;;  %s2427_s19 = smov (!%p141_p2), 16   ;;  %vm526_vm3 = vcmask (!%p141_p2), 130112   ;;  %vm671_vm4 = vcmask (!%p141_p2), 195712  }
   0x7   : > { %255 = vst.msk [vmem:[#allocation2 + $0x198] sm:$0xff] (!%p141_p2), %vm249_vm0, %v2425_v1  ;;  %256 = vst.msk [vmem:[#allocation2 + $0x1a0] sm:$0xff] (!%p141_p2), %vm249_vm0, %v2425_v1  ;;  %vm718_vm5 = vcmask (!%p141_p2), 195584   ;;  %vm767_vm6 = vcmask (!%p141_p2), 1043456   ;;  %vm1973_vm7 = vcmask (!%p141_p2), 60416   ;;  %vm1842_vm8 = vcmask (!%p141_p2), 1040384  }
   0x8   : > { %260 = vst.msk [vmem:[#allocation2 + $0x18] sm:$0x1] (!%p141_p2), %vm258_vm1, %v2425_v1  ;;  %261 = vst.msk [vmem:[#allocation2 + $0x30] sm:$0x1] (!%p141_p2), %vm258_vm1, %v2425_v1 }
   0x9   : > { %262 = vst.msk [vmem:[#allocation2 + $0x48] sm:$0x1] (!%p141_p2), %vm258_vm1, %v2425_v1  ;;  %263 = vst.msk [vmem:[#allocation2 + $0x60] sm:$0x1] (!%p141_p2), %vm258_vm1, %v2425_v1 }
   0xa   : > { %264 = vst.msk [vmem:[#allocation2 + $0x78] sm:$0x1] (!%p141_p2), %vm258_vm1, %v2425_v1  ;;  %265 = vst.msk [vmem:[#allocation2 + $0x90] sm:$0x1] (!%p141_p2), %vm258_vm1, %v2425_v1 }
   0xb   : > { %266 = vst.msk [vmem:[#allocation2 + $0xa8] sm:$0x1] (!%p141_p2), %vm258_vm1, %v2425_v1  ;;  %267 = vst.msk [vmem:[#allocation2 + $0xc0] sm:$0x1] (!%p141_p2), %vm258_vm1, %v2425_v1 }
   0xc   : > { %268 = vst.msk [vmem:[#allocation2 + $0xd8] sm:$0x1] (!%p141_p2), %vm258_vm1, %v2425_v1  ;;  %269 = vst.msk [vmem:[#allocation2 + $0xf0] sm:$0x1] (!%p141_p2), %vm258_vm1, %v2425_v1 }
   0xd   : > { %s3017_s13 = smov (!%p168_p3, %s2092_s13), 1  ;;  %270 = vst.msk [vmem:[#allocation2 + $0x108] sm:$0x1] %vm258_vm1, %v2425_v1  ;;  %271 = vst.msk [vmem:[#allocation2 + $0x120] sm:$0x1] %vm258_vm1, %v2425_v1  ;;  %v400_v3 = vld [vmem:[#allocation2 + $0x1] sm:$0xff] }
   0xe   : > { %s2196_s14 = sshll.u32 %s3017_s13, 4  ;;  %272 = vst.msk [vmem:[#allocation2 + $0x138] sm:$0x1] %vm258_vm1, %v2425_v1  ;;  %273 = vst.msk [vmem:[#allocation2 + $0x150] sm:$0x1] %vm258_vm1, %v2425_v1  ;;  %v545_v6 = vld [vmem:[#allocation2 + $0x2] sm:$0xff] }
   0xf   : > { %s2462_s17 = scalar_lea.vmem %s3012_s0, %s2196_s14  ;;  %274 = vst.msk [vmem:[#allocation2 + $0x168] sm:$0x1] %vm258_vm1, %v2425_v1  ;;  %275 = vst.msk [vmem:[#allocation2 + $0x180] sm:$0x1] %vm258_vm1, %v2425_v1  ;;  %v329_v44 = vld [vmem:[#allocation2 + $0x8] sm:$0xff]  ;;  %s2197_s5 = sshll.u32 %s3017_s13, 7 }
  0x10   : > { %v183_v0 = vld [vmem:[%s2462_s17] sm:$0xff]  ;;  %278 = vst.msk [vmem:[#allocation2 + $0x29] sm:$0x1] %vm258_vm1, %v2425_v1  ;;  %279 = vst.msk [vmem:[#allocation2 + $0x41] sm:$0x1] %vm258_vm1, %v2425_v1  ;;  %v184_v2 = vld [vmem:[%s2462_s17 + $0x8] sm:$0xff]  ;;  %s2790_s8 = scalar_lea.vmem %s3014_s2, %s2197_s5 }
  0x11   : > { %185 = vxpose.xlu0.b32.start.end [1/1] (short) %v183_v0, 128  ;;  %280 = vst.msk [vmem:[#allocation2 + $0x59] sm:$0x1] %vm258_vm1, %v2425_v1  ;;  %281 = vst.msk [vmem:[#allocation2 + $0x71] sm:$0x1] %vm258_vm1, %v2425_v1  ;;  %s2101_s9 = sshll.u32 %s3017_s13, 1 }
  0x12   : > { %282 = vst.msk [vmem:[#allocation2 + $0x89] sm:$0x1] %vm258_vm1, %v2425_v1  ;;  %283 = vst.msk [vmem:[#allocation2 + $0xa1] sm:$0x1] %vm258_vm1, %v2425_v1  ;;  %s181_s14 = scalar_lea.vmem %s3015_s3, %s2101_s9 }
  0x13   : > { %284 = vst.msk [vmem:[#allocation2 + $0xb9] sm:$0x1] %vm258_vm1, %v2425_v1  ;;  %285 = vst.msk [vmem:[#allocation2 + $0xd1] sm:$0x1] %vm258_vm1, %v2425_v1 }
  0x14   : > { %286 = vst.msk [vmem:[#allocation2 + $0xe9] sm:$0x1] %vm258_vm1, %v2425_v1  ;;  %287 = vst.msk [vmem:[#allocation2 + $0x101] sm:$0x1] %vm258_vm1, %v2425_v1 }
  0x15   : > { %288 = vst.msk [vmem:[#allocation2 + $0x119] sm:$0x1] %vm258_vm1, %v2425_v1  ;;  %289 = vst.msk [vmem:[#allocation2 + $0x131] sm:$0x1] %vm258_vm1, %v2425_v1 }
  0x16   : > { %290 = vst.msk [vmem:[#allocation2 + $0x149] sm:$0x1] %vm258_vm1, %v2425_v1  ;;  %291 = vst.msk [vmem:[#allocation2 + $0x161] sm:$0x1] %vm258_vm1, %v2425_v1 }
  0x17   : > { %292 = vst.msk [vmem:[#allocation2 + $0x179] sm:$0x1] %vm258_vm1, %v2425_v1  ;;  %293 = vst.msk [vmem:[#allocation2 + $0x191] sm:$0x1] %vm258_vm1, %v2425_v1 }
  0x18   : > { %259 = vst.msk [vmem:[#allocation2] sm:$0x1] %vm258_vm1, %v2425_v1  ;;  %276 = vst.msk [vmem:[#allocation2 + $0x198] sm:$0x1] %vm258_vm1, %v2425_v1 }
  0x19   : > { %253 = vst.msk [vmem:[#allocation2 + $0x10] sm:$0x3] %vm252_vm2, %v2425_v1  ;;  %257 = vst.msk [vmem:[#allocation2 + $0x1a8] sm:$0x3] %vm252_vm2, %v2425_v1 }
  0x1a   : > { %277 = vst.msk [vmem:[#allocation2 + $0x11] sm:$0x1] %vm258_vm1, %v2425_v1  ;;  %294 = vst.msk [vmem:[#allocation2 + $0x1a9] sm:$0x1] %vm258_vm1, %v2425_v1 }
  0x1f   : > { %v328_v45 = vld [vmem:[#allocation2] sm:$0xff] }
  0x20   : > { %v401_v4 = vld [vmem:[#allocation2 + $0x9] sm:$0xff]  ;;  %v364_v47 = vpack.c.bf16 %v329_v44, %v328_v45 }
  0x21   : > { %v436_v5 = vpack.c.bf16 %v401_v4, %v400_v3  ;;  %v546_v7 = vld [vmem:[#allocation2 + $0xa] sm:$0xff]  ;;  %v2411_v3 = vld [vmem:[%s3013_s1] sm:$0xff]  }
  0x22   : > { %v581_v8 = vpack.c.bf16 %v546_v7, %v545_v6  ;;  %382 = vst.msk [vmem:[#allocation3] sm:$0xff] %vm249_vm0, %v364_v47  ;;  %2284 = vmatprep.subr.bf16.mxu0 %v2411_v3  ;;  %2392 = vmatprep.subr.bf16.mxu1 %v2411_v3 }
  0x23   : > { %472 = vrot.lane.b32.xlu1 %v436_v5, %s2426_s18  ;;  %2285 = vmatpush3.bf16.msra.mxu0 %v2411_v3 }
  0x24   : > { %2394 = vmatpush3.bf16.msra.mxu1 %v2411_v3 }
  0x27   : > { %617 = vrot.lane.b32.xlu1 %v581_v8, %s2427_s19 }
  0x4e   : > { %217 = vxpose.xlu0.b32.start.end [1/1] (short) %v184_v2, 128 }
  0x91   : > { %v201_v9 = vpop.trf.xlu0 }
  0x92   : > { %296 = vst.msk [vmem:[#allocation2 + $0x19] sm:$0xff] %vm249_vm0, %v201_v9  ;;  %v2412_v9 = vld [vmem:[%s3013_s1 + $0x8] ss:$0 sps:$4 sm:$0xff]  }
  0x93   : > { %2396 = vmatprep.subr.msk.bf16.mxu0 %vm767_vm6, %v2412_v9  ;;  %2397 = vmatprep.subr.msk.bf16.mxu1 %vm767_vm6, %v2412_v9 }
  0x95   : > { %v202_v10 = vpop.trf.xlu0  ;;  %v473_v48 = vpop.permute.xlu1 %472 }
  0x96   : > { %297 = vst.msk [vmem:[#allocation2 + $0x21] sm:$0xff] %vm249_vm0, %v202_v10 }
  0x97   : > { %527 = vst.msk [vmem:[#allocation3] sm:$0xff] %vm526_vm3, %v473_v48 }
  0x99   : > { %v203_v11 = vpop.trf.xlu0  ;;  %v330_v13 = vld [vmem:[#allocation2 + $0x18] sm:$0xff]  ;;  %v618_v50 = vpop.permute.xlu1 %617 }
  0x9a   : > { %298 = vst.msk [vmem:[#allocation2 + $0x31] sm:$0xff] %vm249_vm0, %v203_v11 }
  0x9b   : > { %672 = vst.msk [vmem:[#allocation3] sm:$0xff] %vm671_vm4, %v618_v50 }
  0x9d   : > { %v204_v12 = vpop.trf.xlu0  ;;  %v331_v14 = vld [vmem:[#allocation2 + $0x20] sm:$0xff] }
  0x9e   : > { %299 = vst.msk [vmem:[#allocation2 + $0x39] sm:$0xff] %vm249_vm0, %v204_v12  ;;  %v365_v15 = vpack.c.bf16 %v331_v14, %v330_v13  ;;  %v403_v10 = vld [vmem:[#allocation2 + $0x21] sm:$0xff]  ;;  %v769_v12 = vsel %vm767_vm6, %v2412_v9, 0  ;;  %v402_v13 = vld [vmem:[#allocation2 + $0x19] sm:$0xff] }
  0x9f   : > { %2287 = vmatpush3.bf16.msra.mxu0 %v769_v12  ;;  %2395 = vmatpush3.bf16.msra.mxu1 %v769_v12 }
  0xa0   : > { %383 = vst.msk [vmem:[#allocation3 + $0x8] sm:$0xff] %vm249_vm0, %v365_v15  ;;  %v437_v15 = vpack.c.bf16 %v403_v10, %v402_v13 }
  0xa1   : > { %v205_v16 = vpop.trf.xlu0  ;;  %v332_v18 = vld [vmem:[#allocation2 + $0x30] sm:$0xff] }
  0xa2   : > { %300 = vst.msk [vmem:[#allocation2 + $0x49] sm:$0xff] %vm249_vm0, %v205_v16  ;;  %v690_v58 = vld [vmem:[#allocation3] sm:$0xff] }
  0xa3   : > { %2288 = vmatprep.mubr.msk.bf16.mxu0 %vm718_vm5, %v690_v58 }
  0xa5   : > { %v206_v17 = vpop.trf.xlu0  ;;  %v333_v19 = vld [vmem:[#allocation2 + $0x38] sm:$0xff] }
  0xa6   : > { %301 = vst.msk [vmem:[#allocation2 + $0x51] sm:$0xff] %vm249_vm0, %v206_v17  ;;  %v366_v20 = vpack.c.bf16 %v333_v19, %v332_v18  ;;  %v547_v17 = vld [vmem:[#allocation2 + $0x1a] sm:$0xff]  ;;  %v548_v18 = vld [vmem:[#allocation2 + $0x22] sm:$0xff]  ;;  %v549_v50 = vld [vmem:[#allocation2 + $0x32] sm:$0xff] }
  0xa8   : > { %384 = vst.msk [vmem:[#allocation3 + $0x10] sm:$0xff] %vm249_vm0, %v366_v20 }
  0xa9   : > { %v207_v21 = vpop.trf.xlu0  ;;  %v334_v24 = vld [vmem:[#allocation2 + $0x48] sm:$0xff] }
  0xaa   : > { %302 = vst.msk [vmem:[#allocation2 + $0x61] sm:$0xff] %vm249_vm0, %v207_v21  ;;  %v406_v27 = vld [vmem:[#allocation2 + $0x49] sm:$0xff]  ;;  %v582_v21 = vpack.c.bf16 %v548_v18, %v547_v17 }
  0xad   : > { %v208_v22 = vpop.trf.xlu0  ;;  %v407_v23 = vld [vmem:[#allocation2 + $0x51] sm:$0xff] }
  0xae   : > { %303 = vst.msk [vmem:[#allocation2 + $0x69] sm:$0xff] %vm249_vm0, %v208_v22  ;;  %v335_v25 = vld [vmem:[#allocation2 + $0x50] sm:$0xff]  ;;  %v439_v29 = vpack.c.bf16 %v407_v23, %v406_v27 }
  0xaf   : > { %v367_v26 = vpack.c.bf16 %v335_v25, %v334_v24 }
  0xb1   : > { %v209_v28 = vpop.trf.xlu0  ;;  %385 = vst.msk [vmem:[#allocation3 + $0x18] sm:$0xff] %vm249_vm0, %v367_v26  ;;  %v336_v31 = vld [vmem:[#allocation2 + $0x60] sm:$0xff] }
  0xb2   : > { %304 = vst.msk [vmem:[#allocation2 + $0x79] sm:$0xff] %vm249_vm0, %v209_v28 }
  0xb3   : > { %478 = vrot.lane.b32.xlu0 %v439_v29, %s2426_s18 }
  0xb5   : > { %v210_v30 = vpop.trf.xlu0  ;;  %v337_v32 = vld [vmem:[#allocation2 + $0x68] sm:$0xff] }
  0xb6   : > { %305 = vst.msk [vmem:[#allocation2 + $0x81] sm:$0xff] %vm249_vm0, %v210_v30  ;;  %v368_v33 = vpack.c.bf16 %v337_v32, %v336_v31 }
  0xb8   : > { %386 = vst.msk [vmem:[#allocation3 + $0x20] sm:$0xff] %vm249_vm0, %v368_v33  ;;  %v405_v33 = vld [vmem:[#allocation2 + $0x39] sm:$0xff] }
  0xb9   : > { %v211_v34 = vpop.trf.xlu0  ;;  %v338_v36 = vld [vmem:[#allocation2 + $0x78] sm:$0xff] }
  0xba   : > { %306 = vst.msk [vmem:[#allocation2 + $0x91] sm:$0xff] %vm249_vm0, %v211_v34 }
  0xbd   : > { %v212_v35 = vpop.trf.xlu0  ;;  %v339_v37 = vld [vmem:[#allocation2 + $0x80] sm:$0xff] }
  0xbe   : > { %307 = vst.msk [vmem:[#allocation2 + $0x99] sm:$0xff] %vm249_vm0, %v212_v35  ;;  %v369_v38 = vpack.c.bf16 %v339_v37, %v338_v36  ;;  %v404_v35 = vld [vmem:[#allocation2 + $0x31] sm:$0xff] }
  0xbf   : > { %v438_v37 = vpack.c.bf16 %v405_v33, %v404_v35  ;;  %v2595_v33 = vld [vmem:[%s3013_s1 + $0xc] sm:$0xff]  }
  0xc0   : > { %387 = vst.msk [vmem:[#allocation3 + $0x28] sm:$0xff] %vm249_vm0, %v369_v38  ;;  %2320 = vmatprep.subr.bf16.mxu1 %v2595_v33  ;;  %v409_v35 = vld [vmem:[#allocation2 + $0x69] sm:$0xff] }
  0xc1   : > { %v213_v39 = vpop.trf.xlu0  ;;  %v340_v41 = vld [vmem:[#allocation2 + $0x90] sm:$0xff] }
  0xc2   : > { %308 = vst.msk [vmem:[#allocation2 + $0xa9] sm:$0xff] %vm249_vm0, %v213_v39 }
  0xc5   : > { %v214_v40 = vpop.trf.xlu0  ;;  %v341_v42 = vld [vmem:[#allocation2 + $0x98] sm:$0xff] }
  0xc6   : > { %309 = vst.msk [vmem:[#allocation2 + $0xb1] sm:$0xff] %vm249_vm0, %v214_v40  ;;  %v370_v43 = vpack.c.bf16 %v341_v42, %v340_v41 }
  0xc8   : > { %388 = vst.msk [vmem:[#allocation3 + $0x30] sm:$0xff] %vm249_vm0, %v370_v43 }
  0xc9   : > { %v215_v46 = vpop.trf.xlu0  ;;  %v342_v51 = vld [vmem:[#allocation2 + $0xa8] sm:$0xff] }
  0xca   : > { %310 = vst.msk [vmem:[#allocation2 + $0xc1] sm:$0xff] %vm249_vm0, %v215_v46 }
  0xcd   : > { %v216_v49 = vpop.trf.xlu0  ;;  %v343_v52 = vld [vmem:[#allocation2 + $0xb0] sm:$0xff] }
  0xce   : > { %311 = vst.msk [vmem:[#allocation2 + $0xc9] sm:$0xff] %vm249_vm0, %v216_v49  ;;  %v371_v53 = vpack.c.bf16 %v343_v52, %v342_v51  ;;  %v550_v51 = vld [vmem:[#allocation2 + $0x3a] sm:$0xff] }
  0xd0   : > { %389 = vst.msk [vmem:[#allocation3 + $0x38] sm:$0xff] %vm249_vm0, %v371_v53 }
  0xd1   : > { %v233_v54 = vpop.trf.xlu0  ;;  %v344_v56 = vld [vmem:[#allocation2 + $0xc0] sm:$0xff] }
  0xd2   : > { %312 = vst.msk [vmem:[#allocation2 + $0xd9] sm:$0xff] %vm249_vm0, %v233_v54  ;;  %v583_v54 = vpack.c.bf16 %v550_v51, %v549_v50  ;;  %v413_v51 = vld [vmem:[#allocation2 + $0x99] sm:$0xff] }
  0xd5   : > { %v234_v55 = vpop.trf.xlu0  ;;  %v345_v57 = vld [vmem:[#allocation2 + $0xc8] sm:$0xff] }
  0xd6   : > { %313 = vst.msk [vmem:[#allocation2 + $0xe1] sm:$0xff] %vm249_vm0, %v234_v55  ;;  %v372_v59 = vpack.c.bf16 %v345_v57, %v344_v56  ;;  %v551_v55 = vld [vmem:[#allocation2 + $0x4a] sm:$0xff]  ;;  %v552_v56 = vld [vmem:[#allocation2 + $0x52] sm:$0xff] }
  0xd8   : > { %390 = vst.msk [vmem:[#allocation3 + $0x40] sm:$0xff] %vm249_vm0, %v372_v59  ;;  %v584_v59 = vpack.c.bf16 %v552_v56, %v551_v55  ;;  %v414_v55 = vld [vmem:[#allocation2 + $0xa9] sm:$0xff] }
  0xd9   : > { %v235_v60 = vpop.trf.xlu0  ;;  %v418_v61 = vld [vmem:[#allocation2 + $0xd9] sm:$0xff] }
  0xda   : > { %314 = vst.msk [vmem:[#allocation2 + $0xf1] sm:$0xff] %vm249_vm0, %v235_v60  ;;  %v346_v1 = vld [vmem:[#allocation2 + $0xd8] sm:$0xff] }
  0xdd   : > { %v419_v62 = vld [vmem:[#allocation2 + $0xe1] sm:$0xff]  ;;  %v236_v63 = vpop.trf.xlu0 }
  0xde   : > { %v445_v0 = vpack.c.bf16 %v419_v62, %v418_v61  ;;  %315 = vst.msk [vmem:[#allocation2 + $0xf9] sm:$0xff] %vm249_vm0, %v236_v63  ;;  %v347_v2 = vld [vmem:[#allocation2 + $0xe0] sm:$0xff] }
  0xdf   : > { %v563_v4 = vld [vmem:[#allocation2 + $0xda] sm:$0xff]  ;;  %v564_v5 = vld [vmem:[#allocation2 + $0xe2] sm:$0xff]  ;;  %v373_v6 = vpack.c.bf16 %v347_v2, %v346_v1 }
  0xe0   : > { %490 = vrot.lane.b32.xlu1 %v445_v0, %s2426_s18  ;;  %v590_v8 = vpack.c.bf16 %v564_v5, %v563_v4 }
  0xe1   : > { %v237_v7 = vpop.trf.xlu0  ;;  %391 = vst.msk [vmem:[#allocation3 + $0x48] sm:$0xff] %vm249_vm0, %v373_v6  ;;  %v348_v11 = vld [vmem:[#allocation2 + $0xf0] sm:$0xff] }
  0xe2   : > { %316 = vst.msk [vmem:[#allocation2 + $0x109] sm:$0xff] %vm249_vm0, %v237_v7  ;;  %v420_v22 = vld [vmem:[#allocation2 + $0xf1] sm:$0xff] }
  0xe4   : > { %635 = vrot.lane.b32.xlu1 %v590_v8, %s2427_s19 }
  0xe5   : > { %v238_v14 = vpop.trf.xlu0  ;;  %v349_v16 = vld [vmem:[#allocation2 + $0xf8] sm:$0xff] }
  0xe6   : > { %317 = vst.msk [vmem:[#allocation2 + $0x111] sm:$0xff] %vm249_vm0, %v238_v14  ;;  %v374_v19 = vpack.c.bf16 %v349_v16, %v348_v11  ;;  %v421_v23 = vld [vmem:[#allocation2 + $0xf9] sm:$0xff] }
  0xe7   : > { %v446_v26 = vpack.c.bf16 %v421_v23, %v420_v22  ;;  %v565_v28 = vld [vmem:[#allocation2 + $0xf2] sm:$0xff]  ;;  %v566_v29 = vld [vmem:[#allocation2 + $0xfa] sm:$0xff] }
  0xe8   : > { %474 = vrot.lane.b32.xlu1 %v437_v15, %s2426_s18  ;;  %392 = vst.msk [vmem:[#allocation3 + $0x50] sm:$0xff] %vm249_vm0, %v374_v19  ;;  %v591_v32 = vpack.c.bf16 %v566_v29, %v565_v28  ;;  %v416_v29 = vld [vmem:[#allocation2 + $0xc1] sm:$0xff] }
  0xe9   : > { %v239_v20 = vpop.trf.xlu0  ;;  %v350_v24 = vld [vmem:[#allocation2 + $0x108] sm:$0xff] }
  0xea   : > { %318 = vst.msk [vmem:[#allocation2 + $0x121] sm:$0xff] %vm249_vm0, %v239_v20  ;;  %v422_v39 = vld [vmem:[#allocation2 + $0x109] sm:$0xff] }
  0xec   : > { %619 = vrot.lane.b32.xlu1 %v582_v21, %s2427_s19 }
  0xed   : > { %v240_v25 = vpop.trf.xlu0  ;;  %v351_v27 = vld [vmem:[#allocation2 + $0x110] sm:$0xff] }
  0xee   : > { %319 = vst.msk [vmem:[#allocation2 + $0x129] sm:$0xff] %vm249_vm0, %v240_v25  ;;  %v375_v30 = vpack.c.bf16 %v351_v27, %v350_v24  ;;  %v423_v40 = vld [vmem:[#allocation2 + $0x111] sm:$0xff]  ;;  %v417_v27 = vld [vmem:[#allocation2 + $0xc9] sm:$0xff] }
  0xef   : > { %v447_v43 = vpack.c.bf16 %v423_v40, %v422_v39  ;;  %v567_v44 = vld [vmem:[#allocation2 + $0x10a] sm:$0xff]  ;;  %v568_v45 = vld [vmem:[#allocation2 + $0x112] sm:$0xff] }
  0xf0   : > { %492 = vrot.lane.b32.xlu1 %v446_v26, %s2426_s18  ;;  %393 = vst.msk [vmem:[#allocation3 + $0x58] sm:$0xff] %vm249_vm0, %v375_v30  ;;  %v592_v48 = vpack.c.bf16 %v568_v45, %v567_v44  ;;  %v444_v30 = vpack.c.bf16 %v417_v27, %v416_v29  ;;  %v2603_v40 = vld [vmem:[%s3013_s1 + $0x18] sm:$0xff]   ;;  %v553_v45 = vld [vmem:[#allocation2 + $0x62] sm:$0xff] }
  0xf1   : > { %v241_v31 = vpop.trf.xlu0  ;;  %v352_v34 = vld [vmem:[#allocation2 + $0x120] sm:$0xff]  ;;  %2356 = vmatprep.subr.bf16.mxu0 %v2603_v40 }
  0xf2   : > { %320 = vst.msk [vmem:[#allocation2 + $0x139] sm:$0xff] %vm249_vm0, %v241_v31  ;;  %v424_v61 = vld [vmem:[#allocation2 + $0x121] sm:$0xff] }
  0xf3   : > { %v561_v31 = vld [vmem:[#allocation2 + $0xc2] sm:$0xff] }
  0xf4   : > { %637 = vrot.lane.b32.xlu1 %v591_v32, %s2427_s19  ;;  %v562_v32 = vld [vmem:[#allocation2 + $0xca] sm:$0xff] }
  0xf5   : > { %v242_v36 = vpop.trf.xlu0  ;;  %v353_v38 = vld [vmem:[#allocation2 + $0x128] sm:$0xff] }
  0xf6   : > { %321 = vst.msk [vmem:[#allocation2 + $0x141] sm:$0xff] %vm249_vm0, %v242_v36  ;;  %v376_v41 = vpack.c.bf16 %v353_v38, %v352_v34  ;;  %v425_v62 = vld [vmem:[#allocation2 + $0x129] sm:$0xff]  ;;  %v589_v34 = vpack.c.bf16 %v562_v32, %v561_v31  ;;  %v408_v36 = vld [vmem:[#allocation2 + $0x61] sm:$0xff] }
  0xf7   : > { %v448_v1 = vpack.c.bf16 %v425_v62, %v424_v61  ;;  %v569_v2 = vld [vmem:[#allocation2 + $0x122] sm:$0xff]  ;;  %v570_v3 = vld [vmem:[#allocation2 + $0x12a] sm:$0xff]  ;;  %v560_v61 = vld [vmem:[#allocation2 + $0xb2] sm:$0xff] }
  0xf8   : > { %476 = vrot.lane.b32.xlu1 %v438_v37, %s2426_s18  ;;  %394 = vst.msk [vmem:[#allocation3 + $0x60] sm:$0xff] %vm249_vm0, %v376_v41  ;;  %v593_v6 = vpack.c.bf16 %v570_v3, %v569_v2  ;;  %v440_v37 = vpack.c.bf16 %v409_v35, %v408_v36 }
  0xf9   : > { %v243_v42 = vpop.trf.xlu0  ;;  %v354_v46 = vld [vmem:[#allocation2 + $0x138] sm:$0xff] }
  0xfa   : > { %322 = vst.msk [vmem:[#allocation2 + $0x151] sm:$0xff] %vm249_vm0, %v243_v42  ;;  %v426_v8 = vld [vmem:[#allocation2 + $0x139] sm:$0xff]  ;;  %v411_v42 = vld [vmem:[#allocation2 + $0x81] sm:$0xff] }
  0xfc   : > { %494 = vrot.lane.b32.xlu1 %v447_v43, %s2426_s18  ;;  %v410_v43 = vld [vmem:[#allocation2 + $0x79] sm:$0xff] }
  0xfd   : > { %v244_v47 = vpop.trf.xlu0  ;;  %v355_v49 = vld [vmem:[#allocation2 + $0x140] sm:$0xff]  ;;  %v441_v44 = vpack.c.bf16 %v411_v42, %v410_v43  ;;  %v2415_v43 = vld [vmem:[%s3013_s1 + $0x14] ss:$0 sps:$4 sm:$0xff]  }
  0xfe   : > { %323 = vst.msk [vmem:[#allocation2 + $0x159] sm:$0xff] %vm249_vm0, %v244_v47  ;;  %v377_v52 = vpack.c.bf16 %v355_v49, %v354_v46  ;;  %v427_v9 = vld [vmem:[#allocation2 + $0x141] sm:$0xff]  ;;  %v554_v46 = vld [vmem:[#allocation2 + $0x6a] sm:$0xff] }
  0xff   : > { %v449_v11 = vpack.c.bf16 %v427_v9, %v426_v8  ;;  %v571_v12 = vld [vmem:[#allocation2 + $0x13a] sm:$0xff]  ;;  %v572_v13 = vld [vmem:[#allocation2 + $0x142] sm:$0xff]  ;;  %v585_v47 = vpack.c.bf16 %v554_v46, %v553_v45 }
 0x100   : > { %639 = vrot.lane.b32.xlu1 %v592_v48, %s2427_s19  ;;  %395 = vst.msk [vmem:[#allocation3 + $0x68] sm:$0xff] %vm249_vm0, %v377_v52  ;;  %v594_v15 = vpack.c.bf16 %v572_v13, %v571_v12  ;;  %v555_v48 = vld [vmem:[#allocation2 + $0x7a] sm:$0xff]  ;;  %v556_v49 = vld [vmem:[#allocation2 + $0x82] sm:$0xff]  ;;  %v412_v52 = vld [vmem:[#allocation2 + $0x91] sm:$0xff] }
 0x101   : > { %v245_v53 = vpop.trf.xlu0  ;;  %v356_v57 = vld [vmem:[#allocation2 + $0x150] sm:$0xff]  ;;  %v586_v50 = vpack.c.bf16 %v556_v49, %v555_v48 }
 0x102   : > { %324 = vst.msk [vmem:[#allocation2 + $0x169] sm:$0xff] %vm249_vm0, %v245_v53  ;;  %v428_v17 = vld [vmem:[#allocation2 + $0x151] sm:$0xff]  ;;  %v442_v53 = vpack.c.bf16 %v413_v51, %v412_v52 }
 0x104   : > { %621 = vrot.lane.b32.xlu1 %v583_v54, %s2427_s19  ;;  %v415_v54 = vld [vmem:[#allocation2 + $0xb1] sm:$0xff] }
 0x105   : > { %v246_v58 = vpop.trf.xlu0  ;;  %v357_v60 = vld [vmem:[#allocation2 + $0x158] sm:$0xff]  ;;  %v443_v56 = vpack.c.bf16 %v415_v54, %v414_v55 }
 0x106   : > { %325 = vst.msk [vmem:[#allocation2 + $0x171] sm:$0xff] %vm249_vm0, %v246_v58  ;;  %v378_v63 = vpack.c.bf16 %v357_v60, %v356_v57  ;;  %v429_v18 = vld [vmem:[#allocation2 + $0x159] sm:$0xff]  ;;  %v559_v60 = vld [vmem:[#allocation2 + $0xaa] sm:$0xff] }
 0x107   : > { %v450_v20 = vpack.c.bf16 %v429_v18, %v428_v17  ;;  %v573_v21 = vld [vmem:[#allocation2 + $0x152] sm:$0xff]  ;;  %v574_v22 = vld [vmem:[#allocation2 + $0x15a] sm:$0xff] }
 0x108   : > { %623 = vrot.lane.b32.xlu1 %v584_v59, %s2427_s19  ;;  %396 = vst.msk [vmem:[#allocation3 + $0x70] sm:$0xff] %vm249_vm0, %v378_v63  ;;  %v595_v23 = vpack.c.bf16 %v574_v22, %v573_v21  ;;  %v557_v57 = vld [vmem:[#allocation2 + $0x92] sm:$0xff]  ;;  %v558_v58 = vld [vmem:[#allocation2 + $0x9a] sm:$0xff] }
 0x109   : > { %v247_v0 = vpop.trf.xlu0  ;;  %v358_v4 = vld [vmem:[#allocation2 + $0x168] sm:$0xff]  ;;  %v587_v59 = vpack.c.bf16 %v558_v58, %v557_v57 }
 0x10a   : > { %326 = vst.msk [vmem:[#allocation2 + $0x181] sm:$0xff] %vm249_vm0, %v247_v0  ;;  %v430_v24 = vld [vmem:[#allocation2 + $0x169] sm:$0xff]  ;;  %v588_v0 = vpack.c.bf16 %v560_v61, %v559_v60 }
 0x10c   : > { %496 = vrot.lane.b32.xlu1 %v448_v1, %s2426_s18 }
 0x10d   : > { %v248_v5 = vpop.trf.xlu0  ;;  %v359_v7 = vld [vmem:[#allocation2 + $0x170] sm:$0xff] }
 0x10e   : > { %327 = vst.msk [vmem:[#allocation2 + $0x189] sm:$0xff] %vm249_vm0, %v248_v5  ;;  %v379_v10 = vpack.c.bf16 %v359_v7, %v358_v4  ;;  %v431_v25 = vld [vmem:[#allocation2 + $0x171] sm:$0xff]  ;;  %v435_v7 = vld [vmem:[#allocation2 + $0x1a1] sm:$0xff] }
 0x10f   : > { %v451_v26 = vpack.c.bf16 %v431_v25, %v430_v24  ;;  %v575_v38 = vld [vmem:[#allocation2 + $0x16a] sm:$0xff]  ;;  %v576_v39 = vld [vmem:[#allocation2 + $0x172] sm:$0xff] }
 0x110   : > { %641 = vrot.lane.b32.xlu1 %v593_v6, %s2427_s19  ;;  %397 = vst.msk [vmem:[#allocation3 + $0x78] sm:$0xff] %vm249_vm0, %v379_v10  ;;  %v596_v41 = vpack.c.bf16 %v576_v39, %v575_v38  ;;  %v434_v6 = vld [vmem:[#allocation2 + $0x199] sm:$0xff] }
 0x111   : > { %v360_v14 = vld [vmem:[#allocation2 + $0x180] sm:$0xff]  ;;  %v453_v9 = vpack.c.bf16 %v435_v7, %v434_v6  ;;  %v362_v25 = vld [vmem:[#allocation2 + $0x198] sm:$0xff] }
 0x112   : > { %v432_v62 = vld [vmem:[#allocation2 + $0x181] sm:$0xff] }
 0x113   : > { %v579_v10 = vld [vmem:[#allocation2 + $0x19a] sm:$0xff] }
 0x114   : > { %498 = vrot.lane.b32.xlu1 %v449_v11, %s2426_s18  ;;  %v580_v11 = vld [vmem:[#allocation2 + $0x1a2] sm:$0xff] }
 0x115   : > { %v361_v16 = vld [vmem:[#allocation2 + $0x188] sm:$0xff]  ;;  %v598_v13 = vpack.c.bf16 %v580_v11, %v579_v10 }
 0x116   : > { %v380_v19 = vpack.c.bf16 %v361_v16, %v360_v14  ;;  %v433_v63 = vld [vmem:[#allocation2 + $0x189] sm:$0xff]  ;;  %v2416_v16 = vld [vmem:[%s3013_s1 + $0x20] ss:$0 sps:$4 sm:$0xff]  }
 0x117   : > { %v452_v1 = vpack.c.bf16 %v433_v63, %v432_v62  ;;  %v577_v2 = vld [vmem:[#allocation2 + $0x182] sm:$0xff]  ;;  %v578_v3 = vld [vmem:[#allocation2 + $0x18a] sm:$0xff] }
 0x118   : > { %643 = vrot.lane.b32.xlu1 %v594_v15, %s2427_s19  ;;  %398 = vst.msk [vmem:[#allocation3 + $0x80] sm:$0xff] %vm249_vm0, %v380_v19  ;;  %v597_v5 = vpack.c.bf16 %v578_v3, %v577_v2  ;;  %v1413_v19 = vsel %vm767_vm6, %v2416_v16, 0 }
 0x11c   : > { %500 = vrot.lane.b32.xlu1 %v450_v20, %s2426_s18 }
 0x120   : > { %645 = vrot.lane.b32.xlu1 %v595_v23, %s2427_s19 }
 0x124   : > { %502 = vrot.lane.b32.xlu1 %v451_v26, %s2426_s18  ;;  %v363_v26 = vld [vmem:[#allocation2 + $0x1a0] sm:$0xff] }
 0x125   : > { %v479_v28 = vpop.permute.xlu0 %478  ;;  %v381_v27 = vpack.c.bf16 %v363_v26, %v362_v25 }
 0x126   : > { %530 = vst.msk [vmem:[#allocation3 + $0x18] sm:$0xff] %vm526_vm3, %v479_v28 }
 0x127   : > { %399 = vst.msk [vmem:[#allocation3 + $0x88] sm:$0xff] %vm249_vm0, %v381_v27 }
 0x128   : > { %488 = vrot.lane.b32.xlu1 %v444_v30, %s2426_s18 }
 0x12c   : > { %633 = vrot.lane.b32.xlu1 %v589_v34, %s2427_s19 }
 0x130   : > { %480 = vrot.lane.b32.xlu1 %v440_v37, %s2426_s18 }
 0x134   : > { %647 = vrot.lane.b32.xlu1 %v596_v41, %s2427_s19 }
 0x138   : > { %482 = vrot.lane.b32.xlu1 %v441_v44, %s2426_s18 }
 0x13c   : > { %625 = vrot.lane.b32.xlu1 %v585_v47, %s2427_s19  ;;  %v1075_v47 = vsel %vm767_vm6, %v2415_v43, 0 }
 0x140   : > { %627 = vrot.lane.b32.xlu1 %v586_v50, %s2427_s19 }
 0x144   : > { %484 = vrot.lane.b32.xlu1 %v442_v53, %s2426_s18 }
 0x148   : > { %486 = vrot.lane.b32.xlu1 %v443_v56, %s2426_s18 }
 0x14c   : > { %629 = vrot.lane.b32.xlu1 %v587_v59, %s2427_s19 }
 0x150   : > { %631 = vrot.lane.b32.xlu1 %v588_v0, %s2427_s19 }
 0x152   : > { %v491_v4 = vpop.permute.xlu1 %490 }
 0x153   : > { %536 = vst.msk [vmem:[#allocation3 + $0x48] sm:$0xff] %vm526_vm3, %v491_v4 }
 0x154   : > { %504 = vrot.lane.b32.xlu1 %v452_v1, %s2426_s18 }
 0x156   : > { %v636_v8 = vpop.permute.xlu1 %635 }
 0x157   : > { %681 = vst.msk [vmem:[#allocation3 + $0x48] sm:$0xff] %vm671_vm4, %v636_v8 }
 0x158   : > { %649 = vrot.lane.b32.xlu1 %v597_v5, %s2427_s19 }
 0x15a   : > { %v475_v12 = vpop.permute.xlu1 %474 }
 0x15b   : > { %528 = vst.msk [vmem:[#allocation3 + $0x8] sm:$0xff] %vm526_vm3, %v475_v12 }
 0x15c   : > { %506 = vrot.lane.b32.xlu1 %v453_v9, %s2426_s18 }
 0x15e   : > { %v620_v14 = vpop.permute.xlu1 %619  ;;  %v2666_v44 = vld [vmem:[#allocation3 + $0x48] sm:$0xff] }
 0x15f   : > { %673 = vst.msk [vmem:[#allocation3 + $0x8] sm:$0xff] %vm671_vm4, %v620_v14 }
 0x160   : > { %651 = vrot.lane.b32.xlu1 %v598_v13, %s2427_s19 }
 0x162   : > { %v493_v15 = vpop.permute.xlu1 %492 }
 0x163   : > { %537 = vst.msk [vmem:[#allocation3 + $0x50] sm:$0xff] %vm526_vm3, %v493_v15 }
 0x166   : > { %v638_v17 = vpop.permute.xlu1 %637  ;;  %v2626_v18 = vld [vmem:[#allocation3 + $0x8] sm:$0xff] }
 0x167   : > { %682 = vst.msk [vmem:[#allocation3 + $0x50] sm:$0xff] %vm671_vm4, %v638_v17  ;;  %2289 = vmatmul.mubr.msk.bf16.vlgmr.msra.gmra.mrb[0].mxu0 %vm718_vm5, %v2626_v18 }
 0x168   : > { %2357 = vmatpush3.bf16.msra.mxu0 %v2603_v40 }
 0x169   : > { %2399 = vmatprep.subr.msk.bf16.mxu0 %vm767_vm6, %v2416_v16 }
 0x16a   : > { %v477_v20 = vpop.permute.xlu1 %476 }
 0x16b   : > { %529 = vst.msk [vmem:[#allocation3 + $0x10] sm:$0xff] %vm526_vm3, %v477_v20 }
 0x16c   : > { %2359 = vmatpush3.bf16.msra.mxu0 %v1413_v19 }
 0x16e   : > { %v495_v21 = vpop.permute.xlu1 %494  ;;  %v2670_v45 = vld [vmem:[#allocation3 + $0x50] sm:$0xff] }
 0x16f   : > { %538 = vst.msk [vmem:[#allocation3 + $0x58] sm:$0xff] %vm526_vm3, %v495_v21 }
 0x172   : > { %v640_v22 = vpop.permute.xlu1 %639 }
 0x173   : > { %683 = vst.msk [vmem:[#allocation3 + $0x58] sm:$0xff] %vm671_vm4, %v640_v22 }
 0x176   : > { %v622_v23 = vpop.permute.xlu1 %621 }
 0x177   : > { %674 = vst.msk [vmem:[#allocation3 + $0x10] sm:$0xff] %vm671_vm4, %v622_v23 }
 0x17a   : > { %v624_v24 = vpop.permute.xlu1 %623  ;;  %v701_v49 = vld [vmem:[#allocation3 + $0x58] sm:$0xff] }
 0x17b   : > { %675 = vst.msk [vmem:[#allocation3 + $0x18] sm:$0xff] %vm671_vm4, %v624_v24 }
 0x17e   : > { %v497_v28 = vpop.permute.xlu1 %496  ;;  %v2639_v29 = vld [vmem:[#allocation3 + $0x10] sm:$0xff] }
 0x17f   : > { %539 = vst.msk [vmem:[#allocation3 + $0x60] sm:$0xff] %vm526_vm3, %v497_v28  ;;  %2292 = vmatprep.mubr.msk.bf16.mxu0 %vm718_vm5, %v2639_v29 }
 0x182   : > { %v642_v30 = vpop.permute.xlu1 %641  ;;  %v2645_v31 = vld [vmem:[#allocation3 + $0x18] sm:$0xff] }
 0x183   : > { %684 = vst.msk [vmem:[#allocation3 + $0x60] sm:$0xff] %vm671_vm4, %v642_v30  ;;  %2293 = vmatmul.mubr.msk.bf16.gmra.mrb[4].mxu0 %vm718_vm5, %v2645_v31 }
 0x186   : > { %v499_v32 = vpop.permute.xlu1 %498 }
 0x187   : > { %540 = vst.msk [vmem:[#allocation3 + $0x68] sm:$0xff] %vm526_vm3, %v499_v32 }
 0x18a   : > { %v644_v34 = vpop.permute.xlu1 %643  ;;  %v702_v50 = vld [vmem:[#allocation3 + $0x60] sm:$0xff] }
 0x18b   : > { %685 = vst.msk [vmem:[#allocation3 + $0x68] sm:$0xff] %vm671_vm4, %v644_v34 }
 0x18e   : > { %v501_v35 = vpop.permute.xlu1 %500 }
 0x18f   : > { %541 = vst.msk [vmem:[#allocation3 + $0x70] sm:$0xff] %vm526_vm3, %v501_v35 }
 0x192   : > { %v646_v36 = vpop.permute.xlu1 %645  ;;  %v703_v53 = vld [vmem:[#allocation3 + $0x68] sm:$0xff] }
 0x193   : > { %686 = vst.msk [vmem:[#allocation3 + $0x70] sm:$0xff] %vm671_vm4, %v646_v36 }
 0x196   : > { %v503_v37 = vpop.permute.xlu1 %502 }
 0x197   : > { %542 = vst.msk [vmem:[#allocation3 + $0x78] sm:$0xff] %vm526_vm3, %v503_v37 }
 0x19a   : > { %v489_v38 = vpop.permute.xlu1 %488  ;;  %v704_v54 = vld [vmem:[#allocation3 + $0x70] sm:$0xff] }
 0x19b   : > { %535 = vst.msk [vmem:[#allocation3 + $0x40] sm:$0xff] %vm526_vm3, %v489_v38 }
 0x19e   : > { %v634_v39 = vpop.permute.xlu1 %633 }
 0x19f   : > { %680 = vst.msk [vmem:[#allocation3 + $0x40] sm:$0xff] %vm671_vm4, %v634_v39 }
 0x1a2   : > { %v481_v40 = vpop.permute.xlu1 %480 }
 0x1a3   : > { %531 = vst.msk [vmem:[#allocation3 + $0x20] sm:$0xff] %vm526_vm3, %v481_v40 }
 0x1a6   : > { %v648_v41 = vpop.permute.xlu1 %647  ;;  %v2658_v42 = vld [vmem:[#allocation3 + $0x40] sm:$0xff] }
 0x1a7   : > { %687 = vst.msk [vmem:[#allocation3 + $0x78] sm:$0xff] %vm671_vm4, %v648_v41  ;;  %2304 = vmatprep.mubr.msk.bf16.mxu1 %vm718_vm5, %v2658_v42 }
 0x1a8   : > { %2305 = vmatmul.mubr.msk.bf16.vlgmr.msra.gmra.mrb[0].mxu1 %vm718_vm5, %v2666_v44 }
 0x1a9   : > { %2308 = vmatprep.mubr.msk.bf16.mxu1 %vm718_vm5, %v2670_v45  ;;  %2321 = vmatpush3.bf16.msra.mxu1 %v2595_v33 }
 0x1aa   : > { %v483_v46 = vpop.permute.xlu1 %482  ;;  %2398 = vmatprep.subr.msk.bf16.mxu1 %vm767_vm6, %v2415_v43 }
 0x1ab   : > { %532 = vst.msk [vmem:[#allocation3 + $0x28] sm:$0xff] %vm526_vm3, %v483_v46 }
 0x1ad   : > { %2323 = vmatpush3.bf16.msra.mxu1 %v1075_v47 }
 0x1ae   : > { %v626_v48 = vpop.permute.xlu1 %625  ;;  %v705_v58 = vld [vmem:[#allocation3 + $0x78] sm:$0xff] }
 0x1af   : > { %676 = vst.msk [vmem:[#allocation3 + $0x20] sm:$0xff] %vm671_vm4, %v626_v48 }
 0x1b0   : > { %2309 = vmatmul.mubr.msk.bf16.gmra.mrb[4].mxu1 %vm718_vm5, %v701_v49 }
 0x1b1   : > { %2312 = vmatprep.mubr.msk.bf16.mxu1 %vm718_vm5, %v702_v50 }
 0x1b2   : > { %v628_v51 = vpop.permute.xlu1 %627 }
 0x1b3   : > { %677 = vst.msk [vmem:[#allocation3 + $0x28] sm:$0xff] %vm671_vm4, %v628_v51 }
 0x1b6   : > { %v485_v33 = vpop.permute.xlu1 %484  ;;  %v694_v52 = vld [vmem:[#allocation3 + $0x20] sm:$0xff] }
 0x1b7   : > { %533 = vst.msk [vmem:[#allocation3 + $0x30] sm:$0xff] %vm526_vm3, %v485_v33  ;;  %2296 = vmatprep.mubr.msk.bf16.mxu0 %vm718_vm5, %v694_v52 }
 0x1b8   : > { %2313 = vmatmul.mubr.msk.bf16.gmra.mrb[8].mxu1 %vm718_vm5, %v703_v53 }
 0x1b9   : > { %2316 = vmatprep.mubr.msk.bf16.mxu1 %vm718_vm5, %v704_v54 }
 0x1ba   : > { %v487_v55 = vpop.permute.xlu1 %486  ;;  %v695_v56 = vld [vmem:[#allocation3 + $0x28] sm:$0xff] }
 0x1bb   : > { %534 = vst.msk [vmem:[#allocation3 + $0x38] sm:$0xff] %vm526_vm3, %v487_v55  ;;  %2297 = vmatmul.mubr.msk.bf16.gmra.mrb[8].mxu0 %vm718_vm5, %v695_v56 }
 0x1be   : > { %v630_v57 = vpop.permute.xlu1 %629 }
 0x1bf   : > { %678 = vst.msk [vmem:[#allocation3 + $0x30] sm:$0xff] %vm671_vm4, %v630_v57 }
 0x1c0   : > { %2317 = vmatmul.mubr.msk.bf16.gmra.mrb[12].mxu1 %vm718_vm5, %v705_v58 }
 0x1c1   : > { %2324 = vmatprep.mubr.msk.bf16.mxu1 %vm718_vm5, %v2626_v18 }
 0x1c2   : > { %v632_v59 = vpop.permute.xlu1 %631 }
 0x1c3   : > { %679 = vst.msk [vmem:[#allocation3 + $0x38] sm:$0xff] %vm671_vm4, %v632_v59 }
 0x1c6   : > { %v696_v60 = vld [vmem:[#allocation3 + $0x30] sm:$0xff]  ;;  %v505_v61 = vpop.permute.xlu1 %504 }
 0x1c7   : > { %2300 = vmatprep.mubr.msk.bf16.mxu0 %vm718_vm5, %v696_v60  ;;  %543 = vst.msk [vmem:[#allocation3 + $0x80] sm:$0xff] %vm526_vm3, %v505_v61 }
 0x1c8   : > { %2325 = vmatmul.mubr.msk.bf16.vlgmr.msra.gmra.mrb[16].mxu1 %vm718_vm5, %v2639_v29 }
 0x1c9   : > { %2328 = vmatprep.mubr.msk.bf16.mxu1 %vm718_vm5, %v2645_v31 }
 0x1ca   : > { %v697_v62 = vld [vmem:[#allocation3 + $0x38] sm:$0xff]  ;;  %v650_v63 = vpop.permute.xlu1 %649 }
 0x1cb   : > { %2301 = vmatmul.mubr.msk.bf16.gmra.mrb[12].mxu0 %vm718_vm5, %v697_v62  ;;  %688 = vst.msk [vmem:[#allocation3 + $0x80] sm:$0xff] %vm671_vm4, %v650_v63 }
 0x1cc   : > { %2360 = vmatprep.mubr.msk.bf16.mxu0 %vm718_vm5, %v2639_v29 }
 0x1ce   : > { %v507_v0 = vpop.permute.xlu1 %506 }
 0x1cf   : > { %544 = vst.msk [vmem:[#allocation3 + $0x88] sm:$0xff] %vm526_vm3, %v507_v0 }
 0x1d0   : > { %2329 = vmatmul.mubr.msk.bf16.gmra.mrb[20].mxu1 %vm718_vm5, %v694_v52 }
 0x1d1   : > { %2332 = vmatprep.mubr.msk.bf16.mxu1 %vm718_vm5, %v695_v56 }
 0x1d2   : > { %v652_v1 = vpop.permute.xlu1 %651  ;;  %v1012_v2 = vld [vmem:[#allocation3 + $0x80] sm:$0xff] }
 0x1d3   : > { %2361 = vmatmul.mubr.msk.bf16.vlgmr.msra.gmra.mrb[16].mxu0 %vm718_vm5, %v2645_v31  ;;  %689 = vst.msk [vmem:[#allocation3 + $0x88] sm:$0xff] %vm671_vm4, %v652_v1 }
 0x1d4   : > { %2364 = vmatprep.mubr.msk.bf16.mxu0 %vm718_vm5, %v694_v52 }
 0x1d8   : > { %2333 = vmatmul.mubr.msk.bf16.gmra.mrb[24].mxu1 %vm718_vm5, %v696_v60 }
 0x1d9   : > { %2336 = vmatprep.mubr.msk.bf16.mxu1 %vm718_vm5, %v697_v62 }
 0x1da   : > { %v1350_v3 = vld [vmem:[#allocation3 + $0x88] sm:$0xff] }
 0x1db   : > { %2365 = vmatmul.mubr.msk.bf16.gmra.mrb[20].mxu0 %vm718_vm5, %v695_v56 }
 0x1dc   : > { %2368 = vmatprep.mubr.msk.bf16.mxu0 %vm718_vm5, %v696_v60 }
 0x1e0   : > { %2337 = vmatmul.mubr.msk.bf16.gmra.mrb[28].mxu1 %vm718_vm5, %v2658_v42 }
 0x1e1   : > { %2340 = vmatprep.mubr.msk.bf16.mxu1 %vm718_vm5, %v2666_v44 }
 0x1e3   : > { %2369 = vmatmul.mubr.msk.bf16.gmra.mrb[24].mxu0 %vm718_vm5, %v697_v62 }
 0x1e4   : > { %2372 = vmatprep.mubr.msk.bf16.mxu0 %vm718_vm5, %v2658_v42 }
 0x1e8   : > { %2341 = vmatmul.mubr.msk.bf16.gmra.mrb[32].mxu1 %vm718_vm5, %v2670_v45 }
 0x1e9   : > { %2344 = vmatprep.mubr.msk.bf16.mxu1 %vm718_vm5, %v701_v49 }
 0x1eb   : > { %2373 = vmatmul.mubr.msk.bf16.gmra.mrb[28].mxu0 %vm718_vm5, %v2666_v44 }
 0x1ec   : > { %2376 = vmatprep.mubr.msk.bf16.mxu0 %vm718_vm5, %v2670_v45 }
 0x1f0   : > { %2345 = vmatmul.mubr.msk.bf16.gmra.mrb[36].mxu1 %vm718_vm5, %v702_v50 }
 0x1f1   : > { %2348 = vmatprep.mubr.msk.bf16.mxu1 %vm718_vm5, %v703_v53 }
 0x1f3   : > { %2377 = vmatmul.mubr.msk.bf16.gmra.mrb[32].mxu0 %vm718_vm5, %v701_v49 }
 0x1f4   : > { %2380 = vmatprep.mubr.msk.bf16.mxu0 %vm718_vm5, %v702_v50 }
 0x1f8   : > { %2349 = vmatmul.mubr.msk.bf16.gmra.mrb[40].mxu1 %vm718_vm5, %v704_v54 }
 0x1f9   : > { %2352 = vmatprep.mubr.msk.bf16.mxu1 %vm718_vm5, %v705_v58 }
 0x1fb   : > { %2381 = vmatmul.mubr.msk.bf16.gmra.mrb[36].mxu0 %vm718_vm5, %v703_v53 }
 0x1fc   : > { %2384 = vmatprep.mubr.msk.bf16.mxu0 %vm718_vm5, %v704_v54 }
 0x200   : > { %2353 = vmatmul.mubr.msk.bf16.gmra.mrb[44].mxu1 %vm718_vm5, %v1012_v2 }
 0x203   : > { %2385 = vmatmul.mubr.msk.bf16.gmra.mrb[40].mxu0 %vm718_vm5, %v705_v58 }
 0x204   : > { %2388 = vmatprep.mubr.msk.bf16.mxu0 %vm718_vm5, %v1012_v2 }
 0x20b   : > { %2389 = vmatmul.mubr.msk.bf16.gmra.mrb[44].mxu0 %vm718_vm5, %v1350_v3 }
 0x23a   : > { %v2290_v4 = vpop.f32.mrb[0].mxu0 }
 0x23b   : > { %934 = vst.msk [vmem:[#allocation4 + $0x10] sm:$0xff] %vm249_vm0, %v2290_v4  ;;  %v805_v5 = vpop.f32.mrb[1].mxu0 }
 0x23c   : > { %932 = vst.msk [vmem:[#allocation4] sm:$0xff] %vm249_vm0, %v805_v5  ;;  %v2291_v6 = vpop.f32.mrb[2].mxu0 }
 0x23d   : > { %935 = vst.msk [vmem:[#allocation4 + $0x18] sm:$0xff] %vm249_vm0, %v2291_v6  ;;  %v808_v7 = vpop.f32.mrb[3].mxu0 }
 0x23e   : > { %933 = vst.msk [vmem:[#allocation4 + $0x8] sm:$0xff] %vm249_vm0, %v808_v7 }
 0x242   : > { %v966_v32 = vld [vmem:[#allocation4 + $0x10] sm:$0xff] }
 0x243   : > { %v964_v36 = vld [vmem:[#allocation4] sm:$0xff] }
 0x244   : > { %v967_v39 = vld [vmem:[#allocation4 + $0x18] sm:$0xff] }
 0x245   : > { %v965_v43 = vld [vmem:[#allocation4 + $0x8] sm:$0xff] }
 0x256   : > { %v2294_v8 = vpop.f32.mrb[4].mxu0 }
 0x257   : > { %938 = vst.msk [vmem:[#allocation4 + $0x30] sm:$0xff] %vm249_vm0, %v2294_v8  ;;  %v821_v9 = vpop.f32.mrb[5].mxu0 }
 0x258   : > { %936 = vst.msk [vmem:[#allocation4 + $0x20] sm:$0xff] %vm249_vm0, %v821_v9  ;;  %v2295_v10 = vpop.f32.mrb[6].mxu0 }
 0x259   : > { %939 = vst.msk [vmem:[#allocation4 + $0x38] sm:$0xff] %vm249_vm0, %v2295_v10  ;;  %v824_v11 = vpop.f32.mrb[7].mxu0 }
 0x25a   : > { %937 = vst.msk [vmem:[#allocation4 + $0x28] sm:$0xff] %vm249_vm0, %v824_v11 }
 0x25e   : > { %v970_v49 = vld [vmem:[#allocation4 + $0x30] sm:$0xff] }
 0x25f   : > { %v968_v33 = vld [vmem:[#allocation4 + $0x20] sm:$0xff] }
 0x260   : > { %v971_v54 = vld [vmem:[#allocation4 + $0x38] sm:$0xff] }
 0x261   : > { %v969_v58 = vld [vmem:[#allocation4 + $0x28] sm:$0xff] }
 0x27b   : > { %v2306_v12 = vpop.f32.mrb[0].mxu1 }
 0x27c   : > { %950 = vst.msk [vmem:[#allocation4 + $0x90] sm:$0xff] %vm249_vm0, %v2306_v12  ;;  %v869_v13 = vpop.f32.mrb[1].mxu1 }
 0x27d   : > { %948 = vst.msk [vmem:[#allocation4 + $0x80] sm:$0xff] %vm249_vm0, %v869_v13  ;;  %v2307_v14 = vpop.f32.mrb[2].mxu1 }
 0x27e   : > { %951 = vst.msk [vmem:[#allocation4 + $0x98] sm:$0xff] %vm249_vm0, %v2307_v14  ;;  %v872_v15 = vpop.f32.mrb[3].mxu1 }
 0x27f   : > { %949 = vst.msk [vmem:[#allocation4 + $0x88] sm:$0xff] %vm249_vm0, %v872_v15 }
 0x283   : > { %v2310_v16 = vpop.f32.mrb[4].mxu1 }
 0x284   : > { %954 = vst.msk [vmem:[#allocation4 + $0xb0] sm:$0xff] %vm249_vm0, %v2310_v16  ;;  %v885_v17 = vpop.f32.mrb[5].mxu1 }
 0x285   : > { %952 = vst.msk [vmem:[#allocation4 + $0xa0] sm:$0xff] %vm249_vm0, %v885_v17  ;;  %v2311_v18 = vpop.f32.mrb[6].mxu1 }
 0x286   : > { %955 = vst.msk [vmem:[#allocation4 + $0xb8] sm:$0xff] %vm249_vm0, %v2311_v18  ;;  %v888_v19 = vpop.f32.mrb[7].mxu1 }
 0x287   : > { %953 = vst.msk [vmem:[#allocation4 + $0xa8] sm:$0xff] %vm249_vm0, %v888_v19 }
 0x28b   : > { %v2314_v20 = vpop.f32.mrb[8].mxu1 }
 0x28c   : > { %958 = vst.msk [vmem:[#allocation4 + $0xd0] sm:$0xff] %vm249_vm0, %v2314_v20  ;;  %v901_v21 = vpop.f32.mrb[9].mxu1 }
 0x28d   : > { %956 = vst.msk [vmem:[#allocation4 + $0xc0] sm:$0xff] %vm249_vm0, %v901_v21  ;;  %v2315_v22 = vpop.f32.mrb[10].mxu1 }
 0x28e   : > { %959 = vst.msk [vmem:[#allocation4 + $0xd8] sm:$0xff] %vm249_vm0, %v2315_v22  ;;  %v2298_v23 = vpop.f32.mrb[8].mxu0  ;;  %v904_v24 = vpop.f32.mrb[11].mxu1 }
 0x28f   : > { %942 = vst.msk [vmem:[#allocation4 + $0x50] sm:$0xff] %vm249_vm0, %v2298_v23  ;;  %957 = vst.msk [vmem:[#allocation4 + $0xc8] sm:$0xff] %vm249_vm0, %v904_v24  ;;  %v837_v25 = vpop.f32.mrb[9].mxu0 }
 0x290   : > { %940 = vst.msk [vmem:[#allocation4 + $0x40] sm:$0xff] %vm249_vm0, %v837_v25  ;;  %v2299_v26 = vpop.f32.mrb[10].mxu0 }
 0x291   : > { %943 = vst.msk [vmem:[#allocation4 + $0x58] sm:$0xff] %vm249_vm0, %v2299_v26  ;;  %v840_v27 = vpop.f32.mrb[11].mxu0 }
 0x292   : > { %941 = vst.msk [vmem:[#allocation4 + $0x48] sm:$0xff] %vm249_vm0, %v840_v27 }
 0x293   : > { %v2318_v28 = vpop.f32.mrb[12].mxu1 }
 0x294   : > { %962 = vst.msk [vmem:[#allocation4 + $0xf0] sm:$0xff] %vm249_vm0, %v2318_v28  ;;  %v917_v29 = vpop.f32.mrb[13].mxu1 }
 0x295   : > { %960 = vst.msk [vmem:[#allocation4 + $0xe0] sm:$0xff] %vm249_vm0, %v917_v29  ;;  %v2319_v30 = vpop.f32.mrb[14].mxu1 }
 0x296   : > { %963 = vst.msk [vmem:[#allocation4 + $0xf8] sm:$0xff] %vm249_vm0, %v2319_v30  ;;  %v920_v31 = vpop.f32.mrb[15].mxu1  ;;  %v974_v8 = vld [vmem:[#allocation4 + $0x50] sm:$0xff] }
 0x297   : > { %961 = vst.msk [vmem:[#allocation4 + $0xe8] sm:$0xff] %vm249_vm0, %v920_v31  ;;  %v972_v11 = vld [vmem:[#allocation4 + $0x40] sm:$0xff] }
 0x298   : > { %v975_v14 = vld [vmem:[#allocation4 + $0x58] sm:$0xff] }
 0x299   : > { %v973_v18 = vld [vmem:[#allocation4 + $0x48] sm:$0xff] }
 0x29b   : > { %v2326_v34 = vpop.f32.mrb[16].mxu1 }
 0x29c   : > { %v1240_v35 = vadd.f32 %v2326_v34, %v966_v32  ;;  %v1111_v37 = vpop.f32.mrb[17].mxu1 }
 0x29d   : > { %v1238_v38 = vadd.f32 %v1111_v37, %v964_v36  ;;  %v2327_v40 = vpop.f32.mrb[18].mxu1 }
 0x29e   : > { %1272 = vst.msk [vmem:[#allocation4 + $0x10] sm:$0xff] %vm249_vm0, %v1240_v35  ;;  %v1241_v41 = vadd.f32 %v2327_v40, %v967_v39  ;;  %v2302_v42 = vpop.f32.mrb[12].mxu0  ;;  %v1114_v44 = vpop.f32.mrb[19].mxu1 }
 0x29f   : > { %1270 = vst.msk [vmem:[#allocation4] sm:$0xff] %vm249_vm0, %v1238_v38  ;;  %946 = vst.msk [vmem:[#allocation4 + $0x70] sm:$0xff] %vm249_vm0, %v2302_v42  ;;  %v1239_v45 = vadd.f32 %v1114_v44, %v965_v43  ;;  %v853_v46 = vpop.f32.mrb[13].mxu0 }
 0x2a0   : > { %1273 = vst.msk [vmem:[#allocation4 + $0x18] sm:$0xff] %vm249_vm0, %v1241_v41  ;;  %944 = vst.msk [vmem:[#allocation4 + $0x60] sm:$0xff] %vm249_vm0, %v853_v46  ;;  %v2303_v47 = vpop.f32.mrb[14].mxu0 }
 0x2a1   : > { %1271 = vst.msk [vmem:[#allocation4 + $0x8] sm:$0xff] %vm249_vm0, %v1239_v45  ;;  %947 = vst.msk [vmem:[#allocation4 + $0x78] sm:$0xff] %vm249_vm0, %v2303_v47  ;;  %v856_v48 = vpop.f32.mrb[15].mxu0 }
 0x2a2   : > { %945 = vst.msk [vmem:[#allocation4 + $0x68] sm:$0xff] %vm249_vm0, %v856_v48 }
 0x2a3   : > { %v2330_v50 = vpop.f32.mrb[20].mxu1 }
 0x2a4   : > { %v1244_v51 = vadd.f32 %v2330_v50, %v970_v49  ;;  %v1127_v52 = vpop.f32.mrb[21].mxu1 }
 0x2a5   : > { %v1242_v53 = vadd.f32 %v1127_v52, %v968_v33  ;;  %v2331_v55 = vpop.f32.mrb[22].mxu1  ;;  %v1304_v56 = vld [vmem:[#allocation4 + $0x10] sm:$0xff] }
 0x2a6   : > { %1276 = vst.msk [vmem:[#allocation4 + $0x30] sm:$0xff] %vm249_vm0, %v1244_v51  ;;  %v1245_v57 = vadd.f32 %v2331_v55, %v971_v54  ;;  %v1130_v59 = vpop.f32.mrb[23].mxu1  ;;  %v2362_v60 = vpop.f32.mrb[16].mxu0  ;;  %v1302_v61 = vld [vmem:[#allocation4] sm:$0xff]  ;;  %v978_v47 = vld [vmem:[#allocation4 + $0x70] sm:$0xff] }
 0x2a7   : > { %1274 = vst.msk [vmem:[#allocation4 + $0x20] sm:$0xff] %vm249_vm0, %v1242_v53  ;;  %v1243_v62 = vadd.f32 %v1130_v59, %v969_v58  ;;  %v1578_v63 = vadd.f32 %v2362_v60, %v1304_v56  ;;  %v1449_v0 = vpop.f32.mrb[17].mxu0  ;;  %v1305_v1 = vld [vmem:[#allocation4 + $0x18] sm:$0xff]  ;;  %v976_v48 = vld [vmem:[#allocation4 + $0x60] sm:$0xff] }
 0x2a8   : > { %1277 = vst.msk [vmem:[#allocation4 + $0x38] sm:$0xff] %vm249_vm0, %v1245_v57  ;;  %v1576_v2 = vadd.f32 %v1449_v0, %v1302_v61  ;;  %v2363_v3 = vpop.f32.mrb[18].mxu0  ;;  %v1303_v4 = vld [vmem:[#allocation4 + $0x8] sm:$0xff]  ;;  %v979_v53 = vld [vmem:[#allocation4 + $0x78] sm:$0xff] }
 0x2a9   : > { %1275 = vst.msk [vmem:[#allocation4 + $0x28] sm:$0xff] %vm249_vm0, %v1243_v62  ;;  %1610 = vst.msk [vmem:[#allocation4 + $0x10] sm:$0xff] %vm249_vm0, %v1578_v63  ;;  %v1579_v5 = vadd.f32 %v2363_v3, %v1305_v1  ;;  %v1452_v6 = vpop.f32.mrb[19].mxu0  ;;  %v977_v55 = vld [vmem:[#allocation4 + $0x68] sm:$0xff] }
 0x2aa   : > { %1608 = vst.msk [vmem:[#allocation4] sm:$0xff] %vm249_vm0, %v1576_v2  ;;  %v1577_v7 = vadd.f32 %v1452_v6, %v1303_v4 }
 0x2ab   : > { %1611 = vst.msk [vmem:[#allocation4 + $0x18] sm:$0xff] %vm249_vm0, %v1579_v5  ;;  %v2334_v9 = vpop.f32.mrb[24].mxu1 }
 0x2ac   : > { %1609 = vst.msk [vmem:[#allocation4 + $0x8] sm:$0xff] %vm249_vm0, %v1577_v7  ;;  %v1248_v10 = vadd.f32 %v2334_v9, %v974_v8  ;;  %v1143_v12 = vpop.f32.mrb[25].mxu1 }
 0x2ad   : > { %v1246_v13 = vadd.f32 %v1143_v12, %v972_v11  ;;  %v2335_v15 = vpop.f32.mrb[26].mxu1  ;;  %v1308_v16 = vld [vmem:[#allocation4 + $0x30] sm:$0xff] }
 0x2ae   : > { %1280 = vst.msk [vmem:[#allocation4 + $0x50] sm:$0xff] %vm249_vm0, %v1248_v10  ;;  %v1249_v17 = vadd.f32 %v2335_v15, %v975_v14  ;;  %v1146_v19 = vpop.f32.mrb[27].mxu1  ;;  %v2366_v20 = vpop.f32.mrb[20].mxu0  ;;  %v1306_v21 = vld [vmem:[#allocation4 + $0x20] sm:$0xff] }
 0x2af   : > { %1278 = vst.msk [vmem:[#allocation4 + $0x40] sm:$0xff] %vm249_vm0, %v1246_v13  ;;  %v1247_v22 = vadd.f32 %v1146_v19, %v973_v18  ;;  %v1582_v23 = vadd.f32 %v2366_v20, %v1308_v16  ;;  %v1465_v24 = vpop.f32.mrb[21].mxu0  ;;  %v1309_v25 = vld [vmem:[#allocation4 + $0x38] sm:$0xff] }
 0x2b0   : > { %v1642_v26 = vld [vmem:[#allocation4 + $0x10] sm:$0xff]  ;;  %1281 = vst.msk [vmem:[#allocation4 + $0x58] sm:$0xff] %vm249_vm0, %v1249_v17  ;;  %v1580_v27 = vadd.f32 %v1465_v24, %v1306_v21  ;;  %v2367_v28 = vpop.f32.mrb[22].mxu0  ;;  %v1307_v29 = vld [vmem:[#allocation4 + $0x28] sm:$0xff] }
 0x2b1   : > { %v2200_v30 = vpack.c.bf16 %v1642_v26, %v1642_v26  ;;  %v1640_v31 = vld [vmem:[#allocation4] sm:$0xff]  ;;  %1279 = vst.msk [vmem:[#allocation4 + $0x48] sm:$0xff] %vm249_vm0, %v1247_v22  ;;  %1614 = vst.msk [vmem:[#allocation4 + $0x30] sm:$0xff] %vm249_vm0, %v1582_v23  ;;  %v1583_v32 = vadd.f32 %v2367_v28, %v1309_v25  ;;  %v1468_v34 = vpop.f32.mrb[23].mxu0  ;;  %v1743_v39 = vmul.f32 %v1642_v26, %v1642_v26  ;;  %v1675_v57 = vsel %vm249_vm0, %v1642_v26, 0.0 }
 0x2b2   : > { %v1741_v35 = vmul.f32 %v1640_v31, %v1640_v31  ;;  %v2198_v36 = vpack.c.bf16 %v1640_v31, %v1640_v31  ;;  %v1643_v37 = vld [vmem:[#allocation4 + $0x18] sm:$0xff]  ;;  %1612 = vst.msk [vmem:[#allocation4 + $0x20] sm:$0xff] %vm249_vm0, %v1580_v27  ;;  %v1581_v38 = vadd.f32 %v1468_v34, %v1307_v29  ;;  %v1672_v43 = vsel %vm249_vm0, %v1640_v31, 0.0 }
 0x2b3   : > { %1976 = vst.msk [vmem:[%s2790_s8 + $0x8] sm:$0xf] %vm1973_vm7, %v2200_v30  ;;  %v2201_v40 = vpack.c.bf16 %v1643_v37, %v1643_v37  ;;  %v1641_v41 = vld [vmem:[#allocation4 + $0x8] sm:$0xff]  ;;  %v2338_v42 = vpop.f32.mrb[28].mxu1  ;;  %v1744_v50 = vmul.f32 %v1643_v37, %v1643_v37  ;;  %v1776_v5 = vsel %vm249_vm0, %v1743_v39, 0.0  ;;  %v1677_v9 = vsel %vm249_vm0, %v1643_v37, 0.0 }
 0x2b4   : > { %1615 = vst.msk [vmem:[#allocation4 + $0x38] sm:$0xff] %vm249_vm0, %v1583_v32  ;;  %v1673_v44 = vsel %vm249_vm0, %v1641_v41, 0.0  ;;  %v1742_v45 = vmul.f32 %v1641_v41, %v1641_v41  ;;  %v2199_v46 = vpack.c.bf16 %v1641_v41, %v1641_v41  ;;  %1613 = vst.msk [vmem:[#allocation4 + $0x28] sm:$0xff] %vm249_vm0, %v1581_v38  ;;  %v1159_v49 = vpop.f32.mrb[29].mxu1  ;;  %v1252_v33 = vadd.f32 %v2338_v42, %v978_v47  ;;  %v982_v37 = vld [vmem:[#allocation4 + $0x90] sm:$0xff]  ;;  %v980_v38 = vld [vmem:[#allocation4 + $0x80] sm:$0xff] }
 0x2b5   : > { %1974 = vst.msk [vmem:[%s2790_s8] sm:$0xf] %vm1973_vm7, %v2198_v36  ;;  %1977 = vst.msk [vmem:[%s2790_s8 + $0xc] sm:$0xf] %vm1973_vm7, %v2201_v40  ;;  %v1674_v51 = vadd.f32 %v1673_v44, %v1672_v43  ;;  %v1250_v52 = vadd.f32 %v1159_v49, %v976_v48  ;;  %v2339_v54 = vpop.f32.mrb[30].mxu1  ;;  %v1312_v56 = vld [vmem:[#allocation4 + $0x50] sm:$0xff] }
 0x2b6   : > { %v1773_v58 = vsel %vm249_vm0, %v1741_v35, 0.0  ;;  %v1774_v59 = vsel %vm249_vm0, %v1742_v45, 0.0  ;;  %1975 = vst.msk [vmem:[%s2790_s8 + $0x4] sm:$0xf] %vm1973_vm7, %v2199_v46  ;;  %v1253_v60 = vadd.f32 %v2339_v54, %v979_v53  ;;  %v1162_v61 = vpop.f32.mrb[31].mxu1  ;;  %v2370_v62 = vpop.f32.mrb[24].mxu0 }
 0x2b7   : > { %v1310_v63 = vld [vmem:[#allocation4 + $0x40] sm:$0xff]  ;;  %v1676_v0 = vadd.f32 %v1675_v57, %v1674_v51  ;;  %v1775_v1 = vadd.f32 %v1774_v59, %v1773_v58  ;;  %1284 = vst.msk [vmem:[#allocation4 + $0x70] sm:$0xff] %vm249_vm0, %v1252_v33  ;;  %1282 = vst.msk [vmem:[#allocation4 + $0x60] sm:$0xff] %vm249_vm0, %v1250_v52  ;;  %v1251_v2 = vadd.f32 %v1162_v61, %v977_v55  ;;  %v1481_v4 = vpop.f32.mrb[25].mxu0  ;;  %v1778_v10 = vsel %vm249_vm0, %v1744_v50, 0.0  ;;  %v1313_v24 = vld [vmem:[#allocation4 + $0x58] sm:$0xff] }
 0x2b8   : > { %v1586_v3 = vadd.f32 %v2370_v62, %v1312_v56  ;;  %v1646_v6 = vld [vmem:[#allocation4 + $0x30] sm:$0xff]  ;;  %1285 = vst.msk [vmem:[#allocation4 + $0x78] sm:$0xff] %vm249_vm0, %v1253_v60  ;;  %v1584_v7 = vadd.f32 %v1481_v4, %v1310_v63  ;;  %v2371_v8 = vpop.f32.mrb[26].mxu0  ;;  %v1311_v25 = vld [vmem:[#allocation4 + $0x48] sm:$0xff]  ;;  %v983_v39 = vld [vmem:[#allocation4 + $0x98] sm:$0xff] }
 0x2b9   : > { %v1777_v11 = vadd.f32 %v1776_v5, %v1775_v1  ;;  %v2204_v12 = vpack.c.bf16 %v1646_v6, %v1646_v6  ;;  %v1644_v13 = vld [vmem:[#allocation4 + $0x20] sm:$0xff]  ;;  %1283 = vst.msk [vmem:[#allocation4 + $0x68] sm:$0xff] %vm249_vm0, %v1251_v2  ;;  %v1484_v14 = vpop.f32.mrb[27].mxu0  ;;  %v1678_v15 = vadd.f32 %v1677_v9, %v1676_v0  ;;  %v1683_v20 = vsel %vm249_vm0, %v1646_v6, 0.0  ;;  %v981_v45 = vld [vmem:[#allocation4 + $0x88] sm:$0xff] }
 0x2ba   : > { %1618 = vst.msk [vmem:[#allocation4 + $0x50] sm:$0xff] %vm249_vm0, %v1586_v3  ;;  %v1679_v16 = vsel %vm249_vm0, %v1644_v13, 0.0  ;;  %v1745_v17 = vmul.f32 %v1644_v13, %v1644_v13  ;;  %v2202_v18 = vpack.c.bf16 %v1644_v13, %v1644_v13  ;;  %1616 = vst.msk [vmem:[#allocation4 + $0x40] sm:$0xff] %vm249_vm0, %v1584_v7  ;;  %v1747_v21 = vmul.f32 %v1646_v6, %v1646_v6 }
 0x2bb   : > { %v1647_v19 = vld [vmem:[#allocation4 + $0x38] sm:$0xff]  ;;  %1980 = vst.msk [vmem:[%s2790_s8 + $0x18] sm:$0xf] %vm1973_vm7, %v2204_v12  ;;  %v1779_v22 = vadd.f32 %v1778_v10, %v1777_v11  ;;  %v1645_v23 = vld [vmem:[#allocation4 + $0x28] sm:$0xff]  ;;  %v2342_v26 = vpop.f32.mrb[32].mxu1  ;;  %v1680_v27 = vadd.f32 %v1679_v16, %v1678_v15  ;;  %v1587_v42 = vadd.f32 %v2371_v8, %v1313_v24  ;;  %v1585_v43 = vadd.f32 %v1484_v14, %v1311_v25  ;;  %v986_v11 = vld [vmem:[#allocation4 + $0xb0] sm:$0xff] }
 0x2bc   : > { %v1780_v28 = vsel %vm249_vm0, %v1745_v17, 0.0  ;;  %1978 = vst.msk [vmem:[%s2790_s8 + $0x10] sm:$0xf] %vm1973_vm7, %v2202_v18  ;;  %v2205_v29 = vpack.c.bf16 %v1647_v19, %v1647_v19  ;;  %v1681_v30 = vsel %vm249_vm0, %v1645_v23, 0.0  ;;  %v1175_v31 = vpop.f32.mrb[33].mxu1  ;;  %v1748_v34 = vmul.f32 %v1647_v19, %v1647_v19  ;;  %v984_v15 = vld [vmem:[#allocation4 + $0xa0] sm:$0xff] }
 0x2bd   : > { %v1781_v32 = vadd.f32 %v1780_v28, %v1779_v22  ;;  %v1746_v35 = vmul.f32 %v1645_v23, %v1645_v23  ;;  %v2203_v36 = vpack.c.bf16 %v1645_v23, %v1645_v23  ;;  %v2343_v40 = vpop.f32.mrb[34].mxu1  ;;  %v1682_v41 = vadd.f32 %v1681_v30, %v1680_v27  ;;  %1619 = vst.msk [vmem:[#allocation4 + $0x58] sm:$0xff] %vm249_vm0, %v1587_v42  ;;  %v985_v24 = vld [vmem:[#allocation4 + $0xa8] sm:$0xff] }
 0x2be   : > { %1981 = vst.msk [vmem:[%s2790_s8 + $0x1c] sm:$0xf] %vm1973_vm7, %v2205_v29  ;;  %v1256_v44 = vadd.f32 %v2342_v26, %v982_v37  ;;  %v1178_v46 = vpop.f32.mrb[35].mxu1  ;;  %v1316_v47 = vld [vmem:[#allocation4 + $0x70] sm:$0xff]  ;;  %v2374_v48 = vpop.f32.mrb[28].mxu0  ;;  %v1314_v49 = vld [vmem:[#allocation4 + $0x60] sm:$0xff]  ;;  %v1254_v51 = vadd.f32 %v1175_v31, %v980_v38  ;;  %v1257_v33 = vadd.f32 %v2343_v40, %v983_v39 }
 0x2bf   : > { %v1782_v50 = vsel %vm249_vm0, %v1746_v35, 0.0  ;;  %1979 = vst.msk [vmem:[%s2790_s8 + $0x14] sm:$0xf] %vm1973_vm7, %v2203_v36  ;;  %v1255_v52 = vadd.f32 %v1178_v46, %v981_v45  ;;  %v1497_v53 = vpop.f32.mrb[29].mxu0  ;;  %v1317_v54 = vld [vmem:[#allocation4 + $0x78] sm:$0xff]  ;;  %v1684_v55 = vadd.f32 %v1683_v20, %v1682_v41  ;;  %v1590_v58 = vadd.f32 %v2374_v48, %v1316_v47 }
 0x2c0   : > { %v1783_v56 = vadd.f32 %v1782_v50, %v1781_v32  ;;  %1617 = vst.msk [vmem:[#allocation4 + $0x48] sm:$0xff] %vm249_vm0, %v1585_v43  ;;  %1288 = vst.msk [vmem:[#allocation4 + $0x90] sm:$0xff] %vm249_vm0, %v1256_v44  ;;  %v1588_v59 = vadd.f32 %v1497_v53, %v1314_v49  ;;  %v2375_v60 = vpop.f32.mrb[30].mxu0  ;;  %v1315_v61 = vld [vmem:[#allocation4 + $0x68] sm:$0xff]  ;;  %v1784_v62 = vsel %vm249_vm0, %v1747_v21, 0.0  ;;  %v1685_v63 = vsel %vm249_vm0, %v1647_v19, 0.0 }
 0x2c1   : > { %v2833_v57 = vld [vmem:[#allocation4 + $0x50] sm:$0xff]  ;;  %v1648_v1 = vld [vmem:[#allocation4 + $0x40] sm:$0xff]  ;;  %1286 = vst.msk [vmem:[#allocation4 + $0x80] sm:$0xff] %vm249_vm0, %v1254_v51  ;;  %1289 = vst.msk [vmem:[#allocation4 + $0x98] sm:$0xff] %vm249_vm0, %v1257_v33  ;;  %v1591_v2 = vadd.f32 %v2375_v60, %v1317_v54  ;;  %v1500_v3 = vpop.f32.mrb[31].mxu0  ;;  %v1686_v5 = vadd.f32 %v1685_v63, %v1684_v55  ;;  %v1786_v8 = vsel %vm249_vm0, %v1748_v34, 0.0 }
 0x2c2   : > { %v2208_v0 = vpack.c.bf16 %v2833_v57, %v2833_v57  ;;  %1287 = vst.msk [vmem:[#allocation4 + $0x88] sm:$0xff] %vm249_vm0, %v1255_v52  ;;  %v1785_v4 = vadd.f32 %v1784_v62, %v1783_v56  ;;  %v1687_v6 = vsel %vm249_vm0, %v1648_v1, 0.0  ;;  %v1749_v7 = vmul.f32 %v1648_v1, %v1648_v1  ;;  %1622 = vst.msk [vmem:[#allocation4 + $0x70] sm:$0xff] %vm249_vm0, %v1590_v58  ;;  %v987_v20 = vld [vmem:[#allocation4 + $0xb8] sm:$0xff] }
 0x2c3   : > { %1620 = vst.msk [vmem:[#allocation4 + $0x60] sm:$0xff] %vm249_vm0, %v1588_v59  ;;  %v2206_v9 = vpack.c.bf16 %v1648_v1, %v1648_v1  ;;  %1623 = vst.msk [vmem:[#allocation4 + $0x78] sm:$0xff] %vm249_vm0, %v1591_v2  ;;  %v1589_v10 = vadd.f32 %v1500_v3, %v1315_v61  ;;  %v2346_v12 = vpop.f32.mrb[36].mxu1  ;;  %v1688_v17 = vadd.f32 %v1687_v6, %v1686_v5  ;;  %v1691_v45 = vsel %vm249_vm0, %v2833_v57, 0.0 }
 0x2c4   : > { %1984 = vst.msk [vmem:[%s2790_s8 + $0x28] sm:$0xf] %vm1973_vm7, %v2208_v0  ;;  %v1787_v13 = vadd.f32 %v1786_v8, %v1785_v4  ;;  %v1260_v14 = vadd.f32 %v2346_v12, %v986_v11  ;;  %v1191_v16 = vpop.f32.mrb[37].mxu1  ;;  %v1788_v18 = vsel %vm249_vm0, %v1749_v7, 0.0  ;;  %v1751_v22 = vmul.f32 %v2833_v57, %v2833_v57  ;;  %v1651_v27 = vld [vmem:[#allocation4 + $0x58] sm:$0xff]  ;;  %v990_v7 = vld [vmem:[#allocation4 + $0xd0] sm:$0xff] }
 0x2c5   : > { %1982 = vst.msk [vmem:[%s2790_s8 + $0x20] sm:$0xf] %vm1973_vm7, %v2206_v9  ;;  %v1258_v19 = vadd.f32 %v1191_v16, %v984_v15  ;;  %v2347_v21 = vpop.f32.mrb[38].mxu1  ;;  %v1752_v34 = vmul.f32 %v1651_v27, %v1651_v27  ;;  %v2209_v35 = vpack.c.bf16 %v1651_v27, %v1651_v27  ;;  %v1693_v49 = vsel %vm249_vm0, %v1651_v27, 0.0 }
 0x2c6   : > { %1621 = vst.msk [vmem:[#allocation4 + $0x68] sm:$0xff] %vm249_vm0, %v1589_v10  ;;  %1292 = vst.msk [vmem:[#allocation4 + $0xb0] sm:$0xff] %vm249_vm0, %v1260_v14  ;;  %v1261_v23 = vadd.f32 %v2347_v21, %v987_v20  ;;  %v1194_v25 = vpop.f32.mrb[39].mxu1  ;;  %v2378_v26 = vpop.f32.mrb[32].mxu0  ;;  %v1789_v32 = vadd.f32 %v1788_v18, %v1787_v13  ;;  %v1792_v46 = vsel %vm249_vm0, %v1751_v22, 0.0  ;;  %v988_v22 = vld [vmem:[#allocation4 + $0xc0] sm:$0xff] }
 0x2c7   : > { %v1649_v28 = vld [vmem:[#allocation4 + $0x48] sm:$0xff]  ;;  %1290 = vst.msk [vmem:[#allocation4 + $0xa0] sm:$0xff] %vm249_vm0, %v1258_v19  ;;  %v1259_v29 = vadd.f32 %v1194_v25, %v985_v24  ;;  %v1320_v30 = vld [vmem:[#allocation4 + $0x90] sm:$0xff]  ;;  %v1513_v31 = vpop.f32.mrb[33].mxu0  ;;  %v1794_v53 = vsel %vm249_vm0, %v1752_v34, 0.0 }
 0x2c8   : > { %v1689_v36 = vsel %vm249_vm0, %v1649_v28, 0.0  ;;  %1293 = vst.msk [vmem:[#allocation4 + $0xb8] sm:$0xff] %vm249_vm0, %v1261_v23  ;;  %v2379_v37 = vpop.f32.mrb[34].mxu0  ;;  %v1750_v39 = vmul.f32 %v1649_v28, %v1649_v28  ;;  %v2207_v40 = vpack.c.bf16 %v1649_v28, %v1649_v28  ;;  %v1594_v43 = vadd.f32 %v2378_v26, %v1320_v30  ;;  %v1318_v58 = vld [vmem:[#allocation4 + $0x80] sm:$0xff]  ;;  %v1321_v59 = vld [vmem:[#allocation4 + $0x98] sm:$0xff]  ;;  %v989_v24 = vld [vmem:[#allocation4 + $0xc8] sm:$0xff] }
 0x2c9   : > { %v1690_v38 = vadd.f32 %v1689_v36, %v1688_v17  ;;  %v1654_v41 = vld [vmem:[#allocation4 + $0x70] sm:$0xff]  ;;  %1291 = vst.msk [vmem:[#allocation4 + $0xa8] sm:$0xff] %vm249_vm0, %v1259_v29  ;;  %v1516_v44 = vpop.f32.mrb[35].mxu0  ;;  %v1319_v1 = vld [vmem:[#allocation4 + $0x88] sm:$0xff]  ;;  %v1592_v12 = vadd.f32 %v1513_v31, %v1318_v58  ;;  %v1595_v13 = vadd.f32 %v2379_v37, %v1321_v59  ;;  %v991_v23 = vld [vmem:[#allocation4 + $0xd8] sm:$0xff] }
 0x2ca   : > { %v1652_v42 = vld [vmem:[#allocation4 + $0x60] sm:$0xff]  ;;  %1985 = vst.msk [vmem:[%s2790_s8 + $0x2c] sm:$0xf] %vm1973_vm7, %v2209_v35  ;;  %v2212_v47 = vpack.c.bf16 %v1654_v41, %v1654_v41  ;;  %v2868_v48 = vld [vmem:[#allocation4 + $0x78] sm:$0xff]  ;;  %v1790_v51 = vsel %vm249_vm0, %v1750_v39, 0.0  ;;  %v1699_v61 = vsel %vm249_vm0, %v1654_v41, 0.0  ;;  %v1755_v62 = vmul.f32 %v1654_v41, %v1654_v41 }
 0x2cb   : > { %v1692_v50 = vadd.f32 %v1691_v45, %v1690_v38  ;;  %1983 = vst.msk [vmem:[%s2790_s8 + $0x24] sm:$0xf] %vm1973_vm7, %v2207_v40  ;;  %v1753_v33 = vmul.f32 %v1652_v42, %v1652_v42  ;;  %v2350_v52 = vpop.f32.mrb[40].mxu1  ;;  %v1791_v54 = vadd.f32 %v1790_v51, %v1789_v32  ;;  %v1695_v55 = vsel %vm249_vm0, %v1652_v42, 0.0  ;;  %v994_v41 = vld [vmem:[#allocation4 + $0xf0] sm:$0xff] }
 0x2cc   : > { %1626 = vst.msk [vmem:[#allocation4 + $0x90] sm:$0xff] %vm249_vm0, %v1594_v43  ;;  %v2210_v56 = vpack.c.bf16 %v1652_v42, %v1652_v42  ;;  %v1207_v60 = vpop.f32.mrb[41].mxu1  ;;  %v2213_v0 = vpack.c.bf16 %v2868_v48, %v2868_v48  ;;  %v1593_v20 = vadd.f32 %v1516_v44, %v1319_v1  ;;  %v1264_v21 = vadd.f32 %v2350_v52, %v990_v7 }
 0x2cd   : > { %1988 = vst.msk [vmem:[%s2790_s8 + $0x38] sm:$0xf] %vm1973_vm7, %v2212_v47  ;;  %v1653_v57 = vld [vmem:[#allocation4 + $0x68] sm:$0xff]  ;;  %v1694_v63 = vadd.f32 %v1693_v49, %v1692_v50  ;;  %v2351_v2 = vpop.f32.mrb[42].mxu1  ;;  %v1793_v3 = vadd.f32 %v1792_v46, %v1791_v54  ;;  %v1796_v11 = vsel %vm249_vm0, %v1753_v33, 0.0  ;;  %v1324_v14 = vld [vmem:[#allocation4 + $0xb0] sm:$0xff]  ;;  %v1262_v27 = vadd.f32 %v1207_v60, %v988_v22 }
 0x2ce   : > { %1986 = vst.msk [vmem:[%s2790_s8 + $0x30] sm:$0xf] %vm1973_vm7, %v2210_v56  ;;  %v1697_v4 = vsel %vm249_vm0, %v1653_v57, 0.0  ;;  %v1754_v5 = vmul.f32 %v1653_v57, %v1653_v57  ;;  %v2211_v6 = vpack.c.bf16 %v1653_v57, %v1653_v57  ;;  %v1210_v8 = vpop.f32.mrb[43].mxu1  ;;  %v2382_v9 = vpop.f32.mrb[36].mxu0  ;;  %v1322_v15 = vld [vmem:[#allocation4 + $0xa0] sm:$0xff]  ;;  %v1265_v28 = vadd.f32 %v2351_v2, %v991_v23 }
 0x2cf   : > { %v1696_v10 = vadd.f32 %v1695_v55, %v1694_v63  ;;  %1989 = vst.msk [vmem:[%s2790_s8 + $0x3c] sm:$0xf] %vm1973_vm7, %v2213_v0  ;;  %v1529_v16 = vpop.f32.mrb[37].mxu0  ;;  %v1325_v17 = vld [vmem:[#allocation4 + $0xb8] sm:$0xff]  ;;  %v1795_v18 = vadd.f32 %v1794_v53, %v1793_v3  ;;  %v1263_v29 = vadd.f32 %v1210_v8, %v989_v24  ;;  %v1598_v35 = vadd.f32 %v2382_v9, %v1324_v14  ;;  %v992_v46 = vld [vmem:[#allocation4 + $0xe0] sm:$0xff]  ;;  %v993_v56 = vld [vmem:[#allocation4 + $0xe8] sm:$0xff] }
 0x2d0   : > { %v1798_v19 = vsel %vm249_vm0, %v1754_v5, 0.0  ;;  %1987 = vst.msk [vmem:[%s2790_s8 + $0x34] sm:$0xf] %vm1973_vm7, %v2211_v6  ;;  %v2383_v25 = vpop.f32.mrb[38].mxu0  ;;  %v1323_v30 = vld [vmem:[#allocation4 + $0xa8] sm:$0xff]  ;;  %v1596_v36 = vadd.f32 %v1529_v16, %v1322_v15  ;;  %v1756_v38 = vmul.f32 %v2868_v48, %v2868_v48  ;;  %v1800_v49 = vsel %vm249_vm0, %v1755_v62, 0.0 }
 0x2d1   : > { %v1698_v26 = vadd.f32 %v1697_v4, %v1696_v10  ;;  %1624 = vst.msk [vmem:[#allocation4 + $0x80] sm:$0xff] %vm249_vm0, %v1592_v12  ;;  %1627 = vst.msk [vmem:[#allocation4 + $0x98] sm:$0xff] %vm249_vm0, %v1595_v13  ;;  %v1532_v31 = vpop.f32.mrb[39].mxu0  ;;  %v1797_v32 = vadd.f32 %v1796_v11, %v1795_v18  ;;  %v1599_v37 = vadd.f32 %v2383_v25, %v1325_v17  ;;  %v1701_v50 = vsel %vm249_vm0, %v2868_v48, 0.0  ;;  %v995_v33 = vld [vmem:[#allocation4 + $0xf8] sm:$0xff] }
 0x2d2   : > { %1625 = vst.msk [vmem:[#allocation4 + $0x88] sm:$0xff] %vm249_vm0, %v1593_v20  ;;  %1296 = vst.msk [vmem:[#allocation4 + $0xd0] sm:$0xff] %vm249_vm0, %v1264_v21  ;;  %v1597_v44 = vadd.f32 %v1532_v31, %v1323_v30  ;;  %v1802_v59 = vsel %vm249_vm0, %v1756_v38, 0.0 }
 0x2d3   : > { %v2893_v34 = vld [vmem:[#allocation4 + $0x90] sm:$0xff]  ;;  %v1700_v39 = vadd.f32 %v1699_v61, %v1698_v26  ;;  %1294 = vst.msk [vmem:[#allocation4 + $0xc0] sm:$0xff] %vm249_vm0, %v1262_v27  ;;  %1297 = vst.msk [vmem:[#allocation4 + $0xd8] sm:$0xff] %vm249_vm0, %v1265_v28  ;;  %v2354_v42 = vpop.f32.mrb[44].mxu1  ;;  %v1799_v43 = vadd.f32 %v1798_v19, %v1797_v32 }
 0x2d4   : > { %v2216_v40 = vpack.c.bf16 %v2893_v34, %v2893_v34  ;;  %1295 = vst.msk [vmem:[#allocation4 + $0xc8] sm:$0xff] %vm249_vm0, %v1263_v29  ;;  %1630 = vst.msk [vmem:[#allocation4 + $0xb0] sm:$0xff] %vm249_vm0, %v1598_v35  ;;  %v1268_v45 = vadd.f32 %v2354_v42, %v994_v41  ;;  %v1223_v47 = vpop.f32.mrb[45].mxu1  ;;  %v1759_v1 = vmul.f32 %v2893_v34, %v2893_v34  ;;  %v1707_v21 = vsel %vm249_vm0, %v2893_v34, 0.0 }
 0x2d5   : > { %1628 = vst.msk [vmem:[#allocation4 + $0xa0] sm:$0xff] %vm249_vm0, %v1596_v36  ;;  %1631 = vst.msk [vmem:[#allocation4 + $0xb8] sm:$0xff] %vm249_vm0, %v1599_v37  ;;  %v1266_v51 = vadd.f32 %v1223_v47, %v992_v46  ;;  %v2355_v52 = vpop.f32.mrb[46].mxu1  ;;  %v1801_v53 = vadd.f32 %v1800_v49, %v1799_v43  ;;  %v1702_v54 = vadd.f32 %v1701_v50, %v1700_v39 }
 0x2d6   : > { %1992 = vst.msk [vmem:[%s2790_s8 + $0x48] sm:$0xf] %vm1973_vm7, %v2216_v40  ;;  %v1269_v55 = vadd.f32 %v2355_v52, %v995_v33  ;;  %v1226_v57 = vpop.f32.mrb[47].mxu1  ;;  %v2386_v58 = vpop.f32.mrb[40].mxu0  ;;  %v1808_v22 = vsel %vm249_vm0, %v1759_v1, 0.0 }
 0x2d7   : > { %1629 = vst.msk [vmem:[#allocation4 + $0xa8] sm:$0xff] %vm249_vm0, %v1597_v44  ;;  %1300 = vst.msk [vmem:[#allocation4 + $0xf0] sm:$0xff] %vm249_vm0, %v1268_v45  ;;  %v1267_v48 = vadd.f32 %v1226_v57, %v993_v56  ;;  %v2916_v60 = vpop.f32.mrb[41].mxu0  ;;  %v1803_v62 = vadd.f32 %v1802_v59, %v1801_v53 }
 0x2d8   : > { %1298 = vst.msk [vmem:[#allocation4 + $0xe0] sm:$0xff] %vm249_vm0, %v1266_v51  ;;  %v1656_v61 = vld [vmem:[#allocation4 + $0x80] sm:$0xff]  ;;  %v1659_v63 = vld [vmem:[#allocation4 + $0x98] sm:$0xff]  ;;  %1301 = vst.msk [vmem:[#allocation4 + $0xf8] sm:$0xff] %vm249_vm0, %v1269_v55  ;;  %v2919_v0 = vpop.f32.mrb[42].mxu0 }
 0x2d9   : > { %v1703_v2 = vsel %vm249_vm0, %v1656_v61, 0.0  ;;  %v1757_v3 = vmul.f32 %v1656_v61, %v1656_v61  ;;  %v2214_v4 = vpack.c.bf16 %v1656_v61, %v1656_v61  ;;  %v1657_v5 = vld [vmem:[#allocation4 + $0x88] sm:$0xff]  ;;  %1299 = vst.msk [vmem:[#allocation4 + $0xe8] sm:$0xff] %vm249_vm0, %v1267_v48  ;;  %v1328_v6 = vld [vmem:[#allocation4 + $0xd0] sm:$0xff]  ;;  %v1548_v7 = vpop.f32.mrb[43].mxu0  ;;  %v1760_v9 = vmul.f32 %v1659_v63, %v1659_v63 }
 0x2da   : > { %v1704_v8 = vadd.f32 %v1703_v2, %v1702_v54  ;;  %v2217_v10 = vpack.c.bf16 %v1659_v63, %v1659_v63  ;;  %v1705_v11 = vsel %vm249_vm0, %v1657_v5, 0.0  ;;  %v1758_v13 = vmul.f32 %v1657_v5, %v1657_v5  ;;  %v1326_v30 = vld [vmem:[#allocation4 + $0xc0] sm:$0xff]  ;;  %v1329_v37 = vld [vmem:[#allocation4 + $0xd8] sm:$0xff] }
 0x2db   : > { %v1804_v12 = vsel %vm249_vm0, %v1757_v3, 0.0  ;;  %1990 = vst.msk [vmem:[%s2790_s8 + $0x40] sm:$0xf] %vm1973_vm7, %v2214_v4  ;;  %v2215_v14 = vpack.c.bf16 %v1657_v5, %v1657_v5  ;;  %v1662_v15 = vld [vmem:[#allocation4 + $0xb0] sm:$0xff]  ;;  %v1602_v17 = vadd.f32 %v2386_v58, %v1328_v6  ;;  %v1709_v32 = vsel %vm249_vm0, %v1659_v63, 0.0  ;;  %v1327_v38 = vld [vmem:[#allocation4 + $0xc8] sm:$0xff] }
 0x2dc   : > { %v1660_v16 = vld [vmem:[#allocation4 + $0xa0] sm:$0xff]  ;;  %v1805_v18 = vadd.f32 %v1804_v12, %v1803_v62  ;;  %1993 = vst.msk [vmem:[%s2790_s8 + $0x4c] sm:$0xf] %vm1973_vm7, %v2217_v10  ;;  %v1706_v19 = vadd.f32 %v1705_v11, %v1704_v8  ;;  %v2931_v20 = vld [vmem:[#allocation4 + $0xb8] sm:$0xff]  ;;  %v1806_v23 = vsel %vm249_vm0, %v1758_v13, 0.0  ;;  %v2220_v24 = vpack.c.bf16 %v1662_v15, %v1662_v15 }
 0x2dd   : > { %1991 = vst.msk [vmem:[%s2790_s8 + $0x44] sm:$0xf] %vm1973_vm7, %v2215_v14  ;;  %v1761_v27 = vmul.f32 %v1660_v16, %v1660_v16  ;;  %v2218_v28 = vpack.c.bf16 %v1660_v16, %v1660_v16  ;;  %v1810_v34 = vsel %vm249_vm0, %v1760_v9, 0.0  ;;  %v1711_v35 = vsel %vm249_vm0, %v1660_v16, 0.0 }
 0x2de   : > { %1634 = vst.msk [vmem:[#allocation4 + $0xd0] sm:$0xff] %vm249_vm0, %v1602_v17  ;;  %v1708_v25 = vadd.f32 %v1707_v21, %v1706_v19  ;;  %v1807_v26 = vadd.f32 %v1806_v23, %v1805_v18  ;;  %v1661_v29 = vld [vmem:[#allocation4 + $0xa8] sm:$0xff]  ;;  %v2390_v31 = vpop.f32.mrb[44].mxu0  ;;  %v2221_v36 = vpack.c.bf16 %v2931_v20, %v2931_v20  ;;  %v1763_v41 = vmul.f32 %v1662_v15, %v1662_v15  ;;  %v1332_v44 = vld [vmem:[#allocation4 + $0xf0] sm:$0xff] }
 0x2df   : > { %1996 = vst.msk [vmem:[%s2790_s8 + $0x58] sm:$0xf] %vm1973_vm7, %v2220_v24  ;;  %v1561_v39 = vpop.f32.mrb[45].mxu0  ;;  %v1812_v43 = vsel %vm249_vm0, %v1761_v27, 0.0  ;;  %1994 = vst.msk [vmem:[%s2790_s8 + $0x50] sm:$0xf] %vm1973_vm7, %v2218_v28  ;;  %v1762_v50 = vmul.f32 %v1661_v29, %v1661_v29  ;;  %v2219_v51 = vpack.c.bf16 %v1661_v29, %v1661_v29  ;;  %v1600_v33 = vadd.f32 %v2916_v60, %v1326_v30 }
 0x2e0   : > { %v1809_v40 = vadd.f32 %v1808_v22, %v1807_v26  ;;  %v1710_v42 = vadd.f32 %v1709_v32, %v1708_v25  ;;  %v1330_v45 = vld [vmem:[#allocation4 + $0xe0] sm:$0xff]  ;;  %v1333_v46 = vld [vmem:[#allocation4 + $0xf8] sm:$0xff]  ;;  %v2391_v47 = vpop.f32.mrb[46].mxu0  ;;  %1997 = vst.msk [vmem:[%s2790_s8 + $0x5c] sm:$0xf] %vm1973_vm7, %v2221_v36  ;;  %v1713_v49 = vsel %vm249_vm0, %v1661_v29, 0.0  ;;  %v1603_v56 = vadd.f32 %v2919_v0, %v1329_v37 }
 0x2e1   : > { %v1331_v52 = vld [vmem:[#allocation4 + $0xe8] sm:$0xff]  ;;  %v1564_v53 = vpop.f32.mrb[47].mxu0  ;;  %v1601_v57 = vadd.f32 %v1548_v7, %v1327_v38  ;;  %v1814_v58 = vsel %vm249_vm0, %v1762_v50, 0.0  ;;  %1995 = vst.msk [vmem:[%s2790_s8 + $0x54] sm:$0xf] %vm1973_vm7, %v2219_v51  ;;  %v1606_v59 = vadd.f32 %v2390_v31, %v1332_v44  ;;  %v1604_v48 = vadd.f32 %v1561_v39, %v1330_v45 }
 0x2e2   : > { %v1712_v54 = vadd.f32 %v1711_v35, %v1710_v42  ;;  %v1811_v55 = vadd.f32 %v1810_v34, %v1809_v40  ;;  %1632 = vst.msk [vmem:[#allocation4 + $0xc0] sm:$0xff] %vm249_vm0, %v1600_v33  ;;  %v1607_v61 = vadd.f32 %v2391_v47, %v1333_v46  ;;  %1635 = vst.msk [vmem:[#allocation4 + $0xd8] sm:$0xff] %vm249_vm0, %v1603_v56  ;;  %v1715_v0 = vsel %vm249_vm0, %v1662_v15, 0.0 }
 0x2e3   : > { %1633 = vst.msk [vmem:[#allocation4 + $0xc8] sm:$0xff] %vm249_vm0, %v1601_v57  ;;  %v1605_v1 = vadd.f32 %v1564_v53, %v1331_v52  ;;  %v1764_v2 = vmul.f32 %v2931_v20, %v2931_v20  ;;  %1638 = vst.msk [vmem:[#allocation4 + $0xf0] sm:$0xff] %vm249_vm0, %v1606_v59  ;;  %v1816_v6 = vsel %vm249_vm0, %v1763_v41, 0.0  ;;  %v1717_v7 = vsel %vm249_vm0, %v2931_v20, 0.0 }
 0x2e4   : > { %v1813_v62 = vadd.f32 %v1812_v43, %v1811_v55  ;;  %v1714_v63 = vadd.f32 %v1713_v49, %v1712_v54  ;;  %1636 = vst.msk [vmem:[#allocation4 + $0xe0] sm:$0xff] %vm249_vm0, %v1604_v48  ;;  %1639 = vst.msk [vmem:[#allocation4 + $0xf8] sm:$0xff] %vm249_vm0, %v1607_v61 }
 0x2e5   : > { %v1666_v60 = vld [vmem:[#allocation4 + $0xd0] sm:$0xff]  ;;  %1637 = vst.msk [vmem:[#allocation4 + $0xe8] sm:$0xff] %vm249_vm0, %v1605_v1  ;;  %v1818_v10 = vsel %vm249_vm0, %v1764_v2, 0.0 }
 0x2e6   : > { %v2224_v3 = vpack.c.bf16 %v1666_v60, %v1666_v60  ;;  %v1716_v4 = vadd.f32 %v1715_v0, %v1714_v63  ;;  %v1815_v5 = vadd.f32 %v1814_v58, %v1813_v62  ;;  %v1767_v18 = vmul.f32 %v1666_v60, %v1666_v60 }
 0x2e7   : > { %v1723_v31 = vsel %vm249_vm0, %v1666_v60, 0.0 }
 0x2e8   : > { %2000 = vst.msk [vmem:[%s2790_s8 + $0x68] sm:$0xf] %vm1973_vm7, %v2224_v3  ;;  %v1817_v8 = vadd.f32 %v1816_v6, %v1815_v5  ;;  %v1718_v9 = vadd.f32 %v1717_v7, %v1716_v4  ;;  %v1824_v40 = vsel %vm249_vm0, %v1767_v18, 0.0 }
 0x2e9   : > { %v1664_v11 = vld [vmem:[#allocation4 + $0xc0] sm:$0xff]  ;;  %v1667_v16 = vld [vmem:[#allocation4 + $0xd8] sm:$0xff] }
 0x2ea   : > { %v1819_v12 = vadd.f32 %v1818_v10, %v1817_v8  ;;  %v1719_v13 = vsel %vm249_vm0, %v1664_v11, 0.0  ;;  %v1765_v14 = vmul.f32 %v1664_v11, %v1664_v11  ;;  %v2222_v15 = vpack.c.bf16 %v1664_v11, %v1664_v11  ;;  %v1665_v17 = vld [vmem:[#allocation4 + $0xc8] sm:$0xff]  ;;  %v1670_v21 = vld [vmem:[#allocation4 + $0xf0] sm:$0xff] }
 0x2eb   : > { %v1720_v19 = vadd.f32 %v1719_v13, %v1718_v9  ;;  %v2225_v20 = vpack.c.bf16 %v1667_v16, %v1667_v16  ;;  %v1721_v23 = vsel %vm249_vm0, %v1665_v17, 0.0  ;;  %v1766_v24 = vmul.f32 %v1665_v17, %v1665_v17  ;;  %v1668_v26 = vld [vmem:[#allocation4 + $0xe0] sm:$0xff]  ;;  %v1671_v30 = vld [vmem:[#allocation4 + $0xf8] sm:$0xff] }
 0x2ec   : > { %v1820_v22 = vsel %vm249_vm0, %v1765_v14, 0.0  ;;  %1998 = vst.msk [vmem:[%s2790_s8 + $0x60] sm:$0xf] %vm1973_vm7, %v2222_v15  ;;  %v2223_v25 = vpack.c.bf16 %v1665_v17, %v1665_v17  ;;  %v1768_v28 = vmul.f32 %v1667_v16, %v1667_v16  ;;  %v2228_v34 = vpack.c.bf16 %v1670_v21, %v1670_v21  ;;  %v1669_v39 = vld [vmem:[#allocation4 + $0xe8] sm:$0xff] }
 0x2ed   : > { %v1821_v27 = vadd.f32 %v1820_v22, %v1819_v12  ;;  %2001 = vst.msk [vmem:[%s2790_s8 + $0x6c] sm:$0xf] %vm1973_vm7, %v2225_v20  ;;  %v1722_v29 = vadd.f32 %v1721_v23, %v1720_v19  ;;  %v1822_v32 = vsel %vm249_vm0, %v1766_v24, 0.0  ;;  %v1769_v37 = vmul.f32 %v1668_v26, %v1668_v26 }
 0x2ee   : > { %1999 = vst.msk [vmem:[%s2790_s8 + $0x64] sm:$0xf] %vm1973_vm7, %v2223_v25  ;;  %v2226_v38 = vpack.c.bf16 %v1668_v26, %v1668_v26  ;;  %v1725_v41 = vsel %vm249_vm0, %v1667_v16, 0.0  ;;  %2004 = vst.msk [vmem:[%s2790_s8 + $0x78] sm:$0xf] %vm1973_vm7, %v2228_v34  ;;  %v1727_v42 = vsel %vm249_vm0, %v1668_v26, 0.0  ;;  %v2229_v43 = vpack.c.bf16 %v1671_v30, %v1671_v30 }
 0x2ef   : > { %v1724_v35 = vadd.f32 %v1723_v31, %v1722_v29  ;;  %v1823_v36 = vadd.f32 %v1822_v32, %v1821_v27  ;;  %v1826_v44 = vsel %vm249_vm0, %v1768_v28, 0.0  ;;  %v1828_v47 = vsel %vm249_vm0, %v1769_v37, 0.0 }
 0x2f0   : > { %2002 = vst.msk [vmem:[%s2790_s8 + $0x70] sm:$0xf] %vm1973_vm7, %v2226_v38  ;;  %2005 = vst.msk [vmem:[%s2790_s8 + $0x7c] sm:$0xf] %vm1973_vm7, %v2229_v43  ;;  %v1729_v49 = vsel %vm249_vm0, %v1669_v39, 0.0  ;;  %v1770_v50 = vmul.f32 %v1669_v39, %v1669_v39  ;;  %v2227_v51 = vpack.c.bf16 %v1669_v39, %v1669_v39  ;;  %v1771_v53 = vmul.f32 %v1670_v21, %v1670_v21 }
 0x2f1   : > { %v1825_v45 = vadd.f32 %v1824_v40, %v1823_v36  ;;  %v1726_v46 = vadd.f32 %v1725_v41, %v1724_v35  ;;  %v1731_v57 = vsel %vm249_vm0, %v1670_v21, 0.0  ;;  %v1772_v58 = vmul.f32 %v1671_v30, %v1671_v30 }
 0x2f2   : > { %v1830_v54 = vsel %vm249_vm0, %v1770_v50, 0.0  ;;  %2003 = vst.msk [vmem:[%s2790_s8 + $0x74] sm:$0xf] %vm1973_vm7, %v2227_v51  ;;  %v1832_v61 = vsel %vm249_vm0, %v1771_v53, 0.0  ;;  %v1733_v62 = vsel %vm249_vm0, %v1671_v30, 0.0 }
 0x2f3   : > { %v1728_v33 = vadd.f32 %v1727_v42, %v1726_v46  ;;  %v1827_v52 = vadd.f32 %v1826_v44, %v1825_v45  ;;  %v1834_v1 = vsel %vm249_vm0, %v1772_v58, 0.0 }
 0x2f5   : > { %v1829_v55 = vadd.f32 %v1828_v47, %v1827_v52  ;;  %v1730_v56 = vadd.f32 %v1729_v49, %v1728_v33 }
 0x2f7   : > { %v1732_v59 = vadd.f32 %v1731_v57, %v1730_v56  ;;  %v1831_v48 = vadd.f32 %v1830_v54, %v1829_v55 }
 0x2f9   : > { %v1734_v63 = vadd.f32 %v1733_v62, %v1732_v59  ;;  %v1833_v60 = vadd.f32 %v1832_v61, %v1831_v48 }
 0x2fb   : > { %v1735_v0 = vrot.slane %v1734_v63, 4  ;;  %v1835_v2 = vadd.f32 %v1834_v1, %v1833_v60 }
 0x2fd   : > { %v1736_v3 = vadd.f32 %v1735_v0, %v1734_v63  ;;  %v1836_v4 = vrot.slane %v1835_v2, 4 }
 0x2ff   : > { %v1737_v5 = vrot.slane %v1736_v3, 2  ;;  %v1837_v6 = vadd.f32 %v1836_v4, %v1835_v2 }
 0x301   : > { %v1738_v7 = vadd.f32 %v1737_v5, %v1736_v3  ;;  %v1838_v8 = vrot.slane %v1837_v6, 2 }
 0x303   : > { %v1739_v9 = vrot.slane %v1738_v7, 1  ;;  %v1839_v10 = vadd.f32 %v1838_v8, %v1837_v6 }
 0x305   : > { %v1840_v11 = vrot.slane %v1839_v10, 1  ;;  %v1740_v12 = vadd.f32 %v1739_v9, %v1738_v7 }
 0x307   : > { %v1841_v13 = vadd.f32 %v1840_v11, %v1839_v10 }
 0x309   : > { %v1843_v14 = vsel %vm1842_vm8, %v1740_v12, %v1841_v13 }
 0x30a   : > { %1844 = vst.msk [vmem:[%s181_s14] sm:$0x3] %vm252_vm2, %v1843_v14 }
 0x30b PF: > { %s14_s12 = sadd.s32 1, %s2423_s12  }
 0x30c   : > { %p11_p4 = scmp.ge.s32.totalorder %s14_s12, 4  }
 0x30e   :  { %13 = sbr.rel (!%p11_p4) target bundleno = 1 (0x1), region = 76 }

// kernel: generator_residual_block.4
= control target key start
LH: loop header
LB: loop body
LE: loop exit
PB: predicated region body
PF: predicated region fallthrough
CT: control target
= control target key end

     0   :  { %s2765_s18 = smov 0   ;;  %s3464_s0 = inlined_call_operand.vmem [shape: bf16[2,256,8], index: 0, kind: input, shape index: {}]   ;;  %s3465_s1 = inlined_call_operand.vmem [shape: f32[1,8], index: 1, kind: input, shape index: {}]   ;;  %s3466_s2 = inlined_call_operand.vmem [shape: f32[1,8], index: 2, kind: input, shape index: {}]   ;;  %s3467_s3 = inlined_call_operand.vmem [shape: bf16[3,24,8], index: 3, kind: input, shape index: {}]   ;;  %s3468_s4 = inlined_call_operand.vmem [shape: bf16[2,256,8], index: 4, kind: output, shape index: {0}]   ;;  %s3469_s5 = inlined_call_operand.vmem [shape: f32[2,2,8], index: 5, kind: output, shape index: {1}]  }
   0x1 LB: > { %s2318_s19 = sadd.s32 4294967295, %s2730_s18   ;;  %p2322_p0 = scmp.ge.s32.totalorder %s2730_s18, 1  ;;  %s2730_s18 = sphi %s2765_s18, %s16_s18  }
   0x2   : > { %p190_p1 = scmp.lt.s32.totalorder %s2730_s18, 3 }
   0x4   : > { %p191_p2 = pnand %p2322_p0, %p190_p1 }
   0x5   : > { %vm475_vm0 = vcmask (!%p191_p2), 64512   ;;  %vm478_vm1 = vcmask (!%p191_p2), 58368   ;;  %vm484_vm2 = vcmask (!%p191_p2), 57344   ;;  %v2732_v0 = vmov (!%p191_p2), 0.0   ;;  %p222_p3 = scmp.lt.s32.totalorder (!%p191_p2), %s2318_s19, 1  ;;  %s2733_s28 = smov (!%p191_p2), 8  }
   0x6   : > { %194 = sbr.rel (%p191_p2) target bundleno = 534 (0x216), region = 36  ;;  %476 = vst.msk [vmem:[#allocation2] sm:$0xff] (!%p191_p2), %vm475_vm0, %v2732_v0  ;;  %477 = vst.msk [vmem:[#allocation2 + $0x8] sm:$0xff] (!%p191_p2), %vm475_vm0, %v2732_v0  ;;  %v2832_v1 = vld [vmem:[%s3465_s1] ss:$0 sm:$0xff] (!%p191_p2)  ;;  %s2734_s29 = smov (!%p191_p2), 16  }
   0x7   : > { %479 = vst.msk [vmem:[#allocation2 + $0x10] sm:$0x3] (!%p191_p2), %vm478_vm1, %v2732_v0  ;;  %483 = vst.msk [vmem:[#allocation2 + $0x1a8] sm:$0x3] (!%p191_p2), %vm478_vm1, %v2732_v0  ;;  %v2840_v14 = vld [vmem:[%s3466_s2] ss:$0 sm:$0xff] (!%p191_p2) }
   0x8   : > { %481 = vst.msk [vmem:[#allocation2 + $0x198] sm:$0xff] (!%p191_p2), %vm475_vm0, %v2732_v0  ;;  %482 = vst.msk [vmem:[#allocation2 + $0x1a0] sm:$0xff] (!%p191_p2), %vm475_vm0, %v2732_v0  ;;  %v2718_v51 = vld [vmem:[%s3467_s3] sm:$0xff] (!%p191_p2)  }
   0x9   : > { %486 = vst.msk [vmem:[#allocation2 + $0x18] sm:$0x1] (!%p191_p2), %vm484_vm2, %v2732_v0  ;;  %487 = vst.msk [vmem:[#allocation2 + $0x30] sm:$0x1] (!%p191_p2), %vm484_vm2, %v2732_v0  ;;  %2699 = vmatprep.subr.bf16.mxu1 (!%p191_p2), %v2718_v51  ;;  %2591 = vmatprep.subr.bf16.mxu0 (!%p191_p2), %v2718_v51 }
   0xa   : > { %488 = vst.msk [vmem:[#allocation2 + $0x48] sm:$0x1] (!%p191_p2), %vm484_vm2, %v2732_v0  ;;  %489 = vst.msk [vmem:[#allocation2 + $0x60] sm:$0x1] (!%p191_p2), %vm484_vm2, %v2732_v0  ;;  %2701 = vmatpush3.bf16.msra.mxu1 (!%p191_p2), %v2718_v51  ;;  %2592 = vmatpush3.bf16.msra.mxu0 (!%p191_p2), %v2718_v51 }
   0xb   : > { %490 = vst.msk [vmem:[#allocation2 + $0x78] sm:$0x1] (!%p191_p2), %vm484_vm2, %v2732_v0  ;;  %491 = vst.msk [vmem:[#allocation2 + $0x90] sm:$0x1] (!%p191_p2), %vm484_vm2, %v2732_v0 }
   0xc   : > { %492 = vst.msk [vmem:[#allocation2 + $0xa8] sm:$0x1] (!%p191_p2), %vm484_vm2, %v2732_v0  ;;  %493 = vst.msk [vmem:[#allocation2 + $0xc0] sm:$0x1] (!%p191_p2), %vm484_vm2, %v2732_v0 }
   0xd   : > { %494 = vst.msk [vmem:[#allocation2 + $0xd8] sm:$0x1] %vm484_vm2, %v2732_v0  ;;  %495 = vst.msk [vmem:[#allocation2 + $0xf0] sm:$0x1] %vm484_vm2, %v2732_v0  ;;  %s3471_s19 = smov (!%p222_p3, %s2318_s19), 1  ;;  %v626_v5 = vld [vmem:[#allocation2 + $0x1] sm:$0xff] }
   0xe   : > { %496 = vst.msk [vmem:[#allocation2 + $0x108] sm:$0x1] %vm484_vm2, %v2732_v0  ;;  %497 = vst.msk [vmem:[#allocation2 + $0x120] sm:$0x1] %vm484_vm2, %v2732_v0  ;;  %s2424_s20 = sshll.u32 %s3471_s19, 7  ;;  %v627_v6 = vld [vmem:[#allocation2 + $0x9] sm:$0xff] }
   0xf   : > { %498 = vst.msk [vmem:[#allocation2 + $0x138] sm:$0x1] %vm484_vm2, %v2732_v0  ;;  %499 = vst.msk [vmem:[#allocation2 + $0x150] sm:$0x1] %vm484_vm2, %v2732_v0  ;;  %s2827_s23 = scalar_lea.vmem %s3464_s0, %s2424_s20  ;;  %v771_v7 = vld [vmem:[#allocation2 + $0x2] sm:$0xff]  ;;  %v662_v12 = vpack.c.bf16 %v627_v6, %v626_v5  ;;  %s3264_s22 = scalar_lea.vmem %s3468_s4, %s2424_s20 }
  0x10   : > { %500 = vst.msk [vmem:[#allocation2 + $0x168] sm:$0x1] %vm484_vm2, %v2732_v0  ;;  %501 = vst.msk [vmem:[#allocation2 + $0x180] sm:$0x1] %vm484_vm2, %v2732_v0  ;;  %v2528_v2 = vld [vmem:[%s2827_s23 + $0x38] sm:$0xff]   ;;  %v2529_v3 = vld [vmem:[%s2827_s23 + $0x40] sm:$0xff]  }
  0x11   : > { %504 = vst.msk [vmem:[#allocation2 + $0x29] sm:$0x1] %vm484_vm2, %v2732_v0  ;;  %505 = vst.msk [vmem:[#allocation2 + $0x41] sm:$0x1] %vm484_vm2, %v2732_v0  ;;  %v2531_v4 = vld [vmem:[%s2827_s23 + $0x50] sm:$0xff]   ;;  %v2488_v8 = vunpack.c.l.bf16 %v2528_v2  ;;  %v2489_v9 = vunpack.c.h.bf16 %v2528_v2  ;;  %v2492_v10 = vunpack.c.l.bf16 %v2529_v3  ;;  %v2493_v11 = vunpack.c.h.bf16 %v2529_v3  ;;  %v2530_v17 = vld [vmem:[%s2827_s23 + $0x48] sm:$0xff]   ;;  %698 = vrot.lane.b32.xlu1 %v662_v12, %s2733_s28 }
  0x12   : > { %506 = vst.msk [vmem:[#allocation2 + $0x59] sm:$0x1] %vm484_vm2, %v2732_v0  ;;  %507 = vst.msk [vmem:[#allocation2 + $0x71] sm:$0x1] %vm484_vm2, %v2732_v0  ;;  %v2500_v15 = vunpack.c.l.bf16 %v2531_v4  ;;  %v2501_v16 = vunpack.c.h.bf16 %v2531_v4  ;;  %v2496_v25 = vunpack.c.l.bf16 %v2530_v17  ;;  %v2497_v29 = vunpack.c.h.bf16 %v2530_v17  ;;  %v2459_v34 = vld [vmem:[%s2827_s23] sm:$0xff]   ;;  %v2532_v41 = vld [vmem:[%s2827_s23 + $0x58] sm:$0xff]  }
  0x13   : > { %508 = vst.msk [vmem:[#allocation2 + $0x89] sm:$0x1] %vm484_vm2, %v2732_v0  ;;  %509 = vst.msk [vmem:[#allocation2 + $0xa1] sm:$0x1] %vm484_vm2, %v2732_v0  ;;  %v322_v19 = vmul.f32 %v2488_v8, %v2832_v1  ;;  %v323_v20 = vmul.f32 %v2489_v9, %v2832_v1  ;;  %v324_v21 = vmul.f32 %v2492_v10, %v2832_v1  ;;  %v2460_v48 = vunpack.c.l.bf16 %v2459_v34  ;;  %v2533_v50 = vld [vmem:[%s2827_s23 + $0x60] sm:$0xff]   ;;  %s2327_s20 = sshll.u32 %s3471_s19, 1 }
  0x14   : > { %510 = vst.msk [vmem:[#allocation2 + $0xb9] sm:$0x1] %vm484_vm2, %v2732_v0  ;;  %511 = vst.msk [vmem:[#allocation2 + $0xd1] sm:$0x1] %vm484_vm2, %v2732_v0  ;;  %v325_v22 = vmul.f32 %v2493_v11, %v2832_v1  ;;  %v328_v23 = vmul.f32 %v2500_v15, %v2832_v1  ;;  %v329_v24 = vmul.f32 %v2501_v16, %v2832_v1  ;;  %v2461_v49 = vunpack.c.h.bf16 %v2459_v34  ;;  %v2523_v34 = vld [vmem:[%s2827_s23 + $0x10] sm:$0xff]   ;;  %s235_s25 = scalar_lea.vmem %s3469_s5, %s2327_s20 }
  0x15   : > { %512 = vst.msk [vmem:[#allocation2 + $0xe9] sm:$0x1] %vm484_vm2, %v2732_v0  ;;  %513 = vst.msk [vmem:[#allocation2 + $0x101] sm:$0x1] %vm484_vm2, %v2732_v0  ;;  %v361_v26 = vadd.f32 %v2840_v14, %v322_v19  ;;  %v362_v27 = vadd.f32 %v2840_v14, %v323_v20  ;;  %v363_v28 = vadd.f32 %v2840_v14, %v324_v21  ;;  %v2504_v54 = vunpack.c.l.bf16 %v2532_v41 }
  0x16   : > { %514 = vst.msk [vmem:[#allocation2 + $0x119] sm:$0x1] %vm484_vm2, %v2732_v0  ;;  %515 = vst.msk [vmem:[#allocation2 + $0x131] sm:$0x1] %vm484_vm2, %v2732_v0  ;;  %v364_v30 = vadd.f32 %v2840_v14, %v325_v22  ;;  %v367_v31 = vadd.f32 %v2840_v14, %v328_v23  ;;  %v368_v32 = vadd.f32 %v2840_v14, %v329_v24  ;;  %v2505_v55 = vunpack.c.h.bf16 %v2532_v41  ;;  %v2522_v24 = vld [vmem:[%s2827_s23 + $0x8] sm:$0xff]  }
  0x17   : > { %516 = vst.msk [vmem:[#allocation2 + $0x149] sm:$0x1] %vm484_vm2, %v2732_v0  ;;  %517 = vst.msk [vmem:[#allocation2 + $0x161] sm:$0x1] %vm484_vm2, %v2732_v0  ;;  %v326_v33 = vmul.f32 %v2496_v25, %v2832_v1  ;;  %vm393_vm3 = vcmp.gt.f32.partialorder %v361_v26, 0.0  ;;  %vm394_vm4 = vcmp.gt.f32.partialorder %v362_v27, 0.0  ;;  %v327_v46 = vmul.f32 %v2497_v29, %v2832_v1 }
  0x18   : > { %518 = vst.msk [vmem:[#allocation2 + $0x179] sm:$0x1] %vm484_vm2, %v2732_v0  ;;  %519 = vst.msk [vmem:[#allocation2 + $0x191] sm:$0x1] %vm484_vm2, %v2732_v0  ;;  %v425_v35 = vmul.f32 0.2, %v361_v26  ;;  %v308_v58 = vmul.f32 %v2460_v48, %v2832_v1  ;;  %v309_v59 = vmul.f32 %v2461_v49, %v2832_v1  ;;  %v330_v60 = vmul.f32 %v2504_v54, %v2832_v1 }
  0x19   : > { %485 = vst.msk [vmem:[#allocation2] sm:$0x1] %vm484_vm2, %v2732_v0  ;;  %503 = vst.msk [vmem:[#allocation2 + $0x11] sm:$0x1] %vm484_vm2, %v2732_v0  ;;  %v426_v36 = vmul.f32 0.2, %v362_v27  ;;  %v365_v47 = vadd.f32 %v2840_v14, %v326_v33  ;;  %v366_v56 = vadd.f32 %v2840_v14, %v327_v46  ;;  %v331_v61 = vmul.f32 %v2505_v55, %v2832_v1 }
  0x1a   : > { %502 = vst.msk [vmem:[#allocation2 + $0x198] sm:$0x1] %vm484_vm2, %v2732_v0  ;;  %520 = vst.msk [vmem:[#allocation2 + $0x1a9] sm:$0x1] %vm484_vm2, %v2732_v0  ;;  %vm395_vm5 = vcmp.gt.f32.partialorder %v363_v28, 0.0  ;;  %vm396_vm6 = vcmp.gt.f32.partialorder %v364_v30, 0.0  ;;  %v457_v39 = vsel %vm393_vm3, %v361_v26, %v425_v35  ;;  %v2508_v62 = vunpack.c.l.bf16 %v2533_v50 }
  0x1b   : > { %v427_v37 = vmul.f32 0.2, %v363_v28  ;;  %v428_v38 = vmul.f32 0.2, %v364_v30  ;;  %v458_v40 = vsel %vm394_vm4, %v362_v27, %v426_v36  ;;  %vm399_vm7 = vcmp.gt.f32.partialorder %v367_v31, 0.0  ;;  %536 = vst.msk [vmem:[#allocation2 + $0xc1] sm:$0xff] %vm475_vm0, %v457_v39 }
  0x1c   : > { %vm400_vm8 = vcmp.gt.f32.partialorder %v368_v32, 0.0  ;;  %537 = vst.msk [vmem:[#allocation2 + $0xc9] sm:$0xff] %vm475_vm0, %v458_v40  ;;  %v431_v44 = vmul.f32 0.2, %v367_v31  ;;  %v432_v45 = vmul.f32 0.2, %v368_v32  ;;  %v347_v2 = vadd.f32 %v2840_v14, %v308_v58 }
  0x1d   : > { %v459_v42 = vsel %vm395_vm5, %v363_v28, %v427_v37  ;;  %v460_v43 = vsel %vm396_vm6, %v364_v30, %v428_v38  ;;  %vm397_vm9 = vcmp.gt.f32.partialorder %v365_v47, 0.0  ;;  %v429_v57 = vmul.f32 0.2, %v365_v47  ;;  %v2534_v39 = vld [vmem:[%s2827_s23 + $0x68] sm:$0xff]  }
  0x1e   : > { %538 = vst.msk [vmem:[#allocation2 + $0xd9] sm:$0xff] %vm475_vm0, %v459_v42  ;;  %539 = vst.msk [vmem:[#allocation2 + $0xe1] sm:$0xff] %vm475_vm0, %v460_v43  ;;  %v463_v52 = vsel %vm399_vm7, %v367_v31, %v431_v44  ;;  %v464_v53 = vsel %vm400_vm8, %v368_v32, %v432_v45  ;;  %vm398_vm10 = vcmp.gt.f32.partialorder %v366_v56, 0.0  ;;  %v430_v63 = vmul.f32 0.2, %v366_v56 }
  0x1f   : > { %542 = vst.msk [vmem:[#allocation2 + $0x109] sm:$0xff] %vm475_vm0, %v463_v52  ;;  %543 = vst.msk [vmem:[#allocation2 + $0x111] sm:$0xff] %vm475_vm0, %v464_v53  ;;  %v461_v0 = vsel %vm397_vm9, %v365_v47, %v429_v57  ;;  %v348_v3 = vadd.f32 %v2840_v14, %v309_v59  ;;  %v369_v4 = vadd.f32 %v2840_v14, %v330_v60  ;;  %v2509_v6 = vunpack.c.h.bf16 %v2533_v50  ;;  %v2535_v52 = vld [vmem:[%s2827_s23 + $0x70] sm:$0xff]  }
  0x20   : > { %v772_v13 = vld [vmem:[#allocation2 + $0xa] sm:$0xff]  ;;  %540 = vst.msk [vmem:[#allocation2 + $0xf1] sm:$0xff] %vm475_vm0, %v461_v0  ;;  %v370_v5 = vadd.f32 %v2840_v14, %v331_v61  ;;  %v462_v10 = vsel %vm398_vm10, %v366_v56, %v430_v63  ;;  %vm379_vm11 = vcmp.gt.f32.partialorder %v347_v2, 0.0  ;;  %v411_v11 = vmul.f32 0.2, %v347_v2 }
  0x21   : > { %v807_v18 = vpack.c.bf16 %v772_v13, %v771_v7  ;;  %v332_v12 = vmul.f32 %v2508_v62, %v2832_v1  ;;  %541 = vst.msk [vmem:[#allocation2 + $0xf9] sm:$0xff] %vm475_vm0, %v462_v10  ;;  %vm380_vm12 = vcmp.gt.f32.partialorder %v348_v3, 0.0  ;;  %v333_v19 = vmul.f32 %v2509_v6, %v2832_v1 }
  0x22   : > { %v642_v9 = vld [vmem:[#allocation2 + $0xc1] sm:$0xff]  ;;  %v443_v23 = vsel %vm379_vm11, %v347_v2, %v411_v11  ;;  %vm401_vm13 = vcmp.gt.f32.partialorder %v369_v4, 0.0  ;;  %vm402_vm14 = vcmp.gt.f32.partialorder %v370_v5, 0.0  ;;  %v433_v29 = vmul.f32 0.2, %v369_v4 }
  0x23   : > { %843 = vrot.lane.b32.xlu0 %v807_v18, %s2734_s29  ;;  %v787_v7 = vld [vmem:[#allocation2 + $0xc2] sm:$0xff]  ;;  %v788_v8 = vld [vmem:[#allocation2 + $0xca] sm:$0xff]  ;;  %v412_v18 = vmul.f32 0.2, %v348_v3  ;;  %522 = vst.msk [vmem:[#allocation2 + $0x19] sm:$0xff] %vm475_vm0, %v443_v23  ;;  %v371_v32 = vadd.f32 %v2840_v14, %v332_v12  ;;  %v372_v33 = vadd.f32 %v2840_v14, %v333_v19  ;;  %v2464_v37 = vunpack.c.l.bf16 %v2522_v24 }
  0x24   : > { %v815_v13 = vpack.c.bf16 %v788_v8, %v787_v7  ;;  %v643_v15 = vld [vmem:[#allocation2 + $0xc9] sm:$0xff]  ;;  %v434_v31 = vmul.f32 0.2, %v370_v5  ;;  %v465_v36 = vsel %vm401_vm13, %v369_v4, %v433_v29  ;;  %v2465_v38 = vunpack.c.h.bf16 %v2522_v24 }
  0x25   : > { %v789_v16 = vld [vmem:[#allocation2 + $0xda] sm:$0xff]  ;;  %v790_v17 = vld [vmem:[#allocation2 + $0xe2] sm:$0xff]  ;;  %v670_v20 = vpack.c.bf16 %v643_v15, %v642_v9  ;;  %v444_v28 = vsel %vm380_vm12, %v348_v3, %v412_v18  ;;  %544 = vst.msk [vmem:[#allocation2 + $0x121] sm:$0xff] %vm475_vm0, %v465_v36  ;;  %vm403_vm15 = vcmp.gt.f32.partialorder %v371_v32, 0.0  ;;  %vm404_vm2 = vcmp.gt.f32.partialorder %v372_v33, 0.0 }
  0x26   : > { %v644_v21 = vld [vmem:[#allocation2 + $0xd9] sm:$0xff]  ;;  %v645_v22 = vld [vmem:[#allocation2 + $0xe1] sm:$0xff]  ;;  %859 = vrot.lane.b32.xlu1 %v815_v13, %s2734_s29  ;;  %v816_v25 = vpack.c.bf16 %v790_v17, %v789_v16  ;;  %v648_v26 = vld [vmem:[#allocation2 + $0x109] sm:$0xff]  ;;  %523 = vst.msk [vmem:[#allocation2 + $0x21] sm:$0xff] %vm475_vm0, %v444_v28  ;;  %v466_v41 = vsel %vm402_vm14, %v370_v5, %v434_v31  ;;  %v435_v42 = vmul.f32 0.2, %v371_v32  ;;  %v310_v44 = vmul.f32 %v2464_v37, %v2832_v1 }
  0x27   : > { %v649_v27 = vld [vmem:[#allocation2 + $0x111] sm:$0xff]  ;;  %714 = vrot.lane.b32.xlu0 %v670_v20, %s2733_s28  ;;  %v671_v30 = vpack.c.bf16 %v645_v22, %v644_v21  ;;  %545 = vst.msk [vmem:[#allocation2 + $0x129] sm:$0xff] %vm475_vm0, %v466_v41  ;;  %v436_v43 = vmul.f32 0.2, %v372_v33  ;;  %v311_v45 = vmul.f32 %v2465_v38, %v2832_v1  ;;  %v2468_v46 = vunpack.c.l.bf16 %v2523_v34 }
  0x28   : > { %v673_v35 = vpack.c.bf16 %v649_v27, %v648_v26  ;;  %v646_v40 = vld [vmem:[#allocation2 + $0xf1] sm:$0xff]  ;;  %v647_v47 = vld [vmem:[#allocation2 + $0xf9] sm:$0xff]  ;;  %v467_v48 = vsel %vm403_vm15, %v371_v32, %v435_v42  ;;  %v2469_v49 = vunpack.c.h.bf16 %v2523_v34  ;;  %v2512_v50 = vunpack.c.l.bf16 %v2534_v39 }
  0x29   : > { %v2513_v51 = vunpack.c.h.bf16 %v2534_v39  ;;  %v672_v53 = vpack.c.bf16 %v647_v47, %v646_v40  ;;  %v791_v54 = vld [vmem:[#allocation2 + $0xf2] sm:$0xff]  ;;  %v792_v55 = vld [vmem:[#allocation2 + $0xfa] sm:$0xff]  ;;  %v468_v56 = vsel %vm404_vm2, %v372_v33, %v436_v43  ;;  %546 = vst.msk [vmem:[#allocation2 + $0x139] sm:$0xff] %vm475_vm0, %v467_v48  ;;  %v349_v57 = vadd.f32 %v2840_v14, %v310_v44  ;;  %v793_v0 = vld [vmem:[#allocation2 + $0x10a] sm:$0xff] }
  0x2a   : > { %861 = vrot.lane.b32.xlu1 %v816_v25, %s2734_s29  ;;  %v628_v58 = vld [vmem:[#allocation2 + $0x19] sm:$0xff]  ;;  %547 = vst.msk [vmem:[#allocation2 + $0x141] sm:$0xff] %vm475_vm0, %v468_v56  ;;  %v350_v59 = vadd.f32 %v2840_v14, %v311_v45  ;;  %v312_v60 = vmul.f32 %v2468_v46, %v2832_v1  ;;  %v313_v61 = vmul.f32 %v2469_v49, %v2832_v1  ;;  %v2516_v4 = vunpack.c.l.bf16 %v2535_v52  ;;  %v2526_v56 = vld [vmem:[%s2827_s23 + $0x28] sm:$0xff]  }
  0x2b   : > { %716 = vrot.lane.b32.xlu0 %v671_v30, %s2733_s28  ;;  %v334_v62 = vmul.f32 %v2512_v50, %v2832_v1  ;;  %vm381_vm3 = vcmp.gt.f32.partialorder %v349_v57, 0.0  ;;  %v413_v2 = vmul.f32 0.2, %v349_v57  ;;  %v335_v3 = vmul.f32 %v2513_v51, %v2832_v1  ;;  %v794_v7 = vld [vmem:[#allocation2 + $0x112] sm:$0xff]  ;;  %v2525_v34 = vld [vmem:[%s2827_s23 + $0x20] sm:$0xff]  }
  0x2c   : > { %v817_v5 = vpack.c.bf16 %v792_v55, %v791_v54  ;;  %vm382_vm4 = vcmp.gt.f32.partialorder %v350_v59, 0.0  ;;  %v414_v10 = vmul.f32 0.2, %v350_v59  ;;  %v351_v12 = vadd.f32 %v2840_v14, %v312_v60  ;;  %v2918_v16 = vld [vmem:[#allocation2 + $0x121] sm:$0xff]  ;;  %v2524_v22 = vld [vmem:[%s2827_s23 + $0x18] sm:$0xff]  }
  0x2d   : > { %v629_v63 = vld [vmem:[#allocation2 + $0x21] sm:$0xff]  ;;  %v445_v11 = vsel %vm381_vm3, %v349_v57, %v413_v2  ;;  %v352_v13 = vadd.f32 %v2840_v14, %v313_v61  ;;  %v373_v15 = vadd.f32 %v2840_v14, %v334_v62  ;;  %v374_v19 = vadd.f32 %v2840_v14, %v335_v3  ;;  %v2527_v57 = vld [vmem:[%s2827_s23 + $0x30] sm:$0xff]  }
  0x2e   : > { %720 = vrot.lane.b32.xlu1 %v673_v35, %s2733_s28  ;;  %v663_v6 = vpack.c.bf16 %v629_v63, %v628_v58  ;;  %v773_v8 = vld [vmem:[#allocation2 + $0x1a] sm:$0xff]  ;;  %v774_v9 = vld [vmem:[#allocation2 + $0x22] sm:$0xff]  ;;  %v446_v18 = vsel %vm382_vm4, %v350_v59, %v414_v10  ;;  %524 = vst.msk [vmem:[#allocation2 + $0x31] sm:$0xff] %vm475_vm0, %v445_v11  ;;  %v2517_v20 = vunpack.c.h.bf16 %v2535_v52  ;;  %v336_v21 = vmul.f32 %v2516_v4, %v2832_v1  ;;  %v796_v42 = vld [vmem:[#allocation2 + $0x12a] sm:$0xff] }
  0x2f   : > { %718 = vrot.lane.b32.xlu0 %v672_v53, %s2733_s28  ;;  %v2920_v17 = vld [vmem:[#allocation2 + $0x129] sm:$0xff]  ;;  %v818_v23 = vpack.c.bf16 %v794_v7, %v793_v0  ;;  %v808_v24 = vpack.c.bf16 %v774_v9, %v773_v8  ;;  %525 = vst.msk [vmem:[#allocation2 + $0x39] sm:$0xff] %vm475_vm0, %v446_v18  ;;  %vm383_vm5 = vcmp.gt.f32.partialorder %v351_v12, 0.0  ;;  %vm384_vm6 = vcmp.gt.f32.partialorder %v352_v13, 0.0 }
  0x30   : > { %v652_v25 = vld [vmem:[#allocation2 + $0x139] sm:$0xff]  ;;  %v415_v26 = vmul.f32 0.2, %v351_v12  ;;  %v416_v27 = vmul.f32 0.2, %v352_v13  ;;  %vm405_vm7 = vcmp.gt.f32.partialorder %v373_v15, 0.0  ;;  %v337_v28 = vmul.f32 %v2517_v20, %v2832_v1 }
  0x31   : > { %v674_v29 = vpack.c.bf16 %v2920_v17, %v2918_v16  ;;  %v653_v30 = vld [vmem:[#allocation2 + $0x141] sm:$0xff]  ;;  %v437_v31 = vmul.f32 0.2, %v373_v15  ;;  %v375_v32 = vadd.f32 %v2840_v14, %v336_v21  ;;  %v2472_v33 = vunpack.c.l.bf16 %v2524_v22 }
  0x32   : > { %700 = vrot.lane.b32.xlu1 %v663_v6, %s2733_s28  ;;  %v675_v35 = vpack.c.bf16 %v653_v30, %v652_v25  ;;  %v447_v36 = vsel %vm383_vm5, %v351_v12, %v415_v26  ;;  %v448_v37 = vsel %vm384_vm6, %v352_v13, %v416_v27  ;;  %vm406_vm8 = vcmp.gt.f32.partialorder %v374_v19, 0.0  ;;  %v795_v41 = vld [vmem:[#allocation2 + $0x122] sm:$0xff]  ;;  %v797_v2 = vld [vmem:[#allocation2 + $0x13a] sm:$0xff] }
  0x33   : > { %863 = vrot.lane.b32.xlu0 %v817_v5, %s2734_s29  ;;  %526 = vst.msk [vmem:[#allocation2 + $0x49] sm:$0xff] %vm475_vm0, %v447_v36  ;;  %527 = vst.msk [vmem:[#allocation2 + $0x51] sm:$0xff] %vm475_vm0, %v448_v37  ;;  %v438_v38 = vmul.f32 0.2, %v374_v19  ;;  %v469_v39 = vsel %vm405_vm7, %v373_v15, %v437_v31  ;;  %v376_v40 = vadd.f32 %v2840_v14, %v337_v28  ;;  %vm407_vm9 = vcmp.gt.f32.partialorder %v375_v32, 0.0  ;;  %v798_v3 = vld [vmem:[#allocation2 + $0x142] sm:$0xff] }
  0x34   : > { %548 = vst.msk [vmem:[#allocation2 + $0x151] sm:$0xff] %vm475_vm0, %v469_v39  ;;  %v439_v43 = vmul.f32 0.2, %v375_v32  ;;  %v2473_v44 = vunpack.c.h.bf16 %v2524_v22  ;;  %v314_v45 = vmul.f32 %v2472_v33, %v2832_v1  ;;  %v2476_v46 = vunpack.c.l.bf16 %v2525_v34 }
  0x35   : > { %v630_v47 = vld [vmem:[#allocation2 + $0x31] sm:$0xff]  ;;  %v470_v48 = vsel %vm406_vm8, %v374_v19, %v438_v38  ;;  %vm408_vm10 = vcmp.gt.f32.partialorder %v376_v40, 0.0  ;;  %v440_v49 = vmul.f32 0.2, %v376_v40  ;;  %v2477_v50 = vunpack.c.h.bf16 %v2525_v34 }
  0x36   : > { %845 = vrot.lane.b32.xlu1 %v808_v24, %s2734_s29  ;;  %v631_v51 = vld [vmem:[#allocation2 + $0x39] sm:$0xff]  ;;  %549 = vst.msk [vmem:[#allocation2 + $0x159] sm:$0xff] %vm475_vm0, %v470_v48  ;;  %v471_v52 = vsel %vm407_vm9, %v375_v32, %v439_v43  ;;  %v315_v53 = vmul.f32 %v2473_v44, %v2832_v1  ;;  %v353_v54 = vadd.f32 %v2840_v14, %v314_v45  ;;  %v2480_v6 = vunpack.c.l.bf16 %v2526_v56 }
  0x37   : > { %865 = vrot.lane.b32.xlu0 %v818_v23, %s2734_s29  ;;  %v316_v55 = vmul.f32 %v2476_v46, %v2832_v1  ;;  %v819_v58 = vpack.c.bf16 %v796_v42, %v795_v41  ;;  %v664_v59 = vpack.c.bf16 %v631_v51, %v630_v47  ;;  %v472_v60 = vsel %vm408_vm10, %v376_v40, %v440_v49  ;;  %v2957_v4 = vld [vmem:[#allocation2 + $0x32] sm:$0xff]  ;;  %v2960_v11 = vld [vmem:[#allocation2 + $0x3a] sm:$0xff]  ;;  %v555_v41 = vld [vmem:[#allocation2 + $0x8] sm:$0xff] }
  0x38   : > { %550 = vst.msk [vmem:[#allocation2 + $0x169] sm:$0xff] %vm475_vm0, %v471_v52  ;;  %v317_v61 = vmul.f32 %v2477_v50, %v2832_v1  ;;  %551 = vst.msk [vmem:[#allocation2 + $0x171] sm:$0xff] %vm475_vm0, %v472_v60  ;;  %v354_v62 = vadd.f32 %v2840_v14, %v315_v53  ;;  %vm385_vm11 = vcmp.gt.f32.partialorder %v353_v54, 0.0  ;;  %v417_v63 = vmul.f32 0.2, %v353_v54  ;;  %v2536_v24 = vld [vmem:[%s2827_s23 + $0x78] sm:$0xff]  }
  0x39   : > { %v355_v0 = vadd.f32 %v2840_v14, %v316_v55  ;;  %v2481_v7 = vunpack.c.h.bf16 %v2526_v56  ;;  %v2484_v8 = vunpack.c.l.bf16 %v2527_v57  ;;  %v2485_v15 = vunpack.c.h.bf16 %v2527_v57  ;;  %v554_v42 = vld [vmem:[#allocation2] sm:$0xff]  ;;  %v571_v47 = vld [vmem:[#allocation2 + $0xc8] sm:$0xff]  ;;  %v572_v48 = vld [vmem:[#allocation2 + $0xd8] sm:$0xff] }
  0x3a   : > { %724 = vrot.lane.b32.xlu1 %v675_v35, %s2733_s28  ;;  %v356_v5 = vadd.f32 %v2840_v14, %v317_v61  ;;  %v632_v9 = vld [vmem:[#allocation2 + $0x49] sm:$0xff]  ;;  %v633_v10 = vld [vmem:[#allocation2 + $0x51] sm:$0xff]  ;;  %vm386_vm12 = vcmp.gt.f32.partialorder %v354_v62, 0.0  ;;  %v418_v12 = vmul.f32 0.2, %v354_v62  ;;  %v449_v13 = vsel %vm385_vm11, %v353_v54, %v417_v63  ;;  %v570_v46 = vld [vmem:[#allocation2 + $0xc0] sm:$0xff] }
  0x3b   : > { %722 = vrot.lane.b32.xlu0 %v674_v29, %s2733_s28  ;;  %v665_v16 = vpack.c.bf16 %v633_v10, %v632_v9  ;;  %v777_v17 = vld [vmem:[#allocation2 + $0x4a] sm:$0xff]  ;;  %v778_v18 = vld [vmem:[#allocation2 + $0x52] sm:$0xff]  ;;  %528 = vst.msk [vmem:[#allocation2 + $0x61] sm:$0xff] %vm475_vm0, %v449_v13  ;;  %vm387_vm13 = vcmp.gt.f32.partialorder %v355_v0, 0.0  ;;  %v419_v19 = vmul.f32 0.2, %v355_v0  ;;  %v820_v20 = vpack.c.bf16 %v798_v3, %v797_v2 }
  0x3c   : > { %vm388_vm14 = vcmp.gt.f32.partialorder %v356_v5, 0.0  ;;  %v450_v21 = vsel %vm386_vm12, %v354_v62, %v418_v12  ;;  %v420_v22 = vmul.f32 0.2, %v356_v5  ;;  %v318_v23 = vmul.f32 %v2480_v6, %v2832_v1  ;;  %v2967_v25 = vld [vmem:[#allocation2 + $0x151] sm:$0xff]  ;;  %v573_v50 = vld [vmem:[#allocation2 + $0xe0] sm:$0xff]  ;;  %v576_v55 = vld [vmem:[#allocation2 + $0x108] sm:$0xff] }
  0x3d   : > { %v2969_v26 = vld [vmem:[#allocation2 + $0x159] sm:$0xff]  ;;  %529 = vst.msk [vmem:[#allocation2 + $0x69] sm:$0xff] %vm475_vm0, %v450_v21  ;;  %v451_v27 = vsel %vm387_vm13, %v355_v0, %v419_v19  ;;  %v319_v28 = vmul.f32 %v2481_v7, %v2832_v1  ;;  %v320_v29 = vmul.f32 %v2484_v8, %v2832_v1  ;;  %v321_v30 = vmul.f32 %v2485_v15, %v2832_v1  ;;  %v577_v56 = vld [vmem:[#allocation2 + $0x110] sm:$0xff]  ;;  %v2719_v2 = vld [vmem:[%s3467_s3 + $0x8] ss:$0 sps:$4 sm:$0xff]  }
  0x3e   : > { %702 = vrot.lane.b32.xlu1 %v664_v59, %s2733_s28  ;;  %v809_v31 = vpack.c.bf16 %v2960_v11, %v2957_v4  ;;  %v810_v32 = vpack.c.bf16 %v778_v18, %v777_v17  ;;  %v452_v34 = vsel %vm388_vm14, %v356_v5, %v420_v22  ;;  %530 = vst.msk [vmem:[#allocation2 + $0x79] sm:$0xff] %vm475_vm0, %v451_v27  ;;  %v2520_v40 = vunpack.c.l.bf16 %v2536_v24  ;;  %v2995_v57 = vld [vmem:[#allocation2 + $0x152] sm:$0xff]  ;;  %v557_v10 = vld [vmem:[#allocation2 + $0x20] sm:$0xff]  ;;  %v579_v12 = vld [vmem:[#allocation2 + $0x128] sm:$0xff] }
  0x3f   : > { %867 = vrot.lane.b32.xlu0 %v819_v58, %s2734_s29  ;;  %v2977_v33 = vld [vmem:[#allocation2 + $0x169] sm:$0xff]  ;;  %v357_v35 = vadd.f32 %v2840_v14, %v318_v23  ;;  %v2983_v36 = vld [vmem:[#allocation2 + $0x171] sm:$0xff]  ;;  %531 = vst.msk [vmem:[#allocation2 + $0x81] sm:$0xff] %vm475_vm0, %v452_v34  ;;  %v358_v37 = vadd.f32 %v2840_v14, %v319_v28  ;;  %v359_v38 = vadd.f32 %v2840_v14, %v320_v29  ;;  %v2521_v54 = vunpack.c.h.bf16 %v2536_v24  ;;  %v2997_v58 = vld [vmem:[#allocation2 + $0x15a] sm:$0xff] }
  0x40   : > { %v360_v39 = vadd.f32 %v2840_v14, %v321_v30  ;;  %v676_v43 = vpack.c.bf16 %v2969_v26, %v2967_v25  ;;  %v677_v44 = vpack.c.bf16 %v2983_v36, %v2977_v33  ;;  %v338_v60 = vmul.f32 %v2520_v40, %v2832_v1  ;;  %v574_v63 = vld [vmem:[#allocation2 + $0xf0] sm:$0xff]  ;;  %v575_v0 = vld [vmem:[#allocation2 + $0xf8] sm:$0xff]  ;;  %v578_v11 = vld [vmem:[#allocation2 + $0x120] sm:$0xff] }
  0x41   : > { %vm389_vm15 = vcmp.gt.f32.partialorder %v357_v35, 0.0  ;;  %v421_v45 = vmul.f32 0.2, %v357_v35  ;;  %vm390_vm2 = vcmp.gt.f32.partialorder %v358_v37, 0.0  ;;  %v422_v49 = vmul.f32 0.2, %v358_v37 }
  0x42   : > { %704 = vrot.lane.b32.xlu1 %v665_v16, %s2733_s28  ;;  %vm391_vm3 = vcmp.gt.f32.partialorder %v359_v38, 0.0  ;;  %vm392_vm4 = vcmp.gt.f32.partialorder %v360_v39, 0.0  ;;  %v423_v52 = vmul.f32 0.2, %v359_v38  ;;  %v424_v53 = vmul.f32 0.2, %v360_v39 }
  0x43   : > { %869 = vrot.lane.b32.xlu0 %v820_v20, %s2734_s29  ;;  %v453_v51 = vsel %vm389_vm15, %v357_v35, %v421_v45  ;;  %v454_v59 = vsel %vm390_vm2, %v358_v37, %v422_v49  ;;  %v590_v61 = vpack.c.bf16 %v555_v41, %v554_v42  ;;  %v598_v62 = vpack.c.bf16 %v571_v47, %v570_v46  ;;  %v3005_v3 = vld [vmem:[#allocation2 + $0x61] sm:$0xff]  ;;  %v556_v9 = vld [vmem:[#allocation2 + $0x18] sm:$0xff]  ;;  %v3023_v19 = vld [vmem:[%s3467_s3 + $0xc] sm:$0xff]  }
  0x44   : > { %532 = vst.msk [vmem:[#allocation2 + $0x91] sm:$0xff] %vm475_vm0, %v453_v51  ;;  %v3007_v4 = vld [vmem:[#allocation2 + $0x69] sm:$0xff]  ;;  %533 = vst.msk [vmem:[#allocation2 + $0x99] sm:$0xff] %vm475_vm0, %v454_v59  ;;  %v455_v5 = vsel %vm391_vm3, %v359_v38, %v423_v52  ;;  %v456_v6 = vsel %vm392_vm4, %v360_v39, %v424_v53  ;;  %v339_v7 = vmul.f32 %v2521_v54, %v2832_v1  ;;  %v580_v16 = vld [vmem:[#allocation2 + $0x138] sm:$0xff]  ;;  %vm993_vm7 = vcmask 1043456  }
  0x45   : > { %v599_v8 = vpack.c.bf16 %v573_v50, %v572_v48  ;;  %v3013_v13 = vld [vmem:[#allocation2 + $0x79] sm:$0xff]  ;;  %534 = vst.msk [vmem:[#allocation2 + $0xa9] sm:$0xff] %vm475_vm0, %v455_v5  ;;  %535 = vst.msk [vmem:[#allocation2 + $0xb1] sm:$0xff] %vm475_vm0, %v456_v6  ;;  %v377_v15 = vadd.f32 %v2840_v14, %v338_v60  ;;  %v558_v1 = vld [vmem:[#allocation2 + $0x30] sm:$0xff]  ;;  %v821_v20 = vpack.c.bf16 %v2997_v58, %v2995_v57  ;;  %2704 = vmatprep.subr.msk.bf16.mxu1 %vm993_vm7, %v2719_v2  ;;  %vm752_vm8 = vcmask 130112  }
  0x46   : > { %849 = vrot.lane.b32.xlu1 %v810_v32, %s2734_s29  ;;  %608 = vst.msk [vmem:[#allocation3] sm:$0xff] %vm475_vm0, %v590_v61  ;;  %616 = vst.msk [vmem:[#allocation3 + $0x40] sm:$0xff] %vm475_vm0, %v598_v62  ;;  %v581_v17 = vld [vmem:[#allocation2 + $0x140] sm:$0xff]  ;;  %v559_v18 = vld [vmem:[#allocation2 + $0x38] sm:$0xff]  ;;  %v378_v22 = vadd.f32 %v2840_v14, %v339_v7  ;;  %v601_v23 = vpack.c.bf16 %v577_v56, %v576_v55  ;;  %v666_v29 = vpack.c.bf16 %v3007_v4, %v3005_v3  ;;  %vm897_vm9 = vcmask 195712  }
  0x47   : > { %847 = vrot.lane.b32.xlu0 %v809_v31, %s2734_s29  ;;  %v3027_v21 = vld [vmem:[#allocation2 + $0x81] sm:$0xff]  ;;  %617 = vst.msk [vmem:[#allocation3 + $0x48] sm:$0xff] %vm475_vm0, %v599_v8  ;;  %v561_v27 = vld [vmem:[#allocation2 + $0x50] sm:$0xff]  ;;  %vm409_vm5 = vcmp.gt.f32.partialorder %v377_v15, 0.0  ;;  %v441_v32 = vmul.f32 0.2, %v377_v15  ;;  %v600_v35 = vpack.c.bf16 %v575_v0, %v574_v63  ;;  %v591_v25 = vpack.c.bf16 %v557_v10, %v556_v9  ;;  %2703 = vmatprep.subr.msk.bf16.mxu0 %vm993_vm7, %v2719_v2 }
  0x48   : > { %v560_v24 = vld [vmem:[#allocation2 + $0x48] sm:$0xff]  ;;  %v582_v28 = vld [vmem:[#allocation2 + $0x150] sm:$0xff]  ;;  %v667_v31 = vpack.c.bf16 %v3027_v21, %v3013_v13  ;;  %v583_v33 = vld [vmem:[#allocation2 + $0x158] sm:$0xff]  ;;  %vm410_vm6 = vcmp.gt.f32.partialorder %v378_v22, 0.0  ;;  %v442_v34 = vmul.f32 0.2, %v378_v22  ;;  %v602_v26 = vpack.c.bf16 %v579_v12, %v578_v11 }
  0x49   : > { %v3034_v30 = vld [vmem:[#allocation2 + $0x16a] sm:$0xff]  ;;  %619 = vst.msk [vmem:[#allocation3 + $0x58] sm:$0xff] %vm475_vm0, %v601_v23  ;;  %v3046_v37 = vld [vmem:[%s3467_s3 + $0x18] sm:$0xff]   ;;  %v473_v39 = vsel %vm409_vm5, %v377_v15, %v441_v32  ;;  %v995_v40 = vsel %vm993_vm7, %v2719_v2, 0  ;;  %v562_v41 = vld [vmem:[#allocation2 + $0x60] sm:$0xff]  ;;  %v592_v45 = vpack.c.bf16 %v559_v18, %v558_v1  ;;  %v593_v48 = vpack.c.bf16 %v561_v27, %v560_v24 }
  0x4a   : > { %728 = vrot.lane.b32.xlu1 %v677_v44, %s2733_s28  ;;  %v584_v14 = vld [vmem:[#allocation2 + $0x168] sm:$0xff]  ;;  %v585_v36 = vld [vmem:[#allocation2 + $0x170] sm:$0xff]  ;;  %552 = vst.msk [vmem:[#allocation2 + $0x181] sm:$0xff] %vm475_vm0, %v473_v39  ;;  %618 = vst.msk [vmem:[#allocation3 + $0x50] sm:$0xff] %vm475_vm0, %v600_v35  ;;  %2702 = vmatpush3.bf16.msra.mxu1 %v995_v40  ;;  %v603_v44 = vpack.c.bf16 %v581_v17, %v580_v16  ;;  %v604_v49 = vpack.c.bf16 %v583_v33, %v582_v28  ;;  %vm944_vm10 = vcmask 195584   ;;  %vm2199_vm11 = vcmask 60416  }
  0x4b   : > { %726 = vrot.lane.b32.xlu0 %v676_v43, %s2733_s28  ;;  %v802_v38 = vld [vmem:[#allocation2 + $0x172] sm:$0xff]  ;;  %v563_v42 = vld [vmem:[#allocation2 + $0x68] sm:$0xff]  ;;  %v474_v43 = vsel %vm410_vm6, %v378_v22, %v442_v34  ;;  %2594 = vmatpush3.bf16.msra.mxu0 %v995_v40  ;;  %v565_v47 = vld [vmem:[#allocation2 + $0x80] sm:$0xff]  ;;  %609 = vst.msk [vmem:[#allocation3 + $0x8] sm:$0xff] %vm475_vm0, %v591_v25  ;;  %v605_v50 = vpack.c.bf16 %v585_v36, %v584_v14  ;;  %vm2068_vm12 = vcmask 1040384  }
  0x4c   : > { %v564_v46 = vld [vmem:[#allocation2 + $0x78] sm:$0xff]  ;;  %553 = vst.msk [vmem:[#allocation2 + $0x189] sm:$0xff] %vm475_vm0, %v474_v43  ;;  %620 = vst.msk [vmem:[#allocation3 + $0x60] sm:$0xff] %vm475_vm0, %v602_v26  ;;  %2627 = vmatprep.subr.bf16.mxu1 %v3023_v19  ;;  %v566_v51 = vld [vmem:[#allocation2 + $0x90] sm:$0xff]  ;;  %v822_v52 = vpack.c.bf16 %v802_v38, %v3034_v30  ;;  %2663 = vmatprep.subr.bf16.mxu0 %v3046_v37  ;;  %v594_v56 = vpack.c.bf16 %v563_v42, %v562_v41 }
  0x4d   : > { %v779_v53 = vld [vmem:[#allocation2 + $0x62] sm:$0xff]  ;;  %v781_v54 = vld [vmem:[#allocation2 + $0x7a] sm:$0xff]  ;;  %621 = vst.msk [vmem:[#allocation3 + $0x68] sm:$0xff] %vm475_vm0, %v603_v44  ;;  %610 = vst.msk [vmem:[#allocation3 + $0x10] sm:$0xff] %vm475_vm0, %v592_v45  ;;  %v595_v58 = vpack.c.bf16 %v565_v47, %v564_v46 }
  0x4e   : > { %706 = vrot.lane.b32.xlu1 %v666_v29, %s2733_s28  ;;  %v782_v55 = vld [vmem:[#allocation2 + $0x82] sm:$0xff]  ;;  %v780_v57 = vld [vmem:[#allocation2 + $0x6a] sm:$0xff]  ;;  %611 = vst.msk [vmem:[#allocation3 + $0x18] sm:$0xff] %vm475_vm0, %v593_v48  ;;  %622 = vst.msk [vmem:[#allocation3 + $0x70] sm:$0xff] %vm475_vm0, %v604_v49 }
  0x4f   : > { %871 = vrot.lane.b32.xlu0 %v821_v20, %s2734_s29  ;;  %623 = vst.msk [vmem:[#allocation3 + $0x78] sm:$0xff] %vm475_vm0, %v605_v50  ;;  %v567_v59 = vld [vmem:[#allocation2 + $0x98] sm:$0xff]  ;;  %v568_v60 = vld [vmem:[#allocation2 + $0xa8] sm:$0xff]  ;;  %612 = vst.msk [vmem:[#allocation3 + $0x20] sm:$0xff] %vm475_vm0, %v594_v56  ;;  %v812_v63 = vpack.c.bf16 %v782_v55, %v781_v54  ;;  %v811_v2 = vpack.c.bf16 %v780_v57, %v779_v53 }
  0x50   : > { %v596_v61 = vpack.c.bf16 %v567_v59, %v566_v51  ;;  %v569_v62 = vld [vmem:[#allocation2 + $0xb0] sm:$0xff]  ;;  %613 = vst.msk [vmem:[#allocation3 + $0x28] sm:$0xff] %vm475_vm0, %v595_v58  ;;  %v639_v6 = vld [vmem:[#allocation2 + $0x99] sm:$0xff]  ;;  %v806_v23 = vld [vmem:[#allocation2 + $0x1a2] sm:$0xff] }
  0x51   : > { %v597_v0 = vpack.c.bf16 %v569_v62, %v568_v60  ;;  %v640_v3 = vld [vmem:[#allocation2 + $0xa9] sm:$0xff]  ;;  %v641_v4 = vld [vmem:[#allocation2 + $0xb1] sm:$0xff]  ;;  %v784_v12 = vld [vmem:[#allocation2 + $0x9a] sm:$0xff] }
  0x52   : > { %708 = vrot.lane.b32.xlu1 %v667_v31, %s2733_s28  ;;  %614 = vst.msk [vmem:[#allocation3 + $0x30] sm:$0xff] %vm475_vm0, %v596_v61  ;;  %v638_v5 = vld [vmem:[#allocation2 + $0x91] sm:$0xff]  ;;  %v669_v7 = vpack.c.bf16 %v641_v4, %v640_v3  ;;  %v658_v1 = vld [vmem:[#allocation2 + $0x181] sm:$0xff]  ;;  %v660_v24 = vld [vmem:[#allocation2 + $0x199] sm:$0xff] }
  0x53   : > { %873 = vrot.lane.b32.xlu0 %v822_v52, %s2734_s29  ;;  %615 = vst.msk [vmem:[#allocation3 + $0x38] sm:$0xff] %vm475_vm0, %v597_v0  ;;  %v668_v8 = vpack.c.bf16 %v639_v6, %v638_v5  ;;  %v785_v9 = vld [vmem:[#allocation2 + $0xaa] sm:$0xff]  ;;  %v786_v10 = vld [vmem:[#allocation2 + $0xb2] sm:$0xff]  ;;  %v803_v16 = vld [vmem:[#allocation2 + $0x182] sm:$0xff] }
  0x54   : > { %v783_v11 = vld [vmem:[#allocation2 + $0x92] sm:$0xff]  ;;  %v814_v13 = vpack.c.bf16 %v786_v10, %v785_v9  ;;  %v804_v17 = vld [vmem:[#allocation2 + $0x18a] sm:$0xff]  ;;  %v805_v22 = vld [vmem:[#allocation2 + $0x19a] sm:$0xff] }
  0x55   : > { %v813_v15 = vpack.c.bf16 %v784_v12, %v783_v11  ;;  %v659_v18 = vld [vmem:[#allocation2 + $0x189] sm:$0xff]  ;;  %v823_v20 = vpack.c.bf16 %v804_v17, %v803_v16  ;;  %v661_v27 = vld [vmem:[#allocation2 + $0x1a1] sm:$0xff]  ;;  %v824_v28 = vpack.c.bf16 %v806_v23, %v805_v22  ;;  %v588_v34 = vld [vmem:[#allocation2 + $0x198] sm:$0xff] }
  0x56   : > { %853 = vrot.lane.b32.xlu1 %v812_v63, %s2734_s29  ;;  %v678_v21 = vpack.c.bf16 %v659_v18, %v658_v1  ;;  %v679_v29 = vpack.c.bf16 %v661_v27, %v660_v24  ;;  %v586_v30 = vld [vmem:[#allocation2 + $0x180] sm:$0xff]  ;;  %v587_v31 = vld [vmem:[#allocation2 + $0x188] sm:$0xff]  ;;  %v2722_v46 = vld [vmem:[%s3467_s3 + $0x14] ss:$0 sps:$4 sm:$0xff]  }
  0x57   : > { %851 = vrot.lane.b32.xlu0 %v811_v2, %s2734_s29  ;;  %v606_v32 = vpack.c.bf16 %v587_v31, %v586_v30  ;;  %v589_v35 = vld [vmem:[#allocation2 + $0x1a0] sm:$0xff]  ;;  %v1301_v50 = vsel %vm993_vm7, %v2722_v46, 0 }
  0x58   : > { %v607_v36 = vpack.c.bf16 %v589_v35, %v588_v34 }
  0x59   : > { %624 = vst.msk [vmem:[#allocation3 + $0x80] sm:$0xff] %vm475_vm0, %v606_v32 }
  0x5a   : > { %712 = vrot.lane.b32.xlu1 %v669_v7, %s2733_s28  ;;  %625 = vst.msk [vmem:[#allocation3 + $0x88] sm:$0xff] %vm475_vm0, %v607_v36 }
  0x5b   : > { %710 = vrot.lane.b32.xlu0 %v668_v8, %s2733_s28 }
  0x5e   : > { %857 = vrot.lane.b32.xlu1 %v814_v13, %s2734_s29 }
  0x5f   : > { %855 = vrot.lane.b32.xlu0 %v813_v15, %s2734_s29 }
  0x62   : > { %875 = vrot.lane.b32.xlu1 %v823_v20, %s2734_s29 }
  0x63   : > { %730 = vrot.lane.b32.xlu0 %v678_v21, %s2733_s28 }
  0x66   : > { %877 = vrot.lane.b32.xlu1 %v824_v28, %s2734_s29 }
  0x67   : > { %732 = vrot.lane.b32.xlu0 %v679_v29, %s2733_s28 }
  0x83   : > { %v699_v33 = vpop.permute.xlu1 %698 }
  0x84   : > { %753 = vst.msk [vmem:[#allocation3] sm:$0xff] %vm752_vm8, %v699_v33 }
  0x95   : > { %v844_v14 = vpop.permute.xlu0 %843 }
  0x96   : > { %898 = vst.msk [vmem:[#allocation3] sm:$0xff] %vm897_vm9, %v844_v14 }
  0x98   : > { %v860_v39 = vpop.permute.xlu1 %859 }
  0x99   : > { %v715_v40 = vpop.permute.xlu0 %714 }
  0x9a   : > { %761 = vst.msk [vmem:[#allocation3 + $0x40] sm:$0xff] %vm752_vm8, %v715_v40 }
  0x9b   : > { %906 = vst.msk [vmem:[#allocation3 + $0x40] sm:$0xff] %vm897_vm9, %v860_v39 }
  0x9c   : > { %v862_v25 = vpop.permute.xlu1 %861 }
  0x9d   : > { %v916_v38 = vld [vmem:[#allocation3] sm:$0xff]  ;;  %v717_v26 = vpop.permute.xlu0 %716 }
  0x9e   : > { %2595 = vmatprep.mubr.msk.bf16.mxu0 %vm944_vm10, %v916_v38  ;;  %762 = vst.msk [vmem:[#allocation3 + $0x48] sm:$0xff] %vm752_vm8, %v717_v26 }
  0x9f   : > { %907 = vst.msk [vmem:[#allocation3 + $0x48] sm:$0xff] %vm897_vm9, %v862_v25 }
  0xa0   : > { %v721_v41 = vpop.permute.xlu1 %720 }
  0xa1   : > { %764 = vst.msk [vmem:[#allocation3 + $0x58] sm:$0xff] %vm752_vm8, %v721_v41  ;;  %v719_v42 = vpop.permute.xlu0 %718 }
  0xa2   : > { %763 = vst.msk [vmem:[#allocation3 + $0x50] sm:$0xff] %vm752_vm8, %v719_v42  ;;  %v3094_v43 = vld [vmem:[#allocation3 + $0x40] sm:$0xff] }
  0xa3   : > { %2611 = vmatprep.mubr.msk.bf16.mxu1 %vm944_vm10, %v3094_v43 }
  0xa4   : > { %v701_v44 = vpop.permute.xlu1 %700 }
  0xa5   : > { %v864_v45 = vpop.permute.xlu0 %863  ;;  %754 = vst.msk [vmem:[#allocation3 + $0x8] sm:$0xff] %vm752_vm8, %v701_v44 }
  0xa6   : > { %908 = vst.msk [vmem:[#allocation3 + $0x50] sm:$0xff] %vm897_vm9, %v864_v45  ;;  %v3103_v47 = vld [vmem:[#allocation3 + $0x48] sm:$0xff] }
  0xa7   : > { %2612 = vmatmul.mubr.msk.bf16.vlgmr.msra.gmra.mrb[0].mxu1 %vm944_vm10, %v3103_v47 }
  0xa8   : > { %v846_v48 = vpop.permute.xlu1 %845  ;;  %2628 = vmatpush3.bf16.msra.mxu1 %v3023_v19  ;;  %v2723_v19 = vld [vmem:[%s3467_s3 + $0x20] ss:$0 sps:$4 sm:$0xff]  }
  0xa9   : > { %v866_v49 = vpop.permute.xlu0 %865  ;;  %899 = vst.msk [vmem:[#allocation3 + $0x8] sm:$0xff] %vm897_vm9, %v846_v48  ;;  %2705 = vmatprep.subr.msk.bf16.mxu1 %vm993_vm7, %v2722_v46  ;;  %v1639_v58 = vsel %vm993_vm7, %v2723_v19, 0 }
  0xaa   : > { %909 = vst.msk [vmem:[#allocation3 + $0x58] sm:$0xff] %vm897_vm9, %v866_v49 }
  0xac   : > { %v725_v51 = vpop.permute.xlu1 %724  ;;  %2630 = vmatpush3.bf16.msra.mxu1 %v1301_v50 }
  0xad   : > { %v723_v52 = vpop.permute.xlu0 %722  ;;  %v3112_v53 = vld [vmem:[#allocation3 + $0x50] sm:$0xff]  ;;  %766 = vst.msk [vmem:[#allocation3 + $0x68] sm:$0xff] %vm752_vm8, %v725_v51 }
  0xae   : > { %765 = vst.msk [vmem:[#allocation3 + $0x60] sm:$0xff] %vm752_vm8, %v723_v52  ;;  %2615 = vmatprep.mubr.msk.bf16.mxu1 %vm944_vm10, %v3112_v53 }
  0xb0   : > { %v703_v54 = vpop.permute.xlu1 %702  ;;  %v917_v55 = vld [vmem:[#allocation3 + $0x8] sm:$0xff] }
  0xb1   : > { %v868_v56 = vpop.permute.xlu0 %867  ;;  %v3121_v57 = vld [vmem:[#allocation3 + $0x58] sm:$0xff]  ;;  %755 = vst.msk [vmem:[#allocation3 + $0x10] sm:$0xff] %vm752_vm8, %v703_v54  ;;  %2596 = vmatmul.mubr.msk.bf16.vlgmr.msra.gmra.mrb[0].mxu0 %vm944_vm10, %v917_v55 }
  0xb2   : > { %910 = vst.msk [vmem:[#allocation3 + $0x60] sm:$0xff] %vm897_vm9, %v868_v56  ;;  %2616 = vmatmul.mubr.msk.bf16.gmra.mrb[4].mxu1 %vm944_vm10, %v3121_v57  ;;  %2664 = vmatpush3.bf16.msra.mxu0 %v3046_v37 }
  0xb3   : > { %2706 = vmatprep.subr.msk.bf16.mxu0 %vm993_vm7, %v2723_v19 }
  0xb4   : > { %v705_v59 = vpop.permute.xlu1 %704 }
  0xb5   : > { %v870_v60 = vpop.permute.xlu0 %869  ;;  %756 = vst.msk [vmem:[#allocation3 + $0x18] sm:$0xff] %vm752_vm8, %v705_v59 }
  0xb6   : > { %911 = vst.msk [vmem:[#allocation3 + $0x68] sm:$0xff] %vm897_vm9, %v870_v60  ;;  %2666 = vmatpush3.bf16.msra.mxu0 %v1639_v58 }
  0xb8   : > { %v850_v61 = vpop.permute.xlu1 %849 }
  0xb9   : > { %v848_v62 = vpop.permute.xlu0 %847  ;;  %v3133_v63 = vld [vmem:[#allocation3 + $0x60] sm:$0xff]  ;;  %901 = vst.msk [vmem:[#allocation3 + $0x18] sm:$0xff] %vm897_vm9, %v850_v61 }
  0xba   : > { %900 = vst.msk [vmem:[#allocation3 + $0x10] sm:$0xff] %vm897_vm9, %v848_v62  ;;  %2619 = vmatprep.mubr.msk.bf16.mxu1 %vm944_vm10, %v3133_v63 }
  0xbc   : > { %v729_v37 = vpop.permute.xlu1 %728 }
  0xbd   : > { %v727_v0 = vpop.permute.xlu0 %726  ;;  %v3139_v2 = vld [vmem:[#allocation3 + $0x68] sm:$0xff]  ;;  %768 = vst.msk [vmem:[#allocation3 + $0x78] sm:$0xff] %vm752_vm8, %v729_v37 }
  0xbe   : > { %767 = vst.msk [vmem:[#allocation3 + $0x70] sm:$0xff] %vm752_vm8, %v727_v0  ;;  %2620 = vmatmul.mubr.msk.bf16.gmra.mrb[8].mxu1 %vm944_vm10, %v3139_v2 }
  0xc0   : > { %v707_v3 = vpop.permute.xlu1 %706  ;;  %v919_v4 = vld [vmem:[#allocation3 + $0x18] sm:$0xff] }
  0xc1   : > { %v872_v5 = vpop.permute.xlu0 %871  ;;  %757 = vst.msk [vmem:[#allocation3 + $0x20] sm:$0xff] %vm752_vm8, %v707_v3  ;;  %v918_v6 = vld [vmem:[#allocation3 + $0x10] sm:$0xff] }
  0xc2   : > { %912 = vst.msk [vmem:[#allocation3 + $0x70] sm:$0xff] %vm897_vm9, %v872_v5  ;;  %2599 = vmatprep.mubr.msk.bf16.mxu0 %vm944_vm10, %v918_v6 }
  0xc3   : > { %2600 = vmatmul.mubr.msk.bf16.gmra.mrb[4].mxu0 %vm944_vm10, %v919_v4 }
  0xc4   : > { %v709_v7 = vpop.permute.xlu1 %708 }
  0xc5   : > { %v874_v8 = vpop.permute.xlu0 %873  ;;  %758 = vst.msk [vmem:[#allocation3 + $0x28] sm:$0xff] %vm752_vm8, %v709_v7 }
  0xc6   : > { %913 = vst.msk [vmem:[#allocation3 + $0x78] sm:$0xff] %vm897_vm9, %v874_v8 }
  0xc8   : > { %v854_v9 = vpop.permute.xlu1 %853 }
  0xc9   : > { %v852_v10 = vpop.permute.xlu0 %851  ;;  %v930_v11 = vld [vmem:[#allocation3 + $0x70] sm:$0xff]  ;;  %903 = vst.msk [vmem:[#allocation3 + $0x28] sm:$0xff] %vm897_vm9, %v854_v9 }
  0xca   : > { %902 = vst.msk [vmem:[#allocation3 + $0x20] sm:$0xff] %vm897_vm9, %v852_v10  ;;  %2623 = vmatprep.mubr.msk.bf16.mxu1 %vm944_vm10, %v930_v11 }
  0xcc   : > { %v713_v12 = vpop.permute.xlu1 %712 }
  0xcd   : > { %v711_v13 = vpop.permute.xlu0 %710  ;;  %v931_v15 = vld [vmem:[#allocation3 + $0x78] sm:$0xff]  ;;  %760 = vst.msk [vmem:[#allocation3 + $0x38] sm:$0xff] %vm752_vm8, %v713_v12 }
  0xce   : > { %759 = vst.msk [vmem:[#allocation3 + $0x30] sm:$0xff] %vm752_vm8, %v711_v13  ;;  %2624 = vmatmul.mubr.msk.bf16.gmra.mrb[12].mxu1 %vm944_vm10, %v931_v15 }
  0xcf   : > { %2631 = vmatprep.mubr.msk.bf16.mxu1 %vm944_vm10, %v917_v55 }
  0xd0   : > { %v858_v16 = vpop.permute.xlu1 %857  ;;  %v921_v17 = vld [vmem:[#allocation3 + $0x28] sm:$0xff] }
  0xd1   : > { %v856_v1 = vpop.permute.xlu0 %855  ;;  %905 = vst.msk [vmem:[#allocation3 + $0x38] sm:$0xff] %vm897_vm9, %v858_v16  ;;  %v920_v18 = vld [vmem:[#allocation3 + $0x20] sm:$0xff] }
  0xd2   : > { %904 = vst.msk [vmem:[#allocation3 + $0x30] sm:$0xff] %vm897_vm9, %v856_v1  ;;  %2603 = vmatprep.mubr.msk.bf16.mxu0 %vm944_vm10, %v920_v18 }
  0xd3   : > { %2604 = vmatmul.mubr.msk.bf16.gmra.mrb[8].mxu0 %vm944_vm10, %v921_v17 }
  0xd4   : > { %v876_v20 = vpop.permute.xlu1 %875 }
  0xd5   : > { %v731_v21 = vpop.permute.xlu0 %730 }
  0xd6   : > { %2632 = vmatmul.mubr.msk.bf16.vlgmr.msra.gmra.mrb[16].mxu1 %vm944_vm10, %v918_v6  ;;  %769 = vst.msk [vmem:[#allocation3 + $0x80] sm:$0xff] %vm752_vm8, %v731_v21 }
  0xd7   : > { %2635 = vmatprep.mubr.msk.bf16.mxu1 %vm944_vm10, %v919_v4  ;;  %914 = vst.msk [vmem:[#allocation3 + $0x80] sm:$0xff] %vm897_vm9, %v876_v20 }
  0xd8   : > { %v923_v22 = vld [vmem:[#allocation3 + $0x38] sm:$0xff]  ;;  %v878_v23 = vpop.permute.xlu1 %877 }
  0xd9   : > { %v922_v24 = vld [vmem:[#allocation3 + $0x30] sm:$0xff]  ;;  %v733_v27 = vpop.permute.xlu0 %732 }
  0xda   : > { %2607 = vmatprep.mubr.msk.bf16.mxu0 %vm944_vm10, %v922_v24  ;;  %770 = vst.msk [vmem:[#allocation3 + $0x88] sm:$0xff] %vm752_vm8, %v733_v27 }
  0xdb   : > { %2608 = vmatmul.mubr.msk.bf16.gmra.mrb[12].mxu0 %vm944_vm10, %v923_v22  ;;  %915 = vst.msk [vmem:[#allocation3 + $0x88] sm:$0xff] %vm897_vm9, %v878_v23 }
  0xdc   : > { %2667 = vmatprep.mubr.msk.bf16.mxu0 %vm944_vm10, %v918_v6 }
  0xde   : > { %2636 = vmatmul.mubr.msk.bf16.gmra.mrb[20].mxu1 %vm944_vm10, %v920_v18  ;;  %v1238_v28 = vld [vmem:[#allocation3 + $0x80] sm:$0xff] }
  0xdf   : > { %2639 = vmatprep.mubr.msk.bf16.mxu1 %vm944_vm10, %v921_v17 }
  0xe2   : > { %v1576_v29 = vld [vmem:[#allocation3 + $0x88] sm:$0xff] }
  0xe3   : > { %2668 = vmatmul.mubr.msk.bf16.vlgmr.msra.gmra.mrb[16].mxu0 %vm944_vm10, %v919_v4 }
  0xe4   : > { %2671 = vmatprep.mubr.msk.bf16.mxu0 %vm944_vm10, %v920_v18 }
  0xe6   : > { %2640 = vmatmul.mubr.msk.bf16.gmra.mrb[24].mxu1 %vm944_vm10, %v922_v24 }
  0xe7   : > { %2643 = vmatprep.mubr.msk.bf16.mxu1 %vm944_vm10, %v923_v22 }
  0xeb   : > { %2672 = vmatmul.mubr.msk.bf16.gmra.mrb[20].mxu0 %vm944_vm10, %v921_v17 }
  0xec   : > { %2675 = vmatprep.mubr.msk.bf16.mxu0 %vm944_vm10, %v922_v24 }
  0xee   : > { %2644 = vmatmul.mubr.msk.bf16.gmra.mrb[28].mxu1 %vm944_vm10, %v3094_v43 }
  0xef   : > { %2647 = vmatprep.mubr.msk.bf16.mxu1 %vm944_vm10, %v3103_v47 }
  0xf3   : > { %2676 = vmatmul.mubr.msk.bf16.gmra.mrb[24].mxu0 %vm944_vm10, %v923_v22 }
  0xf4   : > { %2679 = vmatprep.mubr.msk.bf16.mxu0 %vm944_vm10, %v3094_v43 }
  0xf6   : > { %2648 = vmatmul.mubr.msk.bf16.gmra.mrb[32].mxu1 %vm944_vm10, %v3112_v53 }
  0xf7   : > { %2651 = vmatprep.mubr.msk.bf16.mxu1 %vm944_vm10, %v3121_v57 }
  0xfb   : > { %2680 = vmatmul.mubr.msk.bf16.gmra.mrb[28].mxu0 %vm944_vm10, %v3103_v47 }
  0xfc   : > { %2683 = vmatprep.mubr.msk.bf16.mxu0 %vm944_vm10, %v3112_v53 }
  0xfe   : > { %2652 = vmatmul.mubr.msk.bf16.gmra.mrb[36].mxu1 %vm944_vm10, %v3133_v63 }
  0xff   : > { %2655 = vmatprep.mubr.msk.bf16.mxu1 %vm944_vm10, %v3139_v2 }
 0x103   : > { %2684 = vmatmul.mubr.msk.bf16.gmra.mrb[32].mxu0 %vm944_vm10, %v3121_v57 }
 0x104   : > { %2687 = vmatprep.mubr.msk.bf16.mxu0 %vm944_vm10, %v3133_v63 }
 0x106   : > { %2656 = vmatmul.mubr.msk.bf16.gmra.mrb[40].mxu1 %vm944_vm10, %v930_v11 }
 0x107   : > { %2659 = vmatprep.mubr.msk.bf16.mxu1 %vm944_vm10, %v931_v15 }
 0x10b   : > { %2688 = vmatmul.mubr.msk.bf16.gmra.mrb[36].mxu0 %vm944_vm10, %v3139_v2 }
 0x10c   : > { %2691 = vmatprep.mubr.msk.bf16.mxu0 %vm944_vm10, %v930_v11 }
 0x10e   : > { %2660 = vmatmul.mubr.msk.bf16.gmra.mrb[44].mxu1 %vm944_vm10, %v1238_v28 }
 0x113   : > { %2692 = vmatmul.mubr.msk.bf16.gmra.mrb[40].mxu0 %vm944_vm10, %v931_v15 }
 0x114   : > { %2695 = vmatprep.mubr.msk.bf16.mxu0 %vm944_vm10, %v1238_v28 }
 0x11b   : > { %2696 = vmatmul.mubr.msk.bf16.gmra.mrb[44].mxu0 %vm944_vm10, %v1576_v29 }
 0x17a   : > { %v2613_v30 = vpop.f32.mrb[0].mxu1 }
 0x17b   : > { %1176 = vst.msk [vmem:[#allocation4 + $0x90] sm:$0xff] %vm475_vm0, %v2613_v30  ;;  %v1095_v31 = vpop.f32.mrb[1].mxu1 }
 0x17c   : > { %1174 = vst.msk [vmem:[#allocation4 + $0x80] sm:$0xff] %vm475_vm0, %v1095_v31  ;;  %v2614_v32 = vpop.f32.mrb[2].mxu1 }
 0x17d   : > { %1177 = vst.msk [vmem:[#allocation4 + $0x98] sm:$0xff] %vm475_vm0, %v2614_v32  ;;  %v1098_v33 = vpop.f32.mrb[3].mxu1 }
 0x17e   : > { %1175 = vst.msk [vmem:[#allocation4 + $0x88] sm:$0xff] %vm475_vm0, %v1098_v33 }
 0x184   : > { %v2597_v14 = vpop.f32.mrb[0].mxu0 }
 0x185   : > { %1160 = vst.msk [vmem:[#allocation4 + $0x10] sm:$0xff] %vm475_vm0, %v2597_v14  ;;  %v2617_v34 = vpop.f32.mrb[4].mxu1  ;;  %v1031_v35 = vpop.f32.mrb[1].mxu0 }
 0x186   : > { %1180 = vst.msk [vmem:[#allocation4 + $0xb0] sm:$0xff] %vm475_vm0, %v2617_v34  ;;  %1158 = vst.msk [vmem:[#allocation4] sm:$0xff] %vm475_vm0, %v1031_v35  ;;  %v1111_v36 = vpop.f32.mrb[5].mxu1  ;;  %v2598_v38 = vpop.f32.mrb[2].mxu0 }
 0x187   : > { %1178 = vst.msk [vmem:[#allocation4 + $0xa0] sm:$0xff] %vm475_vm0, %v1111_v36  ;;  %1161 = vst.msk [vmem:[#allocation4 + $0x18] sm:$0xff] %vm475_vm0, %v2598_v38  ;;  %v2618_v39 = vpop.f32.mrb[6].mxu1  ;;  %v1034_v40 = vpop.f32.mrb[3].mxu0 }
 0x188   : > { %1181 = vst.msk [vmem:[#allocation4 + $0xb8] sm:$0xff] %vm475_vm0, %v2618_v39  ;;  %1159 = vst.msk [vmem:[#allocation4 + $0x8] sm:$0xff] %vm475_vm0, %v1034_v40  ;;  %v1114_v25 = vpop.f32.mrb[7].mxu1 }
 0x189   : > { %1179 = vst.msk [vmem:[#allocation4 + $0xa8] sm:$0xff] %vm475_vm0, %v1114_v25 }
 0x18c   : > { %v1192_v55 = vld [vmem:[#allocation4 + $0x10] sm:$0xff] }
 0x18d   : > { %v1190_v58 = vld [vmem:[#allocation4] sm:$0xff] }
 0x18e   : > { %v1193_v61 = vld [vmem:[#allocation4 + $0x18] sm:$0xff] }
 0x18f   : > { %v1191_v37 = vld [vmem:[#allocation4 + $0x8] sm:$0xff] }
 0x191   : > { %v2621_v26 = vpop.f32.mrb[8].mxu1 }
 0x192   : > { %1184 = vst.msk [vmem:[#allocation4 + $0xd0] sm:$0xff] %vm475_vm0, %v2621_v26  ;;  %v1127_v41 = vpop.f32.mrb[9].mxu1 }
 0x193   : > { %1182 = vst.msk [vmem:[#allocation4 + $0xc0] sm:$0xff] %vm475_vm0, %v1127_v41  ;;  %v2622_v42 = vpop.f32.mrb[10].mxu1 }
 0x194   : > { %1185 = vst.msk [vmem:[#allocation4 + $0xd8] sm:$0xff] %vm475_vm0, %v2622_v42  ;;  %v1130_v43 = vpop.f32.mrb[11].mxu1 }
 0x195   : > { %1183 = vst.msk [vmem:[#allocation4 + $0xc8] sm:$0xff] %vm475_vm0, %v1130_v43 }
 0x196   : > { %v2601_v44 = vpop.f32.mrb[4].mxu0 }
 0x197   : > { %1164 = vst.msk [vmem:[#allocation4 + $0x30] sm:$0xff] %vm475_vm0, %v2601_v44  ;;  %v1047_v45 = vpop.f32.mrb[5].mxu0 }
 0x198   : > { %1162 = vst.msk [vmem:[#allocation4 + $0x20] sm:$0xff] %vm475_vm0, %v1047_v45  ;;  %v2602_v46 = vpop.f32.mrb[6].mxu0 }
 0x199   : > { %1165 = vst.msk [vmem:[#allocation4 + $0x38] sm:$0xff] %vm475_vm0, %v2602_v46  ;;  %v1050_v47 = vpop.f32.mrb[7].mxu0 }
 0x19a   : > { %1163 = vst.msk [vmem:[#allocation4 + $0x28] sm:$0xff] %vm475_vm0, %v1050_v47 }
 0x19e   : > { %v1196_v7 = vld [vmem:[#allocation4 + $0x30] sm:$0xff] }
 0x19f   : > { %v1194_v10 = vld [vmem:[#allocation4 + $0x20] sm:$0xff] }
 0x1a0   : > { %v1197_v13 = vld [vmem:[#allocation4 + $0x38] sm:$0xff] }
 0x1a1   : > { %v2625_v48 = vpop.f32.mrb[12].mxu1  ;;  %v1195_v17 = vld [vmem:[#allocation4 + $0x28] sm:$0xff] }
 0x1a2   : > { %1188 = vst.msk [vmem:[#allocation4 + $0xf0] sm:$0xff] %vm475_vm0, %v2625_v48  ;;  %v1143_v49 = vpop.f32.mrb[13].mxu1 }
 0x1a3   : > { %1186 = vst.msk [vmem:[#allocation4 + $0xe0] sm:$0xff] %vm475_vm0, %v1143_v49  ;;  %v2626_v50 = vpop.f32.mrb[14].mxu1 }
 0x1a4   : > { %1189 = vst.msk [vmem:[#allocation4 + $0xf8] sm:$0xff] %vm475_vm0, %v2626_v50  ;;  %v1146_v51 = vpop.f32.mrb[15].mxu1 }
 0x1a5   : > { %1187 = vst.msk [vmem:[#allocation4 + $0xe8] sm:$0xff] %vm475_vm0, %v1146_v51 }
 0x1a6   : > { %v2605_v52 = vpop.f32.mrb[8].mxu0 }
 0x1a7   : > { %1168 = vst.msk [vmem:[#allocation4 + $0x50] sm:$0xff] %vm475_vm0, %v2605_v52  ;;  %v1063_v53 = vpop.f32.mrb[9].mxu0 }
 0x1a8   : > { %1166 = vst.msk [vmem:[#allocation4 + $0x40] sm:$0xff] %vm475_vm0, %v1063_v53  ;;  %v2606_v19 = vpop.f32.mrb[10].mxu0 }
 0x1a9   : > { %1169 = vst.msk [vmem:[#allocation4 + $0x58] sm:$0xff] %vm475_vm0, %v2606_v19  ;;  %v1066_v54 = vpop.f32.mrb[11].mxu0  ;;  %v2633_v56 = vpop.f32.mrb[16].mxu1 }
 0x1aa   : > { %1167 = vst.msk [vmem:[#allocation4 + $0x48] sm:$0xff] %vm475_vm0, %v1066_v54  ;;  %v1466_v57 = vadd.f32 %v2633_v56, %v1192_v55  ;;  %v1337_v59 = vpop.f32.mrb[17].mxu1 }
 0x1ab   : > { %v1464_v60 = vadd.f32 %v1337_v59, %v1190_v58  ;;  %v2634_v62 = vpop.f32.mrb[18].mxu1 }
 0x1ac   : > { %1498 = vst.msk [vmem:[#allocation4 + $0x10] sm:$0xff] %vm475_vm0, %v1466_v57  ;;  %v1467_v63 = vadd.f32 %v2634_v62, %v1193_v61  ;;  %v1340_v0 = vpop.f32.mrb[19].mxu1 }
 0x1ad   : > { %1496 = vst.msk [vmem:[#allocation4] sm:$0xff] %vm475_vm0, %v1464_v60  ;;  %v1465_v2 = vadd.f32 %v1340_v0, %v1191_v37 }
 0x1ae   : > { %1499 = vst.msk [vmem:[#allocation4 + $0x18] sm:$0xff] %vm475_vm0, %v1467_v63  ;;  %v2609_v3 = vpop.f32.mrb[12].mxu0  ;;  %v1200_v31 = vld [vmem:[#allocation4 + $0x50] sm:$0xff] }
 0x1af   : > { %1497 = vst.msk [vmem:[#allocation4 + $0x8] sm:$0xff] %vm475_vm0, %v1465_v2  ;;  %1172 = vst.msk [vmem:[#allocation4 + $0x70] sm:$0xff] %vm475_vm0, %v2609_v3  ;;  %v1079_v4 = vpop.f32.mrb[13].mxu0  ;;  %v1198_v36 = vld [vmem:[#allocation4 + $0x40] sm:$0xff] }
 0x1b0   : > { %1170 = vst.msk [vmem:[#allocation4 + $0x60] sm:$0xff] %vm475_vm0, %v1079_v4  ;;  %v2610_v5 = vpop.f32.mrb[14].mxu0  ;;  %v1201_v40 = vld [vmem:[#allocation4 + $0x58] sm:$0xff] }
 0x1b1   : > { %1173 = vst.msk [vmem:[#allocation4 + $0x78] sm:$0xff] %vm475_vm0, %v2610_v5  ;;  %v1082_v6 = vpop.f32.mrb[15].mxu0  ;;  %v2637_v8 = vpop.f32.mrb[20].mxu1  ;;  %v1199_v41 = vld [vmem:[#allocation4 + $0x48] sm:$0xff] }
 0x1b2   : > { %1171 = vst.msk [vmem:[#allocation4 + $0x68] sm:$0xff] %vm475_vm0, %v1082_v6  ;;  %v1470_v9 = vadd.f32 %v2637_v8, %v1196_v7  ;;  %v1353_v11 = vpop.f32.mrb[21].mxu1 }
 0x1b3   : > { %v1468_v12 = vadd.f32 %v1353_v11, %v1194_v10  ;;  %v2638_v15 = vpop.f32.mrb[22].mxu1  ;;  %v1530_v20 = vld [vmem:[#allocation4 + $0x10] sm:$0xff] }
 0x1b4   : > { %1502 = vst.msk [vmem:[#allocation4 + $0x30] sm:$0xff] %vm475_vm0, %v1470_v9  ;;  %v1471_v16 = vadd.f32 %v2638_v15, %v1197_v13  ;;  %v1356_v1 = vpop.f32.mrb[23].mxu1  ;;  %v1528_v23 = vld [vmem:[#allocation4] sm:$0xff] }
 0x1b5   : > { %1500 = vst.msk [vmem:[#allocation4 + $0x20] sm:$0xff] %vm475_vm0, %v1468_v12  ;;  %v1469_v18 = vadd.f32 %v1356_v1, %v1195_v17  ;;  %v1531_v28 = vld [vmem:[#allocation4 + $0x18] sm:$0xff] }
 0x1b6   : > { %1503 = vst.msk [vmem:[#allocation4 + $0x38] sm:$0xff] %vm475_vm0, %v1471_v16  ;;  %v2669_v21 = vpop.f32.mrb[16].mxu0  ;;  %v1529_v33 = vld [vmem:[#allocation4 + $0x8] sm:$0xff]  ;;  %v1204_v55 = vld [vmem:[#allocation4 + $0x70] sm:$0xff] }
 0x1b7   : > { %1501 = vst.msk [vmem:[#allocation4 + $0x28] sm:$0xff] %vm475_vm0, %v1469_v18  ;;  %v1804_v22 = vadd.f32 %v2669_v21, %v1530_v20  ;;  %v1675_v24 = vpop.f32.mrb[17].mxu0  ;;  %v1202_v9 = vld [vmem:[#allocation4 + $0x60] sm:$0xff] }
 0x1b8   : > { %v1802_v27 = vadd.f32 %v1675_v24, %v1528_v23  ;;  %v2670_v29 = vpop.f32.mrb[18].mxu0  ;;  %v1205_v16 = vld [vmem:[#allocation4 + $0x78] sm:$0xff] }
 0x1b9   : > { %1836 = vst.msk [vmem:[#allocation4 + $0x10] sm:$0xff] %vm475_vm0, %v1804_v22  ;;  %v1805_v30 = vadd.f32 %v2670_v29, %v1531_v28  ;;  %v2641_v32 = vpop.f32.mrb[24].mxu1  ;;  %v1678_v14 = vpop.f32.mrb[19].mxu0  ;;  %v1203_v17 = vld [vmem:[#allocation4 + $0x68] sm:$0xff] }
 0x1ba   : > { %1834 = vst.msk [vmem:[#allocation4] sm:$0xff] %vm475_vm0, %v1802_v27  ;;  %v1474_v34 = vadd.f32 %v2641_v32, %v1200_v31  ;;  %v1803_v35 = vadd.f32 %v1678_v14, %v1529_v33  ;;  %v1369_v38 = vpop.f32.mrb[25].mxu1 }
 0x1bb   : > { %1837 = vst.msk [vmem:[#allocation4 + $0x18] sm:$0xff] %vm475_vm0, %v1805_v30  ;;  %v1472_v39 = vadd.f32 %v1369_v38, %v1198_v36  ;;  %v2642_v25 = vpop.f32.mrb[26].mxu1  ;;  %v1534_v44 = vld [vmem:[#allocation4 + $0x30] sm:$0xff] }
 0x1bc   : > { %1506 = vst.msk [vmem:[#allocation4 + $0x50] sm:$0xff] %vm475_vm0, %v1474_v34  ;;  %1835 = vst.msk [vmem:[#allocation4 + $0x8] sm:$0xff] %vm475_vm0, %v1803_v35  ;;  %v1475_v26 = vadd.f32 %v2642_v25, %v1201_v40  ;;  %v1372_v42 = vpop.f32.mrb[27].mxu1  ;;  %v1532_v47 = vld [vmem:[#allocation4 + $0x20] sm:$0xff] }
 0x1bd   : > { %1504 = vst.msk [vmem:[#allocation4 + $0x40] sm:$0xff] %vm475_vm0, %v1472_v39  ;;  %v1473_v43 = vadd.f32 %v1372_v42, %v1199_v41  ;;  %v1535_v51 = vld [vmem:[#allocation4 + $0x38] sm:$0xff] }
 0x1be   : > { %1507 = vst.msk [vmem:[#allocation4 + $0x58] sm:$0xff] %vm475_vm0, %v1475_v26  ;;  %v2673_v45 = vpop.f32.mrb[20].mxu0  ;;  %v1533_v8 = vld [vmem:[#allocation4 + $0x28] sm:$0xff] }
 0x1bf   : > { %1505 = vst.msk [vmem:[#allocation4 + $0x48] sm:$0xff] %vm475_vm0, %v1473_v43  ;;  %v1808_v46 = vadd.f32 %v2673_v45, %v1534_v44  ;;  %v1691_v48 = vpop.f32.mrb[21].mxu0 }
 0x1c0   : > { %v1868_v49 = vld [vmem:[#allocation4 + $0x10] sm:$0xff]  ;;  %v1806_v50 = vadd.f32 %v1691_v48, %v1532_v47  ;;  %v2674_v52 = vpop.f32.mrb[22].mxu0 }
 0x1c1   : > { %v2428_v53 = vpack.c.bf16 %v1868_v49, %v1868_v49  ;;  %v1866_v19 = vld [vmem:[#allocation4] sm:$0xff]  ;;  %1840 = vst.msk [vmem:[#allocation4 + $0x30] sm:$0xff] %vm475_vm0, %v1808_v46  ;;  %v1809_v54 = vadd.f32 %v2674_v52, %v1535_v51  ;;  %v2645_v56 = vpop.f32.mrb[28].mxu1  ;;  %v1694_v57 = vpop.f32.mrb[23].mxu0  ;;  %v1901_v63 = vsel %vm475_vm0, %v1868_v49, 0.0  ;;  %v1969_v37 = vmul.f32 %v1868_v49, %v1868_v49 }
 0x1c2   : > { %v1967_v58 = vmul.f32 %v1866_v19, %v1866_v19  ;;  %v2426_v59 = vpack.c.bf16 %v1866_v19, %v1866_v19  ;;  %v1869_v60 = vld [vmem:[#allocation4 + $0x18] sm:$0xff]  ;;  %1838 = vst.msk [vmem:[#allocation4 + $0x20] sm:$0xff] %vm475_vm0, %v1806_v50  ;;  %v1478_v61 = vadd.f32 %v2645_v56, %v1204_v55  ;;  %v1385_v62 = vpop.f32.mrb[29].mxu1  ;;  %v1898_v4 = vsel %vm475_vm0, %v1866_v19, 0.0 }
 0x1c3   : > { %2202 = vst.msk [vmem:[%s3264_s22 + $0x8] sm:$0xf] %vm2199_vm11, %v2428_v53  ;;  %v2429_v0 = vpack.c.bf16 %v1869_v60, %v1869_v60  ;;  %v1867_v2 = vld [vmem:[#allocation4 + $0x8] sm:$0xff]  ;;  %v2646_v3 = vpop.f32.mrb[30].mxu1  ;;  %v1970_v11 = vmul.f32 %v1869_v60, %v1869_v60  ;;  %v1807_v13 = vadd.f32 %v1694_v57, %v1533_v8  ;;  %v1476_v15 = vadd.f32 %v1385_v62, %v1202_v9  ;;  %v1538_v22 = vld [vmem:[#allocation4 + $0x50] sm:$0xff] }
 0x1c4   : > { %1841 = vst.msk [vmem:[#allocation4 + $0x38] sm:$0xff] %vm475_vm0, %v1809_v54  ;;  %v1899_v5 = vsel %vm475_vm0, %v1867_v2, 0.0  ;;  %v1968_v6 = vmul.f32 %v1867_v2, %v1867_v2  ;;  %v2427_v7 = vpack.c.bf16 %v1867_v2, %v1867_v2  ;;  %1510 = vst.msk [vmem:[#allocation4 + $0x70] sm:$0xff] %vm475_vm0, %v1478_v61  ;;  %v1388_v10 = vpop.f32.mrb[31].mxu1  ;;  %v1999_v1 = vsel %vm475_vm0, %v1967_v58, 0.0  ;;  %v1536_v29 = vld [vmem:[#allocation4 + $0x40] sm:$0xff] }
 0x1c5   : > { %2200 = vst.msk [vmem:[%s3264_s22] sm:$0xf] %vm2199_vm11, %v2426_v59  ;;  %2203 = vst.msk [vmem:[%s3264_s22 + $0xc] sm:$0xf] %vm2199_vm11, %v2429_v0  ;;  %v1900_v12 = vadd.f32 %v1899_v5, %v1898_v4  ;;  %v1479_v20 = vadd.f32 %v2646_v3, %v1205_v16  ;;  %v1477_v21 = vadd.f32 %v1388_v10, %v1203_v17  ;;  %v2002_v31 = vsel %vm475_vm0, %v1969_v37, 0.0  ;;  %v1539_v47 = vld [vmem:[#allocation4 + $0x58] sm:$0xff] }
 0x1c6   : > { %v2000_v18 = vsel %vm475_vm0, %v1968_v6, 0.0  ;;  %2201 = vst.msk [vmem:[%s3264_s22 + $0x4] sm:$0xf] %vm2199_vm11, %v2427_v7  ;;  %v2677_v23 = vpop.f32.mrb[24].mxu0  ;;  %v1903_v34 = vsel %vm475_vm0, %v1869_v60, 0.0  ;;  %v2004_v35 = vsel %vm475_vm0, %v1970_v11, 0.0 }
 0x1c7   : > { %v1902_v24 = vadd.f32 %v1901_v63, %v1900_v12  ;;  %v2001_v27 = vadd.f32 %v2000_v18, %v1999_v1  ;;  %1839 = vst.msk [vmem:[#allocation4 + $0x28] sm:$0xff] %vm475_vm0, %v1807_v13  ;;  %1508 = vst.msk [vmem:[#allocation4 + $0x60] sm:$0xff] %vm475_vm0, %v1476_v15  ;;  %v1812_v28 = vadd.f32 %v2677_v23, %v1538_v22  ;;  %v1707_v30 = vpop.f32.mrb[25].mxu0  ;;  %v1208_v53 = vld [vmem:[#allocation4 + $0x90] sm:$0xff]  ;;  %v1537_v19 = vld [vmem:[#allocation4 + $0x48] sm:$0xff] }
 0x1c8   : > { %v1872_v32 = vld [vmem:[#allocation4 + $0x30] sm:$0xff]  ;;  %1511 = vst.msk [vmem:[#allocation4 + $0x78] sm:$0xff] %vm475_vm0, %v1479_v20  ;;  %1509 = vst.msk [vmem:[#allocation4 + $0x68] sm:$0xff] %vm475_vm0, %v1477_v21  ;;  %v1810_v33 = vadd.f32 %v1707_v30, %v1536_v29  ;;  %v2678_v14 = vpop.f32.mrb[26].mxu0  ;;  %v1206_v59 = vld [vmem:[#allocation4 + $0x80] sm:$0xff] }
 0x1c9   : > { %v2003_v36 = vadd.f32 %v2002_v31, %v2001_v27  ;;  %v2432_v38 = vpack.c.bf16 %v1872_v32, %v1872_v32  ;;  %v1870_v39 = vld [vmem:[#allocation4 + $0x20] sm:$0xff]  ;;  %1844 = vst.msk [vmem:[#allocation4 + $0x50] sm:$0xff] %vm475_vm0, %v1812_v28  ;;  %v2649_v40 = vpop.f32.mrb[32].mxu1  ;;  %v1710_v25 = vpop.f32.mrb[27].mxu0  ;;  %v1904_v26 = vadd.f32 %v1903_v34, %v1902_v24  ;;  %v1813_v52 = vadd.f32 %v2678_v14, %v1539_v47  ;;  %v1209_v60 = vld [vmem:[#allocation4 + $0x98] sm:$0xff]  ;;  %v1207_v61 = vld [vmem:[#allocation4 + $0x88] sm:$0xff] }
 0x1ca   : > { %v1905_v41 = vsel %vm475_vm0, %v1870_v39, 0.0  ;;  %v1971_v42 = vmul.f32 %v1870_v39, %v1870_v39  ;;  %v2430_v43 = vpack.c.bf16 %v1870_v39, %v1870_v39  ;;  %1842 = vst.msk [vmem:[#allocation4 + $0x40] sm:$0xff] %vm475_vm0, %v1810_v33  ;;  %v1401_v45 = vpop.f32.mrb[33].mxu1  ;;  %v1973_v55 = vmul.f32 %v1872_v32, %v1872_v32  ;;  %v1212_v31 = vld [vmem:[#allocation4 + $0xb0] sm:$0xff] }
 0x1cb   : > { %v1873_v44 = vld [vmem:[#allocation4 + $0x38] sm:$0xff]  ;;  %2206 = vst.msk [vmem:[%s3264_s22 + $0x18] sm:$0xf] %vm2199_vm11, %v2432_v38  ;;  %v2005_v46 = vadd.f32 %v2004_v35, %v2003_v36  ;;  %v2650_v48 = vpop.f32.mrb[34].mxu1  ;;  %v1906_v49 = vadd.f32 %v1905_v41, %v1904_v26  ;;  %v1482_v57 = vadd.f32 %v2649_v40, %v1208_v53  ;;  %v1811_v58 = vadd.f32 %v1710_v25, %v1537_v19  ;;  %v1542_v3 = vld [vmem:[#allocation4 + $0x70] sm:$0xff]  ;;  %v1210_v41 = vld [vmem:[#allocation4 + $0xa0] sm:$0xff] }
 0x1cc   : > { %v2006_v50 = vsel %vm475_vm0, %v1971_v42, 0.0  ;;  %2204 = vst.msk [vmem:[%s3264_s22 + $0x10] sm:$0xf] %vm2199_vm11, %v2430_v43  ;;  %v2433_v51 = vpack.c.bf16 %v1873_v44, %v1873_v44  ;;  %v1404_v54 = vpop.f32.mrb[35].mxu1  ;;  %v1974_v56 = vmul.f32 %v1873_v44, %v1873_v44  ;;  %v1480_v37 = vadd.f32 %v1401_v45, %v1206_v59  ;;  %v1213_v42 = vld [vmem:[#allocation4 + $0xb8] sm:$0xff]  ;;  %v1211_v43 = vld [vmem:[#allocation4 + $0xa8] sm:$0xff] }
 0x1cd   : > { %v2007_v62 = vadd.f32 %v2006_v50, %v2005_v46  ;;  %1845 = vst.msk [vmem:[#allocation4 + $0x58] sm:$0xff] %vm475_vm0, %v1813_v52  ;;  %v1483_v0 = vadd.f32 %v2650_v48, %v1209_v60  ;;  %v1481_v2 = vadd.f32 %v1404_v54, %v1207_v61  ;;  %1514 = vst.msk [vmem:[#allocation4 + $0x90] sm:$0xff] %vm475_vm0, %v1482_v57  ;;  %v1909_v11 = vsel %vm475_vm0, %v1872_v32, 0.0 }
 0x1ce   : > { %2207 = vst.msk [vmem:[%s3264_s22 + $0x1c] sm:$0xf] %vm2199_vm11, %v2433_v51  ;;  %v1871_v63 = vld [vmem:[#allocation4 + $0x28] sm:$0xff]  ;;  %v2681_v4 = vpop.f32.mrb[28].mxu0  ;;  %v1540_v9 = vld [vmem:[#allocation4 + $0x60] sm:$0xff]  ;;  %v2010_v17 = vsel %vm475_vm0, %v1973_v55, 0.0 }
 0x1cf   : > { %v1907_v5 = vsel %vm475_vm0, %v1871_v63, 0.0  ;;  %v1972_v6 = vmul.f32 %v1871_v63, %v1871_v63  ;;  %v2431_v7 = vpack.c.bf16 %v1871_v63, %v1871_v63  ;;  %1843 = vst.msk [vmem:[#allocation4 + $0x48] sm:$0xff] %vm475_vm0, %v1811_v58  ;;  %v1816_v8 = vadd.f32 %v2681_v4, %v1542_v3  ;;  %v1723_v10 = vpop.f32.mrb[29].mxu0  ;;  %1512 = vst.msk [vmem:[#allocation4 + $0x80] sm:$0xff] %vm475_vm0, %v1480_v37  ;;  %v1543_v30 = vld [vmem:[#allocation4 + $0x78] sm:$0xff]  ;;  %v1541_v36 = vld [vmem:[#allocation4 + $0x68] sm:$0xff] }
 0x1d0   : > { %v1908_v12 = vadd.f32 %v1907_v5, %v1906_v49  ;;  %v3305_v13 = vld [vmem:[#allocation4 + $0x50] sm:$0xff]  ;;  %1515 = vst.msk [vmem:[#allocation4 + $0x98] sm:$0xff] %vm475_vm0, %v1483_v0  ;;  %1513 = vst.msk [vmem:[#allocation4 + $0x88] sm:$0xff] %vm475_vm0, %v1481_v2  ;;  %v1814_v15 = vadd.f32 %v1723_v10, %v1540_v9  ;;  %v2682_v16 = vpop.f32.mrb[30].mxu0  ;;  %v1911_v1 = vsel %vm475_vm0, %v1873_v44, 0.0  ;;  %v2012_v24 = vsel %vm475_vm0, %v1974_v56, 0.0 }
 0x1d1   : > { %v2008_v18 = vsel %vm475_vm0, %v1972_v6, 0.0  ;;  %2205 = vst.msk [vmem:[%s3264_s22 + $0x14] sm:$0xf] %vm2199_vm11, %v2431_v7  ;;  %v2436_v20 = vpack.c.bf16 %v3305_v13, %v3305_v13  ;;  %v1874_v21 = vld [vmem:[#allocation4 + $0x40] sm:$0xff]  ;;  %v2653_v22 = vpop.f32.mrb[36].mxu1  ;;  %v1726_v23 = vpop.f32.mrb[31].mxu0  ;;  %v1817_v34 = vadd.f32 %v2682_v16, %v1543_v30  ;;  %v1977_v40 = vmul.f32 %v3305_v13, %v3305_v13 }
 0x1d2   : > { %1848 = vst.msk [vmem:[#allocation4 + $0x70] sm:$0xff] %vm475_vm0, %v1816_v8  ;;  %v1910_v27 = vadd.f32 %v1909_v11, %v1908_v12  ;;  %v2009_v28 = vadd.f32 %v2008_v18, %v2007_v62  ;;  %v1975_v29 = vmul.f32 %v1874_v21, %v1874_v21  ;;  %1846 = vst.msk [vmem:[#allocation4 + $0x60] sm:$0xff] %vm475_vm0, %v1814_v15  ;;  %v1417_v32 = vpop.f32.mrb[37].mxu1  ;;  %v1913_v33 = vsel %vm475_vm0, %v1874_v21, 0.0 }
 0x1d3   : > { %2210 = vst.msk [vmem:[%s3264_s22 + $0x28] sm:$0xf] %vm2199_vm11, %v2436_v20  ;;  %v2434_v14 = vpack.c.bf16 %v1874_v21, %v1874_v21  ;;  %v1486_v35 = vadd.f32 %v2653_v22, %v1212_v31  ;;  %v2654_v38 = vpop.f32.mrb[38].mxu1  ;;  %v1815_v26 = vadd.f32 %v1726_v23, %v1541_v36  ;;  %v1484_v47 = vadd.f32 %v1417_v32, %v1210_v41  ;;  %v1216_v20 = vld [vmem:[#allocation4 + $0xd0] sm:$0xff] }
 0x1d4   : > { %v2011_v39 = vadd.f32 %v2010_v17, %v2009_v28  ;;  %v1912_v25 = vadd.f32 %v1911_v1, %v1910_v27  ;;  %v1420_v44 = vpop.f32.mrb[39].mxu1  ;;  %v2014_v45 = vsel %vm475_vm0, %v1975_v29, 0.0  ;;  %v1877_v46 = vld [vmem:[#allocation4 + $0x58] sm:$0xff]  ;;  %1849 = vst.msk [vmem:[#allocation4 + $0x78] sm:$0xff] %vm475_vm0, %v1817_v34  ;;  %v1487_v48 = vadd.f32 %v2654_v38, %v1213_v42  ;;  %v1546_v57 = vld [vmem:[#allocation4 + $0x90] sm:$0xff] }
 0x1d5   : > { %2208 = vst.msk [vmem:[%s3264_s22 + $0x20] sm:$0xf] %vm2199_vm11, %v2434_v14  ;;  %v1485_v49 = vadd.f32 %v1420_v44, %v1211_v43  ;;  %v2437_v19 = vpack.c.bf16 %v1877_v46, %v1877_v46  ;;  %v1978_v60 = vmul.f32 %v1877_v46, %v1877_v46  ;;  %v1917_v0 = vsel %vm475_vm0, %v3305_v13, 0.0 }
 0x1d6   : > { %1518 = vst.msk [vmem:[#allocation4 + $0xb0] sm:$0xff] %vm475_vm0, %v1486_v35  ;;  %v1914_v50 = vadd.f32 %v1913_v33, %v1912_v25  ;;  %v2013_v51 = vadd.f32 %v2012_v24, %v2011_v39  ;;  %v1875_v52 = vld [vmem:[#allocation4 + $0x48] sm:$0xff]  ;;  %1847 = vst.msk [vmem:[#allocation4 + $0x68] sm:$0xff] %vm475_vm0, %v1815_v26  ;;  %v2685_v53 = vpop.f32.mrb[32].mxu0  ;;  %v2018_v2 = vsel %vm475_vm0, %v1977_v40, 0.0  ;;  %v1919_v8 = vsel %vm475_vm0, %v1877_v46, 0.0 }
 0x1d7   : > { %v1915_v54 = vsel %vm475_vm0, %v1875_v52, 0.0  ;;  %v1976_v55 = vmul.f32 %v1875_v52, %v1875_v52  ;;  %v2435_v56 = vpack.c.bf16 %v1875_v52, %v1875_v52  ;;  %1516 = vst.msk [vmem:[#allocation4 + $0xa0] sm:$0xff] %vm475_vm0, %v1484_v47  ;;  %1519 = vst.msk [vmem:[#allocation4 + $0xb8] sm:$0xff] %vm475_vm0, %v1487_v48  ;;  %v1739_v58 = vpop.f32.mrb[33].mxu0  ;;  %v1820_v63 = vadd.f32 %v2685_v53, %v1546_v57  ;;  %v1544_v12 = vld [vmem:[#allocation4 + $0x80] sm:$0xff]  ;;  %v1547_v13 = vld [vmem:[#allocation4 + $0x98] sm:$0xff] }
 0x1d8   : > { %1517 = vst.msk [vmem:[#allocation4 + $0xa8] sm:$0xff] %vm475_vm0, %v1485_v49  ;;  %v2015_v59 = vadd.f32 %v2014_v45, %v2013_v51  ;;  %v1916_v61 = vadd.f32 %v1915_v54, %v1914_v50  ;;  %v2686_v37 = vpop.f32.mrb[34].mxu0  ;;  %v1818_v1 = vadd.f32 %v1739_v58, %v1544_v12  ;;  %v2020_v22 = vsel %vm475_vm0, %v1978_v60, 0.0  ;;  %v1545_v29 = vld [vmem:[#allocation4 + $0x88] sm:$0xff]  ;;  %v1214_v40 = vld [vmem:[#allocation4 + $0xc0] sm:$0xff]  ;;  %v1217_v25 = vld [vmem:[#allocation4 + $0xd8] sm:$0xff] }
 0x1d9   : > { %v3335_v62 = vld [vmem:[#allocation4 + $0x70] sm:$0xff]  ;;  %2211 = vst.msk [vmem:[%s3264_s22 + $0x2c] sm:$0xf] %vm2199_vm11, %v2437_v19  ;;  %v2016_v3 = vsel %vm475_vm0, %v1976_v55, 0.0  ;;  %2209 = vst.msk [vmem:[%s3264_s22 + $0x24] sm:$0xf] %vm2199_vm11, %v2435_v56  ;;  %v1821_v18 = vadd.f32 %v2686_v37, %v1547_v13 }
 0x1da   : > { %v2440_v4 = vpack.c.bf16 %v3335_v62, %v3335_v62  ;;  %v1878_v5 = vld [vmem:[#allocation4 + $0x60] sm:$0xff]  ;;  %v2657_v6 = vpop.f32.mrb[40].mxu1  ;;  %v1742_v7 = vpop.f32.mrb[35].mxu0  ;;  %v1918_v9 = vadd.f32 %v1917_v0, %v1916_v61  ;;  %v2017_v10 = vadd.f32 %v2016_v3, %v2015_v59  ;;  %1852 = vst.msk [vmem:[#allocation4 + $0x90] sm:$0xff] %vm475_vm0, %v1820_v63  ;;  %v1981_v31 = vmul.f32 %v3335_v62, %v3335_v62  ;;  %v1215_v45 = vld [vmem:[#allocation4 + $0xc8] sm:$0xff] }
 0x1db   : > { %v1979_v11 = vmul.f32 %v1878_v5, %v1878_v5  ;;  %v1433_v15 = vpop.f32.mrb[41].mxu1  ;;  %v1921_v16 = vsel %vm475_vm0, %v1878_v5, 0.0  ;;  %v2438_v17 = vpack.c.bf16 %v1878_v5, %v1878_v5  ;;  %v1881_v27 = vld [vmem:[#allocation4 + $0x78] sm:$0xff]  ;;  %v1490_v28 = vadd.f32 %v2657_v6, %v1216_v20  ;;  %1850 = vst.msk [vmem:[#allocation4 + $0x80] sm:$0xff] %vm475_vm0, %v1818_v1  ;;  %1853 = vst.msk [vmem:[#allocation4 + $0x98] sm:$0xff] %vm475_vm0, %v1821_v18  ;;  %v1218_v3 = vld [vmem:[#allocation4 + $0xe0] sm:$0xff] }
 0x1dc   : > { %2214 = vst.msk [vmem:[%s3264_s22 + $0x38] sm:$0xf] %vm2199_vm11, %v2440_v4  ;;  %v2658_v21 = vpop.f32.mrb[42].mxu1  ;;  %v2019_v23 = vadd.f32 %v2018_v2, %v2017_v10  ;;  %v1920_v24 = vadd.f32 %v1919_v8, %v1918_v9  ;;  %v2441_v33 = vpack.c.bf16 %v1881_v27, %v1881_v27  ;;  %v1819_v34 = vadd.f32 %v1742_v7, %v1545_v29  ;;  %v1221_v9 = vld [vmem:[#allocation4 + $0xf8] sm:$0xff] }
 0x1dd   : > { %v1436_v30 = vpop.f32.mrb[43].mxu1  ;;  %v2022_v32 = vsel %vm475_vm0, %v1979_v11, 0.0  ;;  %2212 = vst.msk [vmem:[%s3264_s22 + $0x30] sm:$0xf] %vm2199_vm11, %v2438_v17  ;;  %v1879_v14 = vld [vmem:[#allocation4 + $0x68] sm:$0xff]  ;;  %v1982_v41 = vmul.f32 %v1881_v27, %v1881_v27  ;;  %v1488_v43 = vadd.f32 %v1433_v15, %v1214_v40  ;;  %v1491_v44 = vadd.f32 %v2658_v21, %v1217_v25  ;;  %v1550_v51 = vld [vmem:[#allocation4 + $0xb0] sm:$0xff] }
 0x1de   : > { %v1922_v35 = vadd.f32 %v1921_v16, %v1920_v24  ;;  %v2021_v36 = vadd.f32 %v2020_v22, %v2019_v23  ;;  %v1923_v38 = vsel %vm475_vm0, %v1879_v14, 0.0  ;;  %v1980_v39 = vmul.f32 %v1879_v14, %v1879_v14  ;;  %1522 = vst.msk [vmem:[#allocation4 + $0xd0] sm:$0xff] %vm475_vm0, %v1490_v28  ;;  %v2689_v26 = vpop.f32.mrb[36].mxu0  ;;  %1851 = vst.msk [vmem:[#allocation4 + $0x88] sm:$0xff] %vm475_vm0, %v1819_v34  ;;  %v1548_v52 = vld [vmem:[#allocation4 + $0xa0] sm:$0xff]  ;;  %v1551_v53 = vld [vmem:[#allocation4 + $0xb8] sm:$0xff] }
 0x1df   : > { %2215 = vst.msk [vmem:[%s3264_s22 + $0x3c] sm:$0xf] %vm2199_vm11, %v2441_v33  ;;  %v2439_v42 = vpack.c.bf16 %v1879_v14, %v1879_v14  ;;  %v1755_v46 = vpop.f32.mrb[37].mxu0  ;;  %v1489_v50 = vadd.f32 %v1436_v30, %v1215_v45  ;;  %v1925_v54 = vsel %vm475_vm0, %v3335_v62, 0.0  ;;  %v1824_v56 = vadd.f32 %v2689_v26, %v1550_v51  ;;  %v1220_v62 = vld [vmem:[#allocation4 + $0xf0] sm:$0xff]  ;;  %v1549_v2 = vld [vmem:[#allocation4 + $0xa8] sm:$0xff] }
 0x1e0   : > { %v2023_v47 = vadd.f32 %v2022_v32, %v2021_v36  ;;  %v1924_v48 = vadd.f32 %v1923_v38, %v1922_v35  ;;  %v2024_v49 = vsel %vm475_vm0, %v1980_v39, 0.0  ;;  %v2690_v19 = vpop.f32.mrb[38].mxu0  ;;  %1520 = vst.msk [vmem:[#allocation4 + $0xc0] sm:$0xff] %vm475_vm0, %v1488_v43  ;;  %1523 = vst.msk [vmem:[#allocation4 + $0xd8] sm:$0xff] %vm475_vm0, %v1491_v44  ;;  %v1822_v57 = vadd.f32 %v1755_v46, %v1548_v52  ;;  %v1219_v34 = vld [vmem:[#allocation4 + $0xe8] sm:$0xff] }
 0x1e1   : > { %2213 = vst.msk [vmem:[%s3264_s22 + $0x34] sm:$0xf] %vm2199_vm11, %v2439_v42  ;;  %v1884_v55 = vld [vmem:[#allocation4 + $0x90] sm:$0xff]  ;;  %v1825_v58 = vadd.f32 %v2690_v19, %v1551_v53  ;;  %v2661_v59 = vpop.f32.mrb[44].mxu1  ;;  %v1758_v60 = vpop.f32.mrb[39].mxu0  ;;  %v2026_v61 = vsel %vm475_vm0, %v1981_v31, 0.0 }
 0x1e2   : > { %v1927_v63 = vsel %vm475_vm0, %v1881_v27, 0.0  ;;  %v1926_v37 = vadd.f32 %v1925_v54, %v1924_v48  ;;  %v2025_v0 = vadd.f32 %v2024_v49, %v2023_v47  ;;  %1521 = vst.msk [vmem:[#allocation4 + $0xc8] sm:$0xff] %vm475_vm0, %v1489_v50  ;;  %v1449_v4 = vpop.f32.mrb[45].mxu1  ;;  %v2444_v5 = vpack.c.bf16 %v1884_v55, %v1884_v55  ;;  %1856 = vst.msk [vmem:[#allocation4 + $0xb0] sm:$0xff] %vm475_vm0, %v1824_v56  ;;  %v1882_v13 = vld [vmem:[#allocation4 + $0x80] sm:$0xff]  ;;  %v1885_v16 = vld [vmem:[#allocation4 + $0x98] sm:$0xff] }
 0x1e3   : > { %1854 = vst.msk [vmem:[#allocation4 + $0xa0] sm:$0xff] %vm475_vm0, %v1822_v57  ;;  %1857 = vst.msk [vmem:[#allocation4 + $0xb8] sm:$0xff] %vm475_vm0, %v1825_v58  ;;  %v1494_v6 = vadd.f32 %v2661_v59, %v1220_v62  ;;  %v1823_v7 = vadd.f32 %v1758_v60, %v1549_v2  ;;  %v1492_v8 = vadd.f32 %v1449_v4, %v1218_v3  ;;  %v2662_v10 = vpop.f32.mrb[46].mxu1  ;;  %v2028_v11 = vsel %vm475_vm0, %v1982_v41, 0.0 }
 0x1e4   : > { %v2027_v12 = vadd.f32 %v2026_v61, %v2025_v0  ;;  %v1928_v15 = vadd.f32 %v1927_v63, %v1926_v37  ;;  %v1495_v17 = vadd.f32 %v2662_v10, %v1221_v9  ;;  %v1452_v1 = vpop.f32.mrb[47].mxu1  ;;  %v1933_v18 = vsel %vm475_vm0, %v1884_v55, 0.0  ;;  %2218 = vst.msk [vmem:[%s3264_s22 + $0x48] sm:$0xf] %vm2199_vm11, %v2444_v5 }
 0x1e5   : > { %v1929_v20 = vsel %vm475_vm0, %v1882_v13, 0.0  ;;  %v1983_v21 = vmul.f32 %v1882_v13, %v1882_v13  ;;  %v2442_v22 = vpack.c.bf16 %v1882_v13, %v1882_v13  ;;  %1526 = vst.msk [vmem:[#allocation4 + $0xf0] sm:$0xff] %vm475_vm0, %v1494_v6  ;;  %1855 = vst.msk [vmem:[#allocation4 + $0xa8] sm:$0xff] %vm475_vm0, %v1823_v7  ;;  %v1985_v23 = vmul.f32 %v1884_v55, %v1884_v55  ;;  %v1883_v29 = vld [vmem:[#allocation4 + $0x88] sm:$0xff]  ;;  %v1554_v25 = vld [vmem:[#allocation4 + $0xd0] sm:$0xff] }
 0x1e6   : > { %1524 = vst.msk [vmem:[#allocation4 + $0xe0] sm:$0xff] %vm475_vm0, %v1492_v8  ;;  %v1930_v24 = vadd.f32 %v1929_v20, %v1928_v15  ;;  %v2029_v27 = vadd.f32 %v2028_v11, %v2027_v12  ;;  %v2445_v28 = vpack.c.bf16 %v1885_v16, %v1885_v16  ;;  %1527 = vst.msk [vmem:[#allocation4 + $0xf8] sm:$0xff] %vm475_vm0, %v1495_v17  ;;  %v2693_v30 = vpop.f32.mrb[40].mxu0  ;;  %v1931_v32 = vsel %vm475_vm0, %v1883_v29, 0.0 }
 0x1e7   : > { %v2030_v31 = vsel %vm475_vm0, %v1983_v21, 0.0  ;;  %2216 = vst.msk [vmem:[%s3264_s22 + $0x40] sm:$0xf] %vm2199_vm11, %v2442_v22  ;;  %v1984_v33 = vmul.f32 %v1883_v29, %v1883_v29  ;;  %v2443_v14 = vpack.c.bf16 %v1883_v29, %v1883_v29  ;;  %v1771_v35 = vpop.f32.mrb[41].mxu0  ;;  %v1986_v38 = vmul.f32 %v1885_v16, %v1885_v16  ;;  %v1552_v26 = vld [vmem:[#allocation4 + $0xc0] sm:$0xff]  ;;  %v1555_v41 = vld [vmem:[#allocation4 + $0xd8] sm:$0xff] }
 0x1e8   : > { %v2031_v36 = vadd.f32 %v2030_v31, %v2029_v27  ;;  %2219 = vst.msk [vmem:[%s3264_s22 + $0x4c] sm:$0xf] %vm2199_vm11, %v2445_v28  ;;  %v1932_v39 = vadd.f32 %v1931_v32, %v1930_v24  ;;  %v1493_v40 = vadd.f32 %v1452_v1, %v1219_v34  ;;  %v2694_v42 = vpop.f32.mrb[42].mxu0  ;;  %v1828_v44 = vadd.f32 %v2693_v30, %v1554_v25 }
 0x1e9   : > { %v2032_v43 = vsel %vm475_vm0, %v1984_v33, 0.0  ;;  %2217 = vst.msk [vmem:[%s3264_s22 + $0x44] sm:$0xf] %vm2199_vm11, %v2443_v14  ;;  %v1826_v45 = vadd.f32 %v1771_v35, %v1552_v26  ;;  %v1829_v46 = vadd.f32 %v2694_v42, %v1555_v41  ;;  %v1553_v47 = vld [vmem:[#allocation4 + $0xc8] sm:$0xff]  ;;  %v1774_v48 = vpop.f32.mrb[43].mxu0  ;;  %v1888_v51 = vld [vmem:[#allocation4 + $0xb0] sm:$0xff] }
 0x1ea   : > { %v1934_v49 = vadd.f32 %v1933_v18, %v1932_v39  ;;  %v2033_v50 = vadd.f32 %v2032_v43, %v2031_v36  ;;  %v1886_v52 = vld [vmem:[#allocation4 + $0xa0] sm:$0xff]  ;;  %v1889_v53 = vld [vmem:[#allocation4 + $0xb8] sm:$0xff]  ;;  %1525 = vst.msk [vmem:[#allocation4 + $0xe8] sm:$0xff] %vm475_vm0, %v1493_v40  ;;  %v1827_v19 = vadd.f32 %v1774_v48, %v1553_v47  ;;  %v2034_v54 = vsel %vm475_vm0, %v1985_v23, 0.0  ;;  %1860 = vst.msk [vmem:[#allocation4 + $0xd0] sm:$0xff] %vm475_vm0, %v1828_v44 }
 0x1eb   : > { %v1935_v55 = vsel %vm475_vm0, %v1885_v16, 0.0  ;;  %v2448_v56 = vpack.c.bf16 %v1888_v51, %v1888_v51  ;;  %v1937_v57 = vsel %vm475_vm0, %v1886_v52, 0.0  ;;  %1858 = vst.msk [vmem:[#allocation4 + $0xc0] sm:$0xff] %vm475_vm0, %v1826_v45  ;;  %1861 = vst.msk [vmem:[#allocation4 + $0xd8] sm:$0xff] %vm475_vm0, %v1829_v46  ;;  %v1987_v60 = vmul.f32 %v1886_v52, %v1886_v52 }
 0x1ec   : > { %v2035_v58 = vadd.f32 %v2034_v54, %v2033_v50  ;;  %v1936_v59 = vadd.f32 %v1935_v55, %v1934_v49  ;;  %v2446_v61 = vpack.c.bf16 %v1886_v52, %v1886_v52  ;;  %v1887_v63 = vld [vmem:[#allocation4 + $0xa8] sm:$0xff]  ;;  %1859 = vst.msk [vmem:[#allocation4 + $0xc8] sm:$0xff] %vm475_vm0, %v1827_v19  ;;  %v2036_v37 = vsel %vm475_vm0, %v1986_v38, 0.0  ;;  %v1558_v5 = vld [vmem:[#allocation4 + $0xf0] sm:$0xff] }
 0x1ed   : > { %2222 = vst.msk [vmem:[%s3264_s22 + $0x58] sm:$0xf] %vm2199_vm11, %v2448_v56  ;;  %v2449_v0 = vpack.c.bf16 %v1889_v53, %v1889_v53  ;;  %v2038_v3 = vsel %vm475_vm0, %v1987_v60, 0.0  ;;  %v1939_v4 = vsel %vm475_vm0, %v1887_v63, 0.0  ;;  %v1989_v7 = vmul.f32 %v1888_v51, %v1888_v51  ;;  %v1556_v11 = vld [vmem:[#allocation4 + $0xe0] sm:$0xff]  ;;  %v1559_v17 = vld [vmem:[#allocation4 + $0xf8] sm:$0xff] }
 0x1ee   : > { %v1938_v62 = vadd.f32 %v1937_v57, %v1936_v59  ;;  %v2037_v2 = vadd.f32 %v2036_v37, %v2035_v58  ;;  %2220 = vst.msk [vmem:[%s3264_s22 + $0x50] sm:$0xf] %vm2199_vm11, %v2446_v61  ;;  %v2697_v6 = vpop.f32.mrb[44].mxu0  ;;  %v1988_v8 = vmul.f32 %v1887_v63, %v1887_v63  ;;  %v2447_v9 = vpack.c.bf16 %v1887_v63, %v1887_v63 }
 0x1ef   : > { %2223 = vst.msk [vmem:[%s3264_s22 + $0x5c] sm:$0xf] %vm2199_vm11, %v2449_v0  ;;  %v1832_v10 = vadd.f32 %v2697_v6, %v1558_v5  ;;  %v1787_v12 = vpop.f32.mrb[45].mxu0  ;;  %v1941_v18 = vsel %vm475_vm0, %v1888_v51, 0.0  ;;  %v1990_v20 = vmul.f32 %v1889_v53, %v1889_v53  ;;  %v2042_v33 = vsel %vm475_vm0, %v1989_v7, 0.0 }
 0x1f0   : > { %v2039_v13 = vadd.f32 %v2038_v3, %v2037_v2  ;;  %v1940_v15 = vadd.f32 %v1939_v4, %v1938_v62  ;;  %v1830_v16 = vadd.f32 %v1787_v12, %v1556_v11  ;;  %v2698_v1 = vpop.f32.mrb[46].mxu0  ;;  %v2040_v21 = vsel %vm475_vm0, %v1988_v8, 0.0  ;;  %2221 = vst.msk [vmem:[%s3264_s22 + $0x54] sm:$0xf] %vm2199_vm11, %v2447_v9 }
 0x1f1   : > { %1864 = vst.msk [vmem:[#allocation4 + $0xf0] sm:$0xff] %vm475_vm0, %v1832_v10  ;;  %v1833_v22 = vadd.f32 %v2698_v1, %v1559_v17  ;;  %v1557_v23 = vld [vmem:[#allocation4 + $0xe8] sm:$0xff]  ;;  %v1790_v24 = vpop.f32.mrb[47].mxu0  ;;  %v1892_v29 = vld [vmem:[#allocation4 + $0xd0] sm:$0xff]  ;;  %v1943_v14 = vsel %vm475_vm0, %v1889_v53, 0.0  ;;  %v2044_v26 = vsel %vm475_vm0, %v1990_v20, 0.0 }
 0x1f2   : > { %v1942_v27 = vadd.f32 %v1941_v18, %v1940_v15  ;;  %v2041_v28 = vadd.f32 %v2040_v21, %v2039_v13  ;;  %v1890_v30 = vld [vmem:[#allocation4 + $0xc0] sm:$0xff]  ;;  %v1893_v31 = vld [vmem:[#allocation4 + $0xd8] sm:$0xff]  ;;  %1862 = vst.msk [vmem:[#allocation4 + $0xe0] sm:$0xff] %vm475_vm0, %v1830_v16  ;;  %v1831_v32 = vadd.f32 %v1790_v24, %v1557_v23  ;;  %v2452_v34 = vpack.c.bf16 %v1892_v29, %v1892_v29 }
 0x1f3   : > { %v1945_v35 = vsel %vm475_vm0, %v1890_v30, 0.0  ;;  %v1891_v36 = vld [vmem:[#allocation4 + $0xc8] sm:$0xff]  ;;  %1865 = vst.msk [vmem:[#allocation4 + $0xf8] sm:$0xff] %vm475_vm0, %v1833_v22  ;;  %v1991_v40 = vmul.f32 %v1890_v30, %v1890_v30  ;;  %v2450_v25 = vpack.c.bf16 %v1890_v30, %v1890_v30  ;;  %v2453_v41 = vpack.c.bf16 %v1893_v31, %v1893_v31 }
 0x1f4   : > { %v2043_v38 = vadd.f32 %v2042_v33, %v2041_v28  ;;  %v1944_v39 = vadd.f32 %v1943_v14, %v1942_v27  ;;  %1863 = vst.msk [vmem:[#allocation4 + $0xe8] sm:$0xff] %vm475_vm0, %v1831_v32  ;;  %v1947_v45 = vsel %vm475_vm0, %v1891_v36, 0.0  ;;  %v1993_v46 = vmul.f32 %v1892_v29, %v1892_v29 }
 0x1f5   : > { %2226 = vst.msk [vmem:[%s3264_s22 + $0x68] sm:$0xf] %vm2199_vm11, %v2452_v34  ;;  %v2046_v44 = vsel %vm475_vm0, %v1991_v40, 0.0  ;;  %2224 = vst.msk [vmem:[%s3264_s22 + $0x60] sm:$0xf] %vm2199_vm11, %v2450_v25  ;;  %v1992_v47 = vmul.f32 %v1891_v36, %v1891_v36  ;;  %v2451_v48 = vpack.c.bf16 %v1891_v36, %v1891_v36  ;;  %v1994_v50 = vmul.f32 %v1893_v31, %v1893_v31 }
 0x1f6   : > { %v1946_v42 = vadd.f32 %v1945_v35, %v1944_v39  ;;  %v2045_v43 = vadd.f32 %v2044_v26, %v2043_v38  ;;  %2227 = vst.msk [vmem:[%s3264_s22 + $0x6c] sm:$0xf] %vm2199_vm11, %v2453_v41  ;;  %v1949_v53 = vsel %vm475_vm0, %v1892_v29, 0.0  ;;  %v2050_v60 = vsel %vm475_vm0, %v1993_v46, 0.0 }
 0x1f7   : > { %v2048_v19 = vsel %vm475_vm0, %v1992_v47, 0.0  ;;  %2225 = vst.msk [vmem:[%s3264_s22 + $0x64] sm:$0xf] %vm2199_vm11, %v2451_v48  ;;  %v1951_v61 = vsel %vm475_vm0, %v1893_v31, 0.0  ;;  %v2052_v62 = vsel %vm475_vm0, %v1994_v50, 0.0 }
 0x1f8   : > { %v2047_v49 = vadd.f32 %v2046_v44, %v2045_v43  ;;  %v1948_v51 = vadd.f32 %v1947_v45, %v1946_v42  ;;  %v1896_v52 = vld [vmem:[#allocation4 + $0xf0] sm:$0xff] }
 0x1f9   : > { %v2456_v54 = vpack.c.bf16 %v1896_v52, %v1896_v52  ;;  %v1894_v55 = vld [vmem:[#allocation4 + $0xe0] sm:$0xff]  ;;  %v1997_v11 = vmul.f32 %v1896_v52, %v1896_v52  ;;  %v1957_v16 = vsel %vm475_vm0, %v1896_v52, 0.0 }
 0x1fa   : > { %v1950_v56 = vadd.f32 %v1949_v53, %v1948_v51  ;;  %v2049_v57 = vadd.f32 %v2048_v19, %v2047_v49  ;;  %v1995_v58 = vmul.f32 %v1894_v55, %v1894_v55  ;;  %v1897_v59 = vld [vmem:[#allocation4 + $0xf8] sm:$0xff]  ;;  %v1953_v63 = vsel %vm475_vm0, %v1894_v55, 0.0 }
 0x1fb   : > { %2230 = vst.msk [vmem:[%s3264_s22 + $0x78] sm:$0xf] %vm2199_vm11, %v2456_v54  ;;  %v2454_v37 = vpack.c.bf16 %v1894_v55, %v1894_v55  ;;  %v1895_v0 = vld [vmem:[#allocation4 + $0xe8] sm:$0xff]  ;;  %v2457_v4 = vpack.c.bf16 %v1897_v59, %v1897_v59  ;;  %v1998_v17 = vmul.f32 %v1897_v59, %v1897_v59  ;;  %v2058_v20 = vsel %vm475_vm0, %v1997_v11, 0.0 }
 0x1fc   : > { %v2051_v2 = vadd.f32 %v2050_v60, %v2049_v57  ;;  %v1952_v3 = vadd.f32 %v1951_v61, %v1950_v56  ;;  %v2054_v5 = vsel %vm475_vm0, %v1995_v58, 0.0  ;;  %v1955_v6 = vsel %vm475_vm0, %v1895_v0, 0.0 }
 0x1fd   : > { %2228 = vst.msk [vmem:[%s3264_s22 + $0x70] sm:$0xf] %vm2199_vm11, %v2454_v37  ;;  %v1996_v7 = vmul.f32 %v1895_v0, %v1895_v0  ;;  %v2455_v8 = vpack.c.bf16 %v1895_v0, %v1895_v0  ;;  %2231 = vst.msk [vmem:[%s3264_s22 + $0x7c] sm:$0xf] %vm2199_vm11, %v2457_v4  ;;  %v1959_v21 = vsel %vm475_vm0, %v1897_v59, 0.0  ;;  %v2060_v24 = vsel %vm475_vm0, %v1998_v17, 0.0 }
 0x1fe   : > { %v1954_v9 = vadd.f32 %v1953_v63, %v1952_v3  ;;  %v2053_v10 = vadd.f32 %v2052_v62, %v2051_v2 }
 0x1ff   : > { %v2056_v12 = vsel %vm475_vm0, %v1996_v7, 0.0  ;;  %2229 = vst.msk [vmem:[%s3264_s22 + $0x74] sm:$0xf] %vm2199_vm11, %v2455_v8 }
 0x200   : > { %v2055_v13 = vadd.f32 %v2054_v5, %v2053_v10  ;;  %v1956_v15 = vadd.f32 %v1955_v6, %v1954_v9 }
 0x202   : > { %v1958_v1 = vadd.f32 %v1957_v16, %v1956_v15  ;;  %v2057_v18 = vadd.f32 %v2056_v12, %v2055_v13 }
 0x204   : > { %v1960_v22 = vadd.f32 %v1959_v21, %v1958_v1  ;;  %v2059_v23 = vadd.f32 %v2058_v20, %v2057_v18 }
 0x206   : > { %v1961_v27 = vrot.slane %v1960_v22, 4  ;;  %v2061_v28 = vadd.f32 %v2060_v24, %v2059_v23 }
 0x208   : > { %v1962_v29 = vadd.f32 %v1961_v27, %v1960_v22  ;;  %v2062_v30 = vrot.slane %v2061_v28, 4 }
 0x20a   : > { %v1963_v31 = vrot.slane %v1962_v29, 2  ;;  %v2063_v32 = vadd.f32 %v2062_v30, %v2061_v28 }
 0x20c   : > { %v1964_v33 = vadd.f32 %v1963_v31, %v1962_v29  ;;  %v2064_v14 = vrot.slane %v2063_v32, 2 }
 0x20e   : > { %v1965_v34 = vrot.slane %v1964_v33, 1  ;;  %v2065_v35 = vadd.f32 %v2064_v14, %v2063_v32 }
 0x210   : > { %v2066_v36 = vrot.slane %v2065_v35, 1  ;;  %v1966_v38 = vadd.f32 %v1965_v34, %v1964_v33 }
 0x212   : > { %v2067_v39 = vadd.f32 %v2066_v36, %v2065_v35 }
 0x214   : > { %v2069_v40 = vsel %vm2068_vm12, %v1966_v38, %v2067_v39 }
 0x215   : > { %2070 = vst.msk [vmem:[%s235_s25] sm:$0x3] %vm478_vm1, %v2069_v40 }
 0x216 PF: > { %s16_s18 = sadd.s32 1, %s2730_s18  }
 0x217   : > { %p13_p4 = scmp.ge.s32.totalorder %s16_s18, 4  }
 0x219   :  { %15 = sbr.rel (!%p13_p4) target bundleno = 1 (0x1), region = 84 }

</bundles_post_ra>
